<compile_context>
chip_gen: v7x
topology: tpu7x:2x2x1
jax: 0.10.0
libtpu: 0.0.40
codegen_flags: <defaults>
</compile_context>

<pallas_src>
import functools

import jax
import jax.numpy as jnp
from jax.experimental import pallas as pl
from jax.experimental.pallas import tpu as pltpu


def _round_up(n, m):
    return ((n + m - 1) // m) * m


# ---------------------------------------------------------------------------
# Pallas kernel: fused BiLSTM stack + hidden2label, fully VMEM resident
# ---------------------------------------------------------------------------
def _half_cell(g4, h, c, m, H):
    """One LSTM cell update for one direction on a (B, 4H) gate slab.

    Gate order i, f, g, o (PyTorch). Returns (h_next, c_next, masked_output).
    """
    i_g = jax.nn.sigmoid(g4[:, 0 * H:1 * H])
    f_g = jax.nn.sigmoid(g4[:, 1 * H:2 * H])
    g_g = jnp.tanh(g4[:, 2 * H:3 * H])
    o_g = jax.nn.sigmoid(g4[:, 3 * H:4 * H])
    c_new = f_g * c + i_g * g_g
    h_new = o_g * jnp.tanh(c_new)
    # packed-sequence semantics: freeze state at padded steps, zero padded
    # outputs (pad_packed_sequence).
    return (jnp.where(m, h_new, h),
            jnp.where(m, c_new, c),
            jnp.where(m, h_new, 0.0))


def _bilstm_stack_kernel(*refs, T, B, H, n_layers):
    """Single-invocation kernel (no grid); everything resident in VMEM.

    refs layout (inputs, then output, then scratch):
      len_ref   (B, 1)      int32  valid length per (padded) batch row
      x_ref     (T*B, E)    f32    time-major flattened embedded input
      per layer l:
        wih_l   (D_l, 8H)   f32    [W_ih_fwd | W_ih_bwd], gate order i,f,g,o
        whh_l   (2H, 8H)    f32    blockdiag(W_hh_fwd, W_hh_bwd)
        b_l     (1, 8H)     f32    fused biases (b_ih + b_hh), both directions
      wout_ref  (2H, TAGP)  f32    hidden2label weight, tag dim padded to 128
      bout_ref  (1, TAGP)   f32
      out_ref   (T*B, TAGP) f32
      hcat_ref  (T*B, 2H)   f32    scratch: inter-layer activations [h_f | h_b]
      gin_ref   (T*B, 8H)   f32    scratch: hoisted per-layer input projections
    """
    len_ref, x_ref = refs[0], refs[1]
    layer_refs = refs[2:2 + 3 * n_layers]
    wout_ref, bout_ref = refs[2 + 3 * n_layers], refs[3 + 3 * n_layers]
    out_ref = refs[4 + 3 * n_layers]
    hcat_ref, gin_ref = refs[5 + 3 * n_layers], refs[6 + 3 * n_layers]

    H2, H4, H8 = 2 * H, 4 * H, 8 * H

    # Lengths broadcast to (B, H) once (broadcast_in_dim is not CSE'd by JAX,
    # so hoist it out of all loops); per-step masks are then a single compare.
    len_bh = jnp.broadcast_to(len_ref[...], (B, H))

    zeros = jnp.zeros((B, H), jnp.float32)

    for l in range(n_layers):
        wih = layer_refs[3 * l][...]
        whh = layer_refs[3 * l + 1][...]
        bias = layer_refs[3 * l + 2][...]

        # Hoisted batched input projection for BOTH directions: one
        # (T*B, D) x (D, 8H) MXU pass, materialized into an explicit VMEM
        # scratch ref so its live range never hits the vreg allocator.
        # TODO(synk): run this matmul in bf16 on v6e/v7x once tolerance allows.
        src = x_ref[...] if l == 0 else hcat_ref[...]
        gin_ref[...] = (jnp.dot(src, wih, preferred_element_type=jnp.float32)
                        + bias)

        # Interleaved forward/backward recurrence: step s runs the forward
        # direction at time tf = s and the backward direction at tb = T-1-s.
        # The chains are independent (2-way ILP) and share ONE fused
        # (B, 2H) x (2H, 8H) recurrent matmul per step.
        # TODO(synk): for large T switch to lax.fori_loop(unroll=2..4) to bound
        # vreg live ranges; T is tiny here so a full static unroll wins.
        # TODO(synk): on v5e, hold whh in MXU staging regs across the loop via
        # pltpu.matmul_push_rhs / matmul_acc_lhs instead of jnp.dot.
        h_f, c_f, h_b, c_b = zeros, zeros, zeros, zeros
        for s in range(T):
            tf, tb = s, T - 1 - s
            m_f = len_bh > tf          # (B, H) bool, built in-loop (one compare)
            m_b = len_bh > tb

            # Critical-path head: single fused recurrent matmul for both dirs.
            gmm = jnp.dot(jnp.concatenate([h_f, h_b], axis=1), whh,
                          preferred_element_type=jnp.float32)        # (B, 8H)
            # Pre-activations (independent of h -> off the critical path).
            g_f = gin_ref[tf * B:(tf + 1) * B, 0:H4] + gmm[:, 0:H4]
            g_b = gin_ref[tb * B:(tb + 1) * B, H4:H8] + gmm[:, H4:H8]

            h_f, c_f, o_f = _half_cell(g_f, h_f, c_f, m_f, H)
            h_b, c_b, o_b = _half_cell(g_b, h_b, c_b, m_b, H)

            # VMEM scratch stores; static, sublane-aligned row offsets.
            hcat_ref[tf * B:(tf + 1) * B, 0:H] = o_f
            hcat_ref[tb * B:(tb + 1) * B, H:H2] = o_b

    # Fused hidden2label epilogue on the VMEM-resident activations; the tag
    # dim is padded to 128 lanes so the only HBM store is lane-dense/unmasked.
    out_ref[...] = (jnp.dot(hcat_ref[...], wout_ref[...],
                            preferred_element_type=jnp.float32) + bout_ref[...])


# ---------------------------------------------------------------------------
# Forward pass glue (embedding lookup, padding, weight packing, pallas_call)
# ---------------------------------------------------------------------------
def bilstm_crf_forward(params, sentence, sent_lengths):
    """Mirrors BiLstmCrf.forward (returns y = hidden2label(lstm_out))."""
    T, B = sentence.shape
    Bp = _round_up(B, 8)                         # sublane-aligned batch
    H = params["lstm"][0]["w_hh_f"].shape[0]
    tag_num = params["w_out"].shape[1]
    TAGP = _round_up(tag_num, 128)               # lane-dense HBM writeback
    n_layers = len(params["lstm"])

    # Embedding lookup (padding_idx row is zero) — plain XLA gather.
    x = params["embedding"][sentence]                                # (T, B, E)
    x = jnp.pad(x, ((0, 0), (0, Bp - B), (0, 0)))                    # zero rows
    E = x.shape[-1]
    x2 = x.reshape(T * Bp, E)
    lengths_col = jnp.pad(sent_lengths.astype(jnp.int32), (0, Bp - B)).reshape(Bp, 1)

    # Pack per-layer weights: [W_ih_f | W_ih_b], blockdiag(W_hh_f, W_hh_b),
    # fused biases (gate order i,f,g,o in each 4H block).
    layer_args = []
    layer_in_dims = []
    for layer in params["lstm"]:
        D = layer["w_ih_f"].shape[0]
        layer_in_dims.append(D)
        wih = jnp.concatenate([layer["w_ih_f"], layer["w_ih_b"]], axis=1)   # (D, 8H)
        whh = jnp.zeros((2 * H, 8 * H), jnp.float32)
        whh = whh.at[:H, :4 * H].set(layer["w_hh_f"])
        whh = whh.at[H:, 4 * H:].set(layer["w_hh_b"])                       # (2H, 8H)
        bias = jnp.concatenate([layer["b_f"], layer["b_b"]], axis=1)        # (1, 8H)
        layer_args += [wih, whh, bias]

    w_out = jnp.pad(params["w_out"], ((0, 0), (0, TAGP - tag_num)))
    b_out = jnp.pad(params["b_out"], ((0, 0), (0, TAGP - tag_num)))

    # Explicit VMEM budget (fully resident design; fits v5e/v6e/v7x easily).
    act_bytes = 4 * T * Bp * (E + 8 * H + 2 * H + TAGP)
    w_bytes = 4 * (sum(d * 8 * H + 2 * H * 8 * H + 8 * H for d in layer_in_dims)
                   + 2 * H * TAGP + TAGP) + 4 * Bp
    vmem_limit = max(16 << 20, 2 * (act_bytes + w_bytes) + (1 << 20))

    kernel = functools.partial(_bilstm_stack_kernel, T=T, B=Bp, H=H,
                               n_layers=n_layers)
    out = pl.pallas_call(
        kernel,
        out_shape=jax.ShapeDtypeStruct((T * Bp, TAGP), jnp.float32),
        scratch_shapes=[pltpu.VMEM((T * Bp, 2 * H), jnp.float32),   # hcat
                        pltpu.VMEM((T * Bp, 8 * H), jnp.float32)],  # gin
        compiler_params=pltpu.CompilerParams(vmem_limit_bytes=int(vmem_limit)),
        # TODO(synk): on v7x (2 TensorCores) add a batch grid axis with
        # dimension_semantics=("parallel",) once Bp is large enough to split.
    )(lengths_col, x2, *layer_args, w_out, b_out)

    return out.reshape(T, Bp, TAGP)[:, :B, :tag_num]                 # (T, B, tag_num)


# ---------------------------------------------------------------------------
# Pure-JAX reference (correctness check of the Pallas kernel)
# ---------------------------------------------------------------------------
def reverse_within_length(x, lengths):
    """Reverse each sequence inside its valid length (what packing provides)."""
    T = x.shape[0]
    t_idx = jnp.arange(T)[:, None]
    rev = jnp.where(t_idx < lengths[None, :], lengths[None, :] - 1 - t_idx, t_idx)
    rev = jnp.broadcast_to(rev[:, :, None], x.shape)
    return jnp.take_along_axis(x, rev, axis=0)


def _ref_lstm_dir(x, mask, w_ih, w_hh, b):
    B = x.shape[1]
    H = w_hh.shape[0]

    def step(carry, xm):
        h, c = carry
        xt, mt = xm
        gates = xt @ w_ih + h @ w_hh + b
        i_g = jax.nn.sigmoid(gates[:, :H])
        f_g = jax.nn.sigmoid(gates[:, H:2 * H])
        g_g = jnp.tanh(gates[:, 2 * H:3 * H])
        o_g = jax.nn.sigmoid(gates[:, 3 * H:])
        c_new = f_g * c + i_g * g_g
        h_new = o_g * jnp.tanh(c_new)
        return (mt * h_new + (1 - mt) * h, mt * c_new + (1 - mt) * c), mt * h_new

    init = (jnp.zeros((B, H), jnp.float32), jnp.zeros((B, H), jnp.float32))
    _, hs = jax.lax.scan(step, init, (x, mask))
    return hs


def ref_forward(params, sentence, sent_lengths):
    T, B = sentence.shape
    x = params["embedding"][sentence]
    mask = (jnp.arange(T)[:, None] < sent_lengths[None, :]).astype(jnp.float32)[:, :, None]
    inp = x
    for layer in params["lstm"]:
        h_fwd = _ref_lstm_dir(inp, mask, layer["w_ih_f"], layer["w_hh_f"], layer["b_f"])
        inp_rev = reverse_within_length(inp, sent_lengths)
        h_bwd_rev = _ref_lstm_dir(inp_rev, mask, layer["w_ih_b"], layer["w_hh_b"], layer["b_b"])
        h_bwd = reverse_within_length(h_bwd_rev, sent_lengths)
        inp = jnp.concatenate([h_fwd, h_bwd], axis=-1)
    return inp @ params["w_out"] + params["b_out"]


# ---------------------------------------------------------------------------
# Deterministic parameter construction (matches module __init__ shapes)
# ---------------------------------------------------------------------------
def make_params(key, vocab_size, emb_dim, hidden_dim, tag_num, num_layers, pad_index):
    H = hidden_dim // 2
    keys = jax.random.split(key, 4 + num_layers * 8)
    ki = iter(keys)

    emb = 0.1 * jax.random.normal(next(ki), (vocab_size, emb_dim), jnp.float32)
    emb = emb.at[pad_index].set(0.0)                                 # padding_idx

    lstm_layers = []
    in_dim = emb_dim
    for _ in range(num_layers):
        def u(k, shape):
            return jax.random.uniform(k, shape, jnp.float32, -0.2, 0.2)
        layer = {
            # stored transposed relative to PyTorch: (in, 4H) / (H, 4H); gate order i,f,g,o
            "w_ih_f": u(next(ki), (in_dim, 4 * H)),
            "w_hh_f": u(next(ki), (H, 4 * H)),
            "b_f":    u(next(ki), (1, 4 * H)),   # b_ih + b_hh fused
            "w_ih_b": u(next(ki), (in_dim, 4 * H)),
            "w_hh_b": u(next(ki), (H, 4 * H)),
            "b_b":    u(next(ki), (1, 4 * H)),
        }
        _ = next(ki); _ = next(ki)               # keep split count balanced per layer
        lstm_layers.append(layer)
        in_dim = hidden_dim                      # bidirectional concat feeds next layer

    w_out = jax.random.uniform(next(ki), (hidden_dim, tag_num), jnp.float32, -0.2, 0.2)
    b_out = jax.random.uniform(next(ki), (1, tag_num), jnp.float32, -0.2, 0.2)

    return {"embedding": emb, "lstm": lstm_layers, "w_out": w_out, "b_out": b_out}


# ---------------------------------------------------------------------------
if __name__ == "__main__":
    # args: vocabulary_size=50, embedding_dim=16, hidden_dim=32, tag_num=8,
    #       num_layers=2, pad_index=0, batch_size=2
    VOCAB, EMB, HIDDEN, TAGS, LAYERS, PAD = 50, 16, 32, 8, 2, 0
    T, B = 8, 2

    key = jax.random.PRNGKey(0)
    k_par, k_tok = jax.random.split(key)
    params = make_params(k_par, VOCAB, EMB, HIDDEN, TAGS, LAYERS, PAD)

    # lengths sorted descending (pack_padded_sequence requirement)
    sent_lengths = jnp.array([8, 6], dtype=jnp.int32)
    sentence = jax.random.randint(k_tok, (T, B), 1, VOCAB, dtype=jnp.int32)
    pad_mask = jnp.arange(T)[:, None] >= sent_lengths[None, :]
    sentence = jnp.where(pad_mask, PAD, sentence)                    # (T, B)

    y = jax.block_until_ready(bilstm_crf_forward(params, sentence, sent_lengths))
    y_ref = jax.block_until_ready(ref_forward(params, sentence, sent_lengths))

    assert y.shape == (T, B, TAGS)
    assert jnp.max(jnp.abs(y - y_ref)) < 1e-4

    print("KERNEL_OK")
</pallas_src>

<mosaic_0001>
module attributes {stable_mosaic.version = 11 : i64} {
  func.func @_bilstm_stack_kernel(%arg0: memref<8x1xi32, #tpu.memory_space<vmem>>, %arg1: memref<64x16xf32, #tpu.memory_space<vmem>>, %arg2: memref<16x128xf32, #tpu.memory_space<vmem>>, %arg3: memref<32x128xf32, #tpu.memory_space<vmem>>, %arg4: memref<1x128xf32, #tpu.memory_space<vmem>>, %arg5: memref<32x128xf32, #tpu.memory_space<vmem>>, %arg6: memref<32x128xf32, #tpu.memory_space<vmem>>, %arg7: memref<1x128xf32, #tpu.memory_space<vmem>>, %arg8: memref<32x128xf32, #tpu.memory_space<vmem>>, %arg9: memref<1x128xf32, #tpu.memory_space<vmem>>, %arg10: memref<64x128xf32, #tpu.memory_space<vmem>>, %arg11: memref<64x32xf32, #tpu.memory_space<vmem>>, %arg12: memref<64x128xf32, #tpu.memory_space<vmem>>) attributes {dimension_semantics = [], scalar_prefetch = 0 : i64, scratch_operands = 2 : i64, tpu.core_type = #tpu.core_type<tc>} {
    %c0 = arith.constant 0 : index
    %c0_0 = arith.constant 0 : index
    %0 = vector.load %arg0[%c0, %c0_0] : memref<8x1xi32, #tpu.memory_space<vmem>>, vector<8x1xi32>
    %1 = vector.shape_cast %0 : vector<8x1xi32> to vector<8x1xi32>
    %2 = vector.broadcast %1 : vector<8x1xi32> to vector<8x16xi32>
    %cst = arith.constant 0.000000e+00 : f32
    %3 = vector.broadcast %cst : f32 to vector<8x16xf32>
    %c0_1 = arith.constant 0 : index
    %c0_2 = arith.constant 0 : index
    %4 = vector.load %arg2[%c0_1, %c0_2] : memref<16x128xf32, #tpu.memory_space<vmem>>, vector<16x128xf32>
    %c0_3 = arith.constant 0 : index
    %c0_4 = arith.constant 0 : index
    %5 = vector.load %arg3[%c0_3, %c0_4] : memref<32x128xf32, #tpu.memory_space<vmem>>, vector<32x128xf32>
    %c0_5 = arith.constant 0 : index
    %c0_6 = arith.constant 0 : index
    %6 = vector.load %arg4[%c0_5, %c0_6] : memref<1x128xf32, #tpu.memory_space<vmem>>, vector<1x128xf32>
    %c0_7 = arith.constant 0 : index
    %c0_8 = arith.constant 0 : index
    %7 = vector.load %arg1[%c0_7, %c0_8] : memref<64x16xf32, #tpu.memory_space<vmem>>, vector<64x16xf32>
    %cst_9 = arith.constant dense<0.000000e+00> : vector<64x128xf32>
    %8 = tpu.matmul %7, %4, %cst_9 {dimension_numbers = #tpu.dot_dimension_numbers<[1], [0], [0], [1], [0, 0, 1, 1], [], []>} : vector<64x16xf32>, vector<16x128xf32>, vector<64x128xf32> -> vector<64x128xf32>
    %9 = vector.broadcast %6 : vector<1x128xf32> to vector<64x128xf32>
    %10 = arith.addf %8, %9 : vector<64x128xf32>
    %c0_10 = arith.constant 0 : index
    %c0_11 = arith.constant 0 : index
    %11 = vector.load %arg12[%c0_10, %c0_11] : memref<64x128xf32, #tpu.memory_space<vmem>>, vector<64x128xf32>
    tpu.vector_store %arg12[%c0_10, %c0_11], %10 {strides = array<i32>} : memref<64x128xf32, #tpu.memory_space<vmem>>, vector<64x128xf32>,
    %c0_i32 = arith.constant 0 : i32
    %12 = vector.broadcast %c0_i32 : i32 to vector<8x16xi32>
    %13 = arith.cmpi sgt, %2, %12 : vector<8x16xi32>
    %c7_i32 = arith.constant 7 : i32
    %14 = vector.broadcast %c7_i32 : i32 to vector<8x16xi32>
    %15 = arith.cmpi sgt, %2, %14 : vector<8x16xi32>
    %16 = tpu.concatenate %3, %3 in 1 : vector<8x16xf32>, vector<8x16xf32> -> vector<8x32xf32>
    %cst_12 = arith.constant dense<0.000000e+00> : vector<8x128xf32>
    %17 = tpu.matmul %16, %5, %cst_12 {dimension_numbers = #tpu.dot_dimension_numbers<[1], [0], [0], [1], [0, 0, 1, 1], [], []>} : vector<8x32xf32>, vector<32x128xf32>, vector<8x128xf32> -> vector<8x128xf32>
    %c0_13 = arith.constant 0 : index
    %c0_14 = arith.constant 0 : index
    %18 = vector.load %arg12[%c0_13, %c0_14] : memref<64x128xf32, #tpu.memory_space<vmem>>, vector<8x64xf32>
    %19 = vector.extract_strided_slice %17 {offsets = [0, 0], sizes = [8, 64], strides = [1, 1]} : vector<8x128xf32> to vector<8x64xf32>
    %20 = arith.addf %18, %19 : vector<8x64xf32>
    %c56 = arith.constant 56 : index
    %c64 = arith.constant 64 : index
    %21 = vector.load %arg12[%c56, %c64] : memref<64x128xf32, #tpu.memory_space<vmem>>, vector<8x64xf32>
    %22 = vector.extract_strided_slice %17 {offsets = [0, 64], sizes = [8, 64], strides = [1, 1]} : vector<8x128xf32> to vector<8x64xf32>
    %23 = arith.addf %21, %22 : vector<8x64xf32>
    %24 = vector.extract_strided_slice %20 {offsets = [0, 0], sizes = [8, 16], strides = [1, 1]} : vector<8x64xf32> to vector<8x16xf32>
    %25 = arith.negf %24 : vector<8x16xf32>
    %26 = math.exp %25 : vector<8x16xf32>
    %cst_15 = arith.constant 1.000000e+00 : f32
    %27 = vector.broadcast %cst_15 : f32 to vector<8x16xf32>
    %28 = arith.addf %27, %26 : vector<8x16xf32>
    %29 = arith.divf %27, %28 : vector<8x16xf32>
    %30 = vector.extract_strided_slice %20 {offsets = [0, 16], sizes = [8, 16], strides = [1, 1]} : vector<8x64xf32> to vector<8x16xf32>
    %31 = arith.negf %30 : vector<8x16xf32>
    %32 = math.exp %31 : vector<8x16xf32>
    %cst_16 = arith.constant 1.000000e+00 : f32
    %33 = vector.broadcast %cst_16 : f32 to vector<8x16xf32>
    %34 = arith.addf %33, %32 : vector<8x16xf32>
    %35 = arith.divf %33, %34 : vector<8x16xf32>
    %36 = vector.extract_strided_slice %20 {offsets = [0, 32], sizes = [8, 16], strides = [1, 1]} : vector<8x64xf32> to vector<8x16xf32>
    %37 = math.tanh %36 : vector<8x16xf32>
    %38 = vector.extract_strided_slice %20 {offsets = [0, 48], sizes = [8, 16], strides = [1, 1]} : vector<8x64xf32> to vector<8x16xf32>
    %39 = arith.negf %38 : vector<8x16xf32>
    %40 = math.exp %39 : vector<8x16xf32>
    %cst_17 = arith.constant 1.000000e+00 : f32
    %41 = vector.broadcast %cst_17 : f32 to vector<8x16xf32>
    %42 = arith.addf %41, %40 : vector<8x16xf32>
    %43 = arith.divf %41, %42 : vector<8x16xf32>
    %44 = arith.mulf %35, %3 : vector<8x16xf32>
    %45 = arith.mulf %29, %37 : vector<8x16xf32>
    %46 = arith.addf %44, %45 : vector<8x16xf32>
    %47 = math.tanh %46 : vector<8x16xf32>
    %48 = arith.mulf %43, %47 : vector<8x16xf32>
    %49 = arith.select %13, %48, %3 : vector<8x16xi1>, vector<8x16xf32>
    %50 = arith.select %13, %46, %3 : vector<8x16xi1>, vector<8x16xf32>
    %cst_18 = arith.constant 0.000000e+00 : f32
    %51 = vector.broadcast %cst_18 : f32 to vector<8x16xf32>
    %52 = arith.select %13, %48, %51 : vector<8x16xi1>, vector<8x16xf32>
    %53 = vector.extract_strided_slice %23 {offsets = [0, 0], sizes = [8, 16], strides = [1, 1]} : vector<8x64xf32> to vector<8x16xf32>
    %54 = arith.negf %53 : vector<8x16xf32>
    %55 = math.exp %54 : vector<8x16xf32>
    %cst_19 = arith.constant 1.000000e+00 : f32
    %56 = vector.broadcast %cst_19 : f32 to vector<8x16xf32>
    %57 = arith.addf %56, %55 : vector<8x16xf32>
    %58 = arith.divf %56, %57 : vector<8x16xf32>
    %59 = vector.extract_strided_slice %23 {offsets = [0, 16], sizes = [8, 16], strides = [1, 1]} : vector<8x64xf32> to vector<8x16xf32>
    %60 = arith.negf %59 : vector<8x16xf32>
    %61 = math.exp %60 : vector<8x16xf32>
    %cst_20 = arith.constant 1.000000e+00 : f32
    %62 = vector.broadcast %cst_20 : f32 to vector<8x16xf32>
    %63 = arith.addf %62, %61 : vector<8x16xf32>
    %64 = arith.divf %62, %63 : vector<8x16xf32>
    %65 = vector.extract_strided_slice %23 {offsets = [0, 32], sizes = [8, 16], strides = [1, 1]} : vector<8x64xf32> to vector<8x16xf32>
    %66 = math.tanh %65 : vector<8x16xf32>
    %67 = vector.extract_strided_slice %23 {offsets = [0, 48], sizes = [8, 16], strides = [1, 1]} : vector<8x64xf32> to vector<8x16xf32>
    %68 = arith.negf %67 : vector<8x16xf32>
    %69 = math.exp %68 : vector<8x16xf32>
    %cst_21 = arith.constant 1.000000e+00 : f32
    %70 = vector.broadcast %cst_21 : f32 to vector<8x16xf32>
    %71 = arith.addf %70, %69 : vector<8x16xf32>
    %72 = arith.divf %70, %71 : vector<8x16xf32>
    %73 = arith.mulf %64, %3 : vector<8x16xf32>
    %74 = arith.mulf %58, %66 : vector<8x16xf32>
    %75 = arith.addf %73, %74 : vector<8x16xf32>
    %76 = math.tanh %75 : vector<8x16xf32>
    %77 = arith.mulf %72, %76 : vector<8x16xf32>
    %78 = arith.select %15, %77, %3 : vector<8x16xi1>, vector<8x16xf32>
    %79 = arith.select %15, %75, %3 : vector<8x16xi1>, vector<8x16xf32>
    %cst_22 = arith.constant 0.000000e+00 : f32
    %80 = vector.broadcast %cst_22 : f32 to vector<8x16xf32>
    %81 = arith.select %15, %77, %80 : vector<8x16xi1>, vector<8x16xf32>
    %c0_23 = arith.constant 0 : index
    %c0_24 = arith.constant 0 : index
    %82 = vector.load %arg11[%c0_23, %c0_24] : memref<64x32xf32, #tpu.memory_space<vmem>>, vector<8x16xf32>
    tpu.vector_store %arg11[%c0_23, %c0_24], %52 {strides = array<i32>} : memref<64x32xf32, #tpu.memory_space<vmem>>, vector<8x16xf32>,
    %c56_25 = arith.constant 56 : index
    %c16 = arith.constant 16 : index
    %83 = vector.load %arg11[%c56_25, %c16] : memref<64x32xf32, #tpu.memory_space<vmem>>, vector<8x16xf32>
    tpu.vector_store %arg11[%c56_25, %c16], %81 {strides = array<i32>} : memref<64x32xf32, #tpu.memory_space<vmem>>, vector<8x16xf32>,
    %c1_i32 = arith.constant 1 : i32
    %84 = vector.broadcast %c1_i32 : i32 to vector<8x16xi32>
    %85 = arith.cmpi sgt, %2, %84 : vector<8x16xi32>
    %c6_i32 = arith.constant 6 : i32
    %86 = vector.broadcast %c6_i32 : i32 to vector<8x16xi32>
    %87 = arith.cmpi sgt, %2, %86 : vector<8x16xi32>
    %88 = tpu.concatenate %49, %78 in 1 : vector<8x16xf32>, vector<8x16xf32> -> vector<8x32xf32>
    %cst_26 = arith.constant dense<0.000000e+00> : vector<8x128xf32>
    %89 = tpu.matmul %88, %5, %cst_26 {dimension_numbers = #tpu.dot_dimension_numbers<[1], [0], [0], [1], [0, 0, 1, 1], [], []>} : vector<8x32xf32>, vector<32x128xf32>, vector<8x128xf32> -> vector<8x128xf32>
    %c8 = arith.constant 8 : index
    %c0_27 = arith.constant 0 : index
    %90 = vector.load %arg12[%c8, %c0_27] : memref<64x128xf32, #tpu.memory_space<vmem>>, vector<8x64xf32>
    %91 = vector.extract_strided_slice %89 {offsets = [0, 0], sizes = [8, 64], strides = [1, 1]} : vector<8x128xf32> to vector<8x64xf32>
    %92 = arith.addf %90, %91 : vector<8x64xf32>
    %c48 = arith.constant 48 : index
    %c64_28 = arith.constant 64 : index
    %93 = vector.load %arg12[%c48, %c64_28] : memref<64x128xf32, #tpu.memory_space<vmem>>, vector<8x64xf32>
    %94 = vector.extract_strided_slice %89 {offsets = [0, 64], sizes = [8, 64], strides = [1, 1]} : vector<8x128xf32> to vector<8x64xf32>
    %95 = arith.addf %93, %94 : vector<8x64xf32>
    %96 = vector.extract_strided_slice %92 {offsets = [0, 0], sizes = [8, 16], strides = [1, 1]} : vector<8x64xf32> to vector<8x16xf32>
    %97 = arith.negf %96 : vector<8x16xf32>
    %98 = math.exp %97 : vector<8x16xf32>
    %cst_29 = arith.constant 1.000000e+00 : f32
    %99 = vector.broadcast %cst_29 : f32 to vector<8x16xf32>
    %100 = arith.addf %99, %98 : vector<8x16xf32>
    %101 = arith.divf %99, %100 : vector<8x16xf32>
    %102 = vector.extract_strided_slice %92 {offsets = [0, 16], sizes = [8, 16], strides = [1, 1]} : vector<8x64xf32> to vector<8x16xf32>
    %103 = arith.negf %102 : vector<8x16xf32>
    %104 = math.exp %103 : vector<8x16xf32>
    %cst_30 = arith.constant 1.000000e+00 : f32
    %105 = vector.broadcast %cst_30 : f32 to vector<8x16xf32>
    %106 = arith.addf %105, %104 : vector<8x16xf32>
    %107 = arith.divf %105, %106 : vector<8x16xf32>
    %108 = vector.extract_strided_slice %92 {offsets = [0, 32], sizes = [8, 16], strides = [1, 1]} : vector<8x64xf32> to vector<8x16xf32>
    %109 = math.tanh %108 : vector<8x16xf32>
    %110 = vector.extract_strided_slice %92 {offsets = [0, 48], sizes = [8, 16], strides = [1, 1]} : vector<8x64xf32> to vector<8x16xf32>
    %111 = arith.negf %110 : vector<8x16xf32>
    %112 = math.exp %111 : vector<8x16xf32>
    %cst_31 = arith.constant 1.000000e+00 : f32
    %113 = vector.broadcast %cst_31 : f32 to vector<8x16xf32>
    %114 = arith.addf %113, %112 : vector<8x16xf32>
    %115 = arith.divf %113, %114 : vector<8x16xf32>
    %116 = arith.mulf %107, %50 : vector<8x16xf32>
    %117 = arith.mulf %101, %109 : vector<8x16xf32>
    %118 = arith.addf %116, %117 : vector<8x16xf32>
    %119 = math.tanh %118 : vector<8x16xf32>
    %120 = arith.mulf %115, %119 : vector<8x16xf32>
    %121 = arith.select %85, %120, %49 : vector<8x16xi1>, vector<8x16xf32>
    %122 = arith.select %85, %118, %50 : vector<8x16xi1>, vector<8x16xf32>
    %cst_32 = arith.constant 0.000000e+00 : f32
    %123 = vector.broadcast %cst_32 : f32 to vector<8x16xf32>
    %124 = arith.select %85, %120, %123 : vector<8x16xi1>, vector<8x16xf32>
    %125 = vector.extract_strided_slice %95 {offsets = [0, 0], sizes = [8, 16], strides = [1, 1]} : vector<8x64xf32> to vector<8x16xf32>
    %126 = arith.negf %125 : vector<8x16xf32>
    %127 = math.exp %126 : vector<8x16xf32>
    %cst_33 = arith.constant 1.000000e+00 : f32
    %128 = vector.broadcast %cst_33 : f32 to vector<8x16xf32>
    %129 = arith.addf %128, %127 : vector<8x16xf32>
    %130 = arith.divf %128, %129 : vector<8x16xf32>
    %131 = vector.extract_strided_slice %95 {offsets = [0, 16], sizes = [8, 16], strides = [1, 1]} : vector<8x64xf32> to vector<8x16xf32>
    %132 = arith.negf %131 : vector<8x16xf32>
    %133 = math.exp %132 : vector<8x16xf32>
    %cst_34 = arith.constant 1.000000e+00 : f32
    %134 = vector.broadcast %cst_34 : f32 to vector<8x16xf32>
    %135 = arith.addf %134, %133 : vector<8x16xf32>
    %136 = arith.divf %134, %135 : vector<8x16xf32>
    %137 = vector.extract_strided_slice %95 {offsets = [0, 32], sizes = [8, 16], strides = [1, 1]} : vector<8x64xf32> to vector<8x16xf32>
    %138 = math.tanh %137 : vector<8x16xf32>
    %139 = vector.extract_strided_slice %95 {offsets = [0, 48], sizes = [8, 16], strides = [1, 1]} : vector<8x64xf32> to vector<8x16xf32>
    %140 = arith.negf %139 : vector<8x16xf32>
    %141 = math.exp %140 : vector<8x16xf32>
    %cst_35 = arith.constant 1.000000e+00 : f32
    %142 = vector.broadcast %cst_35 : f32 to vector<8x16xf32>
    %143 = arith.addf %142, %141 : vector<8x16xf32>
    %144 = arith.divf %142, %143 : vector<8x16xf32>
    %145 = arith.mulf %136, %79 : vector<8x16xf32>
    %146 = arith.mulf %130, %138 : vector<8x16xf32>
    %147 = arith.addf %145, %146 : vector<8x16xf32>
    %148 = math.tanh %147 : vector<8x16xf32>
    %149 = arith.mulf %144, %148 : vector<8x16xf32>
    %150 = arith.select %87, %149, %78 : vector<8x16xi1>, vector<8x16xf32>
    %151 = arith.select %87, %147, %79 : vector<8x16xi1>, vector<8x16xf32>
    %cst_36 = arith.constant 0.000000e+00 : f32
    %152 = vector.broadcast %cst_36 : f32 to vector<8x16xf32>
    %153 = arith.select %87, %149, %152 : vector<8x16xi1>, vector<8x16xf32>
    %c8_37 = arith.constant 8 : index
    %c0_38 = arith.constant 0 : index
    %154 = vector.load %arg11[%c8_37, %c0_38] : memref<64x32xf32, #tpu.memory_space<vmem>>, vector<8x16xf32>
    tpu.vector_store %arg11[%c8_37, %c0_38], %124 {strides = array<i32>} : memref<64x32xf32, #tpu.memory_space<vmem>>, vector<8x16xf32>,
    %c48_39 = arith.constant 48 : index
    %c16_40 = arith.constant 16 : index
    %155 = vector.load %arg11[%c48_39, %c16_40] : memref<64x32xf32, #tpu.memory_space<vmem>>, vector<8x16xf32>
    tpu.vector_store %arg11[%c48_39, %c16_40], %153 {strides = array<i32>} : memref<64x32xf32, #tpu.memory_space<vmem>>, vector<8x16xf32>,
    %c2_i32 = arith.constant 2 : i32
    %156 = vector.broadcast %c2_i32 : i32 to vector<8x16xi32>
    %157 = arith.cmpi sgt, %2, %156 : vector<8x16xi32>
    %c5_i32 = arith.constant 5 : i32
    %158 = vector.broadcast %c5_i32 : i32 to vector<8x16xi32>
    %159 = arith.cmpi sgt, %2, %158 : vector<8x16xi32>
    %160 = tpu.concatenate %121, %150 in 1 : vector<8x16xf32>, vector<8x16xf32> -> vector<8x32xf32>
    %cst_41 = arith.constant dense<0.000000e+00> : vector<8x128xf32>
    %161 = tpu.matmul %160, %5, %cst_41 {dimension_numbers = #tpu.dot_dimension_numbers<[1], [0], [0], [1], [0, 0, 1, 1], [], []>} : vector<8x32xf32>, vector<32x128xf32>, vector<8x128xf32> -> vector<8x128xf32>
    %c16_42 = arith.constant 16 : index
    %c0_43 = arith.constant 0 : index
    %162 = vector.load %arg12[%c16_42, %c0_43] : memref<64x128xf32, #tpu.memory_space<vmem>>, vector<8x64xf32>
    %163 = vector.extract_strided_slice %161 {offsets = [0, 0], sizes = [8, 64], strides = [1, 1]} : vector<8x128xf32> to vector<8x64xf32>
    %164 = arith.addf %162, %163 : vector<8x64xf32>
    %c40 = arith.constant 40 : index
    %c64_44 = arith.constant 64 : index
    %165 = vector.load %arg12[%c40, %c64_44] : memref<64x128xf32, #tpu.memory_space<vmem>>, vector<8x64xf32>
    %166 = vector.extract_strided_slice %161 {offsets = [0, 64], sizes = [8, 64], strides = [1, 1]} : vector<8x128xf32> to vector<8x64xf32>
    %167 = arith.addf %165, %166 : vector<8x64xf32>
    %168 = vector.extract_strided_slice %164 {offsets = [0, 0], sizes = [8, 16], strides = [1, 1]} : vector<8x64xf32> to vector<8x16xf32>
    %169 = arith.negf %168 : vector<8x16xf32>
    %170 = math.exp %169 : vector<8x16xf32>
    %cst_45 = arith.constant 1.000000e+00 : f32
    %171 = vector.broadcast %cst_45 : f32 to vector<8x16xf32>
    %172 = arith.addf %171, %170 : vector<8x16xf32>
    %173 = arith.divf %171, %172 : vector<8x16xf32>
    %174 = vector.extract_strided_slice %164 {offsets = [0, 16], sizes = [8, 16], strides = [1, 1]} : vector<8x64xf32> to vector<8x16xf32>
    %175 = arith.negf %174 : vector<8x16xf32>
    %176 = math.exp %175 : vector<8x16xf32>
    %cst_46 = arith.constant 1.000000e+00 : f32
    %177 = vector.broadcast %cst_46 : f32 to vector<8x16xf32>
    %178 = arith.addf %177, %176 : vector<8x16xf32>
    %179 = arith.divf %177, %178 : vector<8x16xf32>
    %180 = vector.extract_strided_slice %164 {offsets = [0, 32], sizes = [8, 16], strides = [1, 1]} : vector<8x64xf32> to vector<8x16xf32>
    %181 = math.tanh %180 : vector<8x16xf32>
    %182 = vector.extract_strided_slice %164 {offsets = [0, 48], sizes = [8, 16], strides = [1, 1]} : vector<8x64xf32> to vector<8x16xf32>
    %183 = arith.negf %182 : vector<8x16xf32>
    %184 = math.exp %183 : vector<8x16xf32>
    %cst_47 = arith.constant 1.000000e+00 : f32
    %185 = vector.broadcast %cst_47 : f32 to vector<8x16xf32>
    %186 = arith.addf %185, %184 : vector<8x16xf32>
    %187 = arith.divf %185, %186 : vector<8x16xf32>
    %188 = arith.mulf %179, %122 : vector<8x16xf32>
    %189 = arith.mulf %173, %181 : vector<8x16xf32>
    %190 = arith.addf %188, %189 : vector<8x16xf32>
    %191 = math.tanh %190 : vector<8x16xf32>
    %192 = arith.mulf %187, %191 : vector<8x16xf32>
    %193 = arith.select %157, %192, %121 : vector<8x16xi1>, vector<8x16xf32>
    %194 = arith.select %157, %190, %122 : vector<8x16xi1>, vector<8x16xf32>
    %cst_48 = arith.constant 0.000000e+00 : f32
    %195 = vector.broadcast %cst_48 : f32 to vector<8x16xf32>
    %196 = arith.select %157, %192, %195 : vector<8x16xi1>, vector<8x16xf32>
    %197 = vector.extract_strided_slice %167 {offsets = [0, 0], sizes = [8, 16], strides = [1, 1]} : vector<8x64xf32> to vector<8x16xf32>
    %198 = arith.negf %197 : vector<8x16xf32>
    %199 = math.exp %198 : vector<8x16xf32>
    %cst_49 = arith.constant 1.000000e+00 : f32
    %200 = vector.broadcast %cst_49 : f32 to vector<8x16xf32>
    %201 = arith.addf %200, %199 : vector<8x16xf32>
    %202 = arith.divf %200, %201 : vector<8x16xf32>
    %203 = vector.extract_strided_slice %167 {offsets = [0, 16], sizes = [8, 16], strides = [1, 1]} : vector<8x64xf32> to vector<8x16xf32>
    %204 = arith.negf %203 : vector<8x16xf32>
    %205 = math.exp %204 : vector<8x16xf32>
    %cst_50 = arith.constant 1.000000e+00 : f32
    %206 = vector.broadcast %cst_50 : f32 to vector<8x16xf32>
    %207 = arith.addf %206, %205 : vector<8x16xf32>
    %208 = arith.divf %206, %207 : vector<8x16xf32>
    %209 = vector.extract_strided_slice %167 {offsets = [0, 32], sizes = [8, 16], strides = [1, 1]} : vector<8x64xf32> to vector<8x16xf32>
    %210 = math.tanh %209 : vector<8x16xf32>
    %211 = vector.extract_strided_slice %167 {offsets = [0, 48], sizes = [8, 16], strides = [1, 1]} : vector<8x64xf32> to vector<8x16xf32>
    %212 = arith.negf %211 : vector<8x16xf32>
    %213 = math.exp %212 : vector<8x16xf32>
    %cst_51 = arith.constant 1.000000e+00 : f32
    %214 = vector.broadcast %cst_51 : f32 to vector<8x16xf32>
    %215 = arith.addf %214, %213 : vector<8x16xf32>
    %216 = arith.divf %214, %215 : vector<8x16xf32>
    %217 = arith.mulf %208, %151 : vector<8x16xf32>
    %218 = arith.mulf %202, %210 : vector<8x16xf32>
    %219 = arith.addf %217, %218 : vector<8x16xf32>
    %220 = math.tanh %219 : vector<8x16xf32>
    %221 = arith.mulf %216, %220 : vector<8x16xf32>
    %222 = arith.select %159, %221, %150 : vector<8x16xi1>, vector<8x16xf32>
    %223 = arith.select %159, %219, %151 : vector<8x16xi1>, vector<8x16xf32>
    %cst_52 = arith.constant 0.000000e+00 : f32
    %224 = vector.broadcast %cst_52 : f32 to vector<8x16xf32>
    %225 = arith.select %159, %221, %224 : vector<8x16xi1>, vector<8x16xf32>
    %c16_53 = arith.constant 16 : index
    %c0_54 = arith.constant 0 : index
    %226 = vector.load %arg11[%c16_53, %c0_54] : memref<64x32xf32, #tpu.memory_space<vmem>>, vector<8x16xf32>
    tpu.vector_store %arg11[%c16_53, %c0_54], %196 {strides = array<i32>} : memref<64x32xf32, #tpu.memory_space<vmem>>, vector<8x16xf32>,
    %c40_55 = arith.constant 40 : index
    %c16_56 = arith.constant 16 : index
    %227 = vector.load %arg11[%c40_55, %c16_56] : memref<64x32xf32, #tpu.memory_space<vmem>>, vector<8x16xf32>
    tpu.vector_store %arg11[%c40_55, %c16_56], %225 {strides = array<i32>} : memref<64x32xf32, #tpu.memory_space<vmem>>, vector<8x16xf32>,
    %c3_i32 = arith.constant 3 : i32
    %228 = vector.broadcast %c3_i32 : i32 to vector<8x16xi32>
    %229 = arith.cmpi sgt, %2, %228 : vector<8x16xi32>
    %c4_i32 = arith.constant 4 : i32
    %230 = vector.broadcast %c4_i32 : i32 to vector<8x16xi32>
    %231 = arith.cmpi sgt, %2, %230 : vector<8x16xi32>
    %232 = tpu.concatenate %193, %222 in 1 : vector<8x16xf32>, vector<8x16xf32> -> vector<8x32xf32>
    %cst_57 = arith.constant dense<0.000000e+00> : vector<8x128xf32>
    %233 = tpu.matmul %232, %5, %cst_57 {dimension_numbers = #tpu.dot_dimension_numbers<[1], [0], [0], [1], [0, 0, 1, 1], [], []>} : vector<8x32xf32>, vector<32x128xf32>, vector<8x128xf32> -> vector<8x128xf32>
    %c24 = arith.constant 24 : index
    %c0_58 = arith.constant 0 : index
    %234 = vector.load %arg12[%c24, %c0_58] : memref<64x128xf32, #tpu.memory_space<vmem>>, vector<8x64xf32>
    %235 = vector.extract_strided_slice %233 {offsets = [0, 0], sizes = [8, 64], strides = [1, 1]} : vector<8x128xf32> to vector<8x64xf32>
    %236 = arith.addf %234, %235 : vector<8x64xf32>
    %c32 = arith.constant 32 : index
    %c64_59 = arith.constant 64 : index
    %237 = vector.load %arg12[%c32, %c64_59] : memref<64x128xf32, #tpu.memory_space<vmem>>, vector<8x64xf32>
    %238 = vector.extract_strided_slice %233 {offsets = [0, 64], sizes = [8, 64], strides = [1, 1]} : vector<8x128xf32> to vector<8x64xf32>
    %239 = arith.addf %237, %238 : vector<8x64xf32>
    %240 = vector.extract_strided_slice %236 {offsets = [0, 0], sizes = [8, 16], strides = [1, 1]} : vector<8x64xf32> to vector<8x16xf32>
    %241 = arith.negf %240 : vector<8x16xf32>
    %242 = math.exp %241 : vector<8x16xf32>
    %cst_60 = arith.constant 1.000000e+00 : f32
    %243 = vector.broadcast %cst_60 : f32 to vector<8x16xf32>
    %244 = arith.addf %243, %242 : vector<8x16xf32>
    %245 = arith.divf %243, %244 : vector<8x16xf32>
    %246 = vector.extract_strided_slice %236 {offsets = [0, 16], sizes = [8, 16], strides = [1, 1]} : vector<8x64xf32> to vector<8x16xf32>
    %247 = arith.negf %246 : vector<8x16xf32>
    %248 = math.exp %247 : vector<8x16xf32>
    %cst_61 = arith.constant 1.000000e+00 : f32
    %249 = vector.broadcast %cst_61 : f32 to vector<8x16xf32>
    %250 = arith.addf %249, %248 : vector<8x16xf32>
    %251 = arith.divf %249, %250 : vector<8x16xf32>
    %252 = vector.extract_strided_slice %236 {offsets = [0, 32], sizes = [8, 16], strides = [1, 1]} : vector<8x64xf32> to vector<8x16xf32>
    %253 = math.tanh %252 : vector<8x16xf32>
    %254 = vector.extract_strided_slice %236 {offsets = [0, 48], sizes = [8, 16], strides = [1, 1]} : vector<8x64xf32> to vector<8x16xf32>
    %255 = arith.negf %254 : vector<8x16xf32>
    %256 = math.exp %255 : vector<8x16xf32>
    %cst_62 = arith.constant 1.000000e+00 : f32
    %257 = vector.broadcast %cst_62 : f32 to vector<8x16xf32>
    %258 = arith.addf %257, %256 : vector<8x16xf32>
    %259 = arith.divf %257, %258 : vector<8x16xf32>
    %260 = arith.mulf %251, %194 : vector<8x16xf32>
    %261 = arith.mulf %245, %253 : vector<8x16xf32>
    %262 = arith.addf %260, %261 : vector<8x16xf32>
    %263 = math.tanh %262 : vector<8x16xf32>
    %264 = arith.mulf %259, %263 : vector<8x16xf32>
    %265 = arith.select %229, %264, %193 : vector<8x16xi1>, vector<8x16xf32>
    %266 = arith.select %229, %262, %194 : vector<8x16xi1>, vector<8x16xf32>
    %cst_63 = arith.constant 0.000000e+00 : f32
    %267 = vector.broadcast %cst_63 : f32 to vector<8x16xf32>
    %268 = arith.select %229, %264, %267 : vector<8x16xi1>, vector<8x16xf32>
    %269 = vector.extract_strided_slice %239 {offsets = [0, 0], sizes = [8, 16], strides = [1, 1]} : vector<8x64xf32> to vector<8x16xf32>
    %270 = arith.negf %269 : vector<8x16xf32>
    %271 = math.exp %270 : vector<8x16xf32>
    %cst_64 = arith.constant 1.000000e+00 : f32
    %272 = vector.broadcast %cst_64 : f32 to vector<8x16xf32>
    %273 = arith.addf %272, %271 : vector<8x16xf32>
    %274 = arith.divf %272, %273 : vector<8x16xf32>
    %275 = vector.extract_strided_slice %239 {offsets = [0, 16], sizes = [8, 16], strides = [1, 1]} : vector<8x64xf32> to vector<8x16xf32>
    %276 = arith.negf %275 : vector<8x16xf32>
    %277 = math.exp %276 : vector<8x16xf32>
    %cst_65 = arith.constant 1.000000e+00 : f32
    %278 = vector.broadcast %cst_65 : f32 to vector<8x16xf32>
    %279 = arith.addf %278, %277 : vector<8x16xf32>
    %280 = arith.divf %278, %279 : vector<8x16xf32>
    %281 = vector.extract_strided_slice %239 {offsets = [0, 32], sizes = [8, 16], strides = [1, 1]} : vector<8x64xf32> to vector<8x16xf32>
    %282 = math.tanh %281 : vector<8x16xf32>
    %283 = vector.extract_strided_slice %239 {offsets = [0, 48], sizes = [8, 16], strides = [1, 1]} : vector<8x64xf32> to vector<8x16xf32>
    %284 = arith.negf %283 : vector<8x16xf32>
    %285 = math.exp %284 : vector<8x16xf32>
    %cst_66 = arith.constant 1.000000e+00 : f32
    %286 = vector.broadcast %cst_66 : f32 to vector<8x16xf32>
    %287 = arith.addf %286, %285 : vector<8x16xf32>
    %288 = arith.divf %286, %287 : vector<8x16xf32>
    %289 = arith.mulf %280, %223 : vector<8x16xf32>
    %290 = arith.mulf %274, %282 : vector<8x16xf32>
    %291 = arith.addf %289, %290 : vector<8x16xf32>
    %292 = math.tanh %291 : vector<8x16xf32>
    %293 = arith.mulf %288, %292 : vector<8x16xf32>
    %294 = arith.select %231, %293, %222 : vector<8x16xi1>, vector<8x16xf32>
    %295 = arith.select %231, %291, %223 : vector<8x16xi1>, vector<8x16xf32>
    %cst_67 = arith.constant 0.000000e+00 : f32
    %296 = vector.broadcast %cst_67 : f32 to vector<8x16xf32>
    %297 = arith.select %231, %293, %296 : vector<8x16xi1>, vector<8x16xf32>
    %c24_68 = arith.constant 24 : index
    %c0_69 = arith.constant 0 : index
    %298 = vector.load %arg11[%c24_68, %c0_69] : memref<64x32xf32, #tpu.memory_space<vmem>>, vector<8x16xf32>
    tpu.vector_store %arg11[%c24_68, %c0_69], %268 {strides = array<i32>} : memref<64x32xf32, #tpu.memory_space<vmem>>, vector<8x16xf32>,
    %c32_70 = arith.constant 32 : index
    %c16_71 = arith.constant 16 : index
    %299 = vector.load %arg11[%c32_70, %c16_71] : memref<64x32xf32, #tpu.memory_space<vmem>>, vector<8x16xf32>
    tpu.vector_store %arg11[%c32_70, %c16_71], %297 {strides = array<i32>} : memref<64x32xf32, #tpu.memory_space<vmem>>, vector<8x16xf32>,
    %c4_i32_72 = arith.constant 4 : i32
    %300 = vector.broadcast %c4_i32_72 : i32 to vector<8x16xi32>
    %301 = arith.cmpi sgt, %2, %300 : vector<8x16xi32>
    %c3_i32_73 = arith.constant 3 : i32
    %302 = vector.broadcast %c3_i32_73 : i32 to vector<8x16xi32>
    %303 = arith.cmpi sgt, %2, %302 : vector<8x16xi32>
    %304 = tpu.concatenate %265, %294 in 1 : vector<8x16xf32>, vector<8x16xf32> -> vector<8x32xf32>
    %cst_74 = arith.constant dense<0.000000e+00> : vector<8x128xf32>
    %305 = tpu.matmul %304, %5, %cst_74 {dimension_numbers = #tpu.dot_dimension_numbers<[1], [0], [0], [1], [0, 0, 1, 1], [], []>} : vector<8x32xf32>, vector<32x128xf32>, vector<8x128xf32> -> vector<8x128xf32>
    %c32_75 = arith.constant 32 : index
    %c0_76 = arith.constant 0 : index
    %306 = vector.load %arg12[%c32_75, %c0_76] : memref<64x128xf32, #tpu.memory_space<vmem>>, vector<8x64xf32>
    %307 = vector.extract_strided_slice %305 {offsets = [0, 0], sizes = [8, 64], strides = [1, 1]} : vector<8x128xf32> to vector<8x64xf32>
    %308 = arith.addf %306, %307 : vector<8x64xf32>
    %c24_77 = arith.constant 24 : index
    %c64_78 = arith.constant 64 : index
    %309 = vector.load %arg12[%c24_77, %c64_78] : memref<64x128xf32, #tpu.memory_space<vmem>>, vector<8x64xf32>
    %310 = vector.extract_strided_slice %305 {offsets = [0, 64], sizes = [8, 64], strides = [1, 1]} : vector<8x128xf32> to vector<8x64xf32>
    %311 = arith.addf %309, %310 : vector<8x64xf32>
    %312 = vector.extract_strided_slice %308 {offsets = [0, 0], sizes = [8, 16], strides = [1, 1]} : vector<8x64xf32> to vector<8x16xf32>
    %313 = arith.negf %312 : vector<8x16xf32>
    %314 = math.exp %313 : vector<8x16xf32>
    %cst_79 = arith.constant 1.000000e+00 : f32
    %315 = vector.broadcast %cst_79 : f32 to vector<8x16xf32>
    %316 = arith.addf %315, %314 : vector<8x16xf32>
    %317 = arith.divf %315, %316 : vector<8x16xf32>
    %318 = vector.extract_strided_slice %308 {offsets = [0, 16], sizes = [8, 16], strides = [1, 1]} : vector<8x64xf32> to vector<8x16xf32>
    %319 = arith.negf %318 : vector<8x16xf32>
    %320 = math.exp %319 : vector<8x16xf32>
    %cst_80 = arith.constant 1.000000e+00 : f32
    %321 = vector.broadcast %cst_80 : f32 to vector<8x16xf32>
    %322 = arith.addf %321, %320 : vector<8x16xf32>
    %323 = arith.divf %321, %322 : vector<8x16xf32>
    %324 = vector.extract_strided_slice %308 {offsets = [0, 32], sizes = [8, 16], strides = [1, 1]} : vector<8x64xf32> to vector<8x16xf32>
    %325 = math.tanh %324 : vector<8x16xf32>
    %326 = vector.extract_strided_slice %308 {offsets = [0, 48], sizes = [8, 16], strides = [1, 1]} : vector<8x64xf32> to vector<8x16xf32>
    %327 = arith.negf %326 : vector<8x16xf32>
    %328 = math.exp %327 : vector<8x16xf32>
    %cst_81 = arith.constant 1.000000e+00 : f32
    %329 = vector.broadcast %cst_81 : f32 to vector<8x16xf32>
    %330 = arith.addf %329, %328 : vector<8x16xf32>
    %331 = arith.divf %329, %330 : vector<8x16xf32>
    %332 = arith.mulf %323, %266 : vector<8x16xf32>
    %333 = arith.mulf %317, %325 : vector<8x16xf32>
    %334 = arith.addf %332, %333 : vector<8x16xf32>
    %335 = math.tanh %334 : vector<8x16xf32>
    %336 = arith.mulf %331, %335 : vector<8x16xf32>
    %337 = arith.select %301, %336, %265 : vector<8x16xi1>, vector<8x16xf32>
    %338 = arith.select %301, %334, %266 : vector<8x16xi1>, vector<8x16xf32>
    %cst_82 = arith.constant 0.000000e+00 : f32
    %339 = vector.broadcast %cst_82 : f32 to vector<8x16xf32>
    %340 = arith.select %301, %336, %339 : vector<8x16xi1>, vector<8x16xf32>
    %341 = vector.extract_strided_slice %311 {offsets = [0, 0], sizes = [8, 16], strides = [1, 1]} : vector<8x64xf32> to vector<8x16xf32>
    %342 = arith.negf %341 : vector<8x16xf32>
    %343 = math.exp %342 : vector<8x16xf32>
    %cst_83 = arith.constant 1.000000e+00 : f32
    %344 = vector.broadcast %cst_83 : f32 to vector<8x16xf32>
    %345 = arith.addf %344, %343 : vector<8x16xf32>
    %346 = arith.divf %344, %345 : vector<8x16xf32>
    %347 = vector.extract_strided_slice %311 {offsets = [0, 16], sizes = [8, 16], strides = [1, 1]} : vector<8x64xf32> to vector<8x16xf32>
    %348 = arith.negf %347 : vector<8x16xf32>
    %349 = math.exp %348 : vector<8x16xf32>
    %cst_84 = arith.constant 1.000000e+00 : f32
    %350 = vector.broadcast %cst_84 : f32 to vector<8x16xf32>
    %351 = arith.addf %350, %349 : vector<8x16xf32>
    %352 = arith.divf %350, %351 : vector<8x16xf32>
    %353 = vector.extract_strided_slice %311 {offsets = [0, 32], sizes = [8, 16], strides = [1, 1]} : vector<8x64xf32> to vector<8x16xf32>
    %354 = math.tanh %353 : vector<8x16xf32>
    %355 = vector.extract_strided_slice %311 {offsets = [0, 48], sizes = [8, 16], strides = [1, 1]} : vector<8x64xf32> to vector<8x16xf32>
    %356 = arith.negf %355 : vector<8x16xf32>
    %357 = math.exp %356 : vector<8x16xf32>
    %cst_85 = arith.constant 1.000000e+00 : f32
    %358 = vector.broadcast %cst_85 : f32 to vector<8x16xf32>
    %359 = arith.addf %358, %357 : vector<8x16xf32>
    %360 = arith.divf %358, %359 : vector<8x16xf32>
    %361 = arith.mulf %352, %295 : vector<8x16xf32>
    %362 = arith.mulf %346, %354 : vector<8x16xf32>
    %363 = arith.addf %361, %362 : vector<8x16xf32>
    %364 = math.tanh %363 : vector<8x16xf32>
    %365 = arith.mulf %360, %364 : vector<8x16xf32>
    %366 = arith.select %303, %365, %294 : vector<8x16xi1>, vector<8x16xf32>
    %367 = arith.select %303, %363, %295 : vector<8x16xi1>, vector<8x16xf32>
    %cst_86 = arith.constant 0.000000e+00 : f32
    %368 = vector.broadcast %cst_86 : f32 to vector<8x16xf32>
    %369 = arith.select %303, %365, %368 : vector<8x16xi1>, vector<8x16xf32>
    %c32_87 = arith.constant 32 : index
    %c0_88 = arith.constant 0 : index
    %370 = vector.load %arg11[%c32_87, %c0_88] : memref<64x32xf32, #tpu.memory_space<vmem>>, vector<8x16xf32>
    tpu.vector_store %arg11[%c32_87, %c0_88], %340 {strides = array<i32>} : memref<64x32xf32, #tpu.memory_space<vmem>>, vector<8x16xf32>,
    %c24_89 = arith.constant 24 : index
    %c16_90 = arith.constant 16 : index
    %371 = vector.load %arg11[%c24_89, %c16_90] : memref<64x32xf32, #tpu.memory_space<vmem>>, vector<8x16xf32>
    tpu.vector_store %arg11[%c24_89, %c16_90], %369 {strides = array<i32>} : memref<64x32xf32, #tpu.memory_space<vmem>>, vector<8x16xf32>,
    %c5_i32_91 = arith.constant 5 : i32
    %372 = vector.broadcast %c5_i32_91 : i32 to vector<8x16xi32>
    %373 = arith.cmpi sgt, %2, %372 : vector<8x16xi32>
    %c2_i32_92 = arith.constant 2 : i32
    %374 = vector.broadcast %c2_i32_92 : i32 to vector<8x16xi32>
    %375 = arith.cmpi sgt, %2, %374 : vector<8x16xi32>
    %376 = tpu.concatenate %337, %366 in 1 : vector<8x16xf32>, vector<8x16xf32> -> vector<8x32xf32>
    %cst_93 = arith.constant dense<0.000000e+00> : vector<8x128xf32>
    %377 = tpu.matmul %376, %5, %cst_93 {dimension_numbers = #tpu.dot_dimension_numbers<[1], [0], [0], [1], [0, 0, 1, 1], [], []>} : vector<8x32xf32>, vector<32x128xf32>, vector<8x128xf32> -> vector<8x128xf32>
    %c40_94 = arith.constant 40 : index
    %c0_95 = arith.constant 0 : index
    %378 = vector.load %arg12[%c40_94, %c0_95] : memref<64x128xf32, #tpu.memory_space<vmem>>, vector<8x64xf32>
    %379 = vector.extract_strided_slice %377 {offsets = [0, 0], sizes = [8, 64], strides = [1, 1]} : vector<8x128xf32> to vector<8x64xf32>
    %380 = arith.addf %378, %379 : vector<8x64xf32>
    %c16_96 = arith.constant 16 : index
    %c64_97 = arith.constant 64 : index
    %381 = vector.load %arg12[%c16_96, %c64_97] : memref<64x128xf32, #tpu.memory_space<vmem>>, vector<8x64xf32>
    %382 = vector.extract_strided_slice %377 {offsets = [0, 64], sizes = [8, 64], strides = [1, 1]} : vector<8x128xf32> to vector<8x64xf32>
    %383 = arith.addf %381, %382 : vector<8x64xf32>
    %384 = vector.extract_strided_slice %380 {offsets = [0, 0], sizes = [8, 16], strides = [1, 1]} : vector<8x64xf32> to vector<8x16xf32>
    %385 = arith.negf %384 : vector<8x16xf32>
    %386 = math.exp %385 : vector<8x16xf32>
    %cst_98 = arith.constant 1.000000e+00 : f32
    %387 = vector.broadcast %cst_98 : f32 to vector<8x16xf32>
    %388 = arith.addf %387, %386 : vector<8x16xf32>
    %389 = arith.divf %387, %388 : vector<8x16xf32>
    %390 = vector.extract_strided_slice %380 {offsets = [0, 16], sizes = [8, 16], strides = [1, 1]} : vector<8x64xf32> to vector<8x16xf32>
    %391 = arith.negf %390 : vector<8x16xf32>
    %392 = math.exp %391 : vector<8x16xf32>
    %cst_99 = arith.constant 1.000000e+00 : f32
    %393 = vector.broadcast %cst_99 : f32 to vector<8x16xf32>
    %394 = arith.addf %393, %392 : vector<8x16xf32>
    %395 = arith.divf %393, %394 : vector<8x16xf32>
    %396 = vector.extract_strided_slice %380 {offsets = [0, 32], sizes = [8, 16], strides = [1, 1]} : vector<8x64xf32> to vector<8x16xf32>
    %397 = math.tanh %396 : vector<8x16xf32>
    %398 = vector.extract_strided_slice %380 {offsets = [0, 48], sizes = [8, 16], strides = [1, 1]} : vector<8x64xf32> to vector<8x16xf32>
    %399 = arith.negf %398 : vector<8x16xf32>
    %400 = math.exp %399 : vector<8x16xf32>
    %cst_100 = arith.constant 1.000000e+00 : f32
    %401 = vector.broadcast %cst_100 : f32 to vector<8x16xf32>
    %402 = arith.addf %401, %400 : vector<8x16xf32>
    %403 = arith.divf %401, %402 : vector<8x16xf32>
    %404 = arith.mulf %395, %338 : vector<8x16xf32>
    %405 = arith.mulf %389, %397 : vector<8x16xf32>
    %406 = arith.addf %404, %405 : vector<8x16xf32>
    %407 = math.tanh %406 : vector<8x16xf32>
    %408 = arith.mulf %403, %407 : vector<8x16xf32>
    %409 = arith.select %373, %408, %337 : vector<8x16xi1>, vector<8x16xf32>
    %410 = arith.select %373, %406, %338 : vector<8x16xi1>, vector<8x16xf32>
    %cst_101 = arith.constant 0.000000e+00 : f32
    %411 = vector.broadcast %cst_101 : f32 to vector<8x16xf32>
    %412 = arith.select %373, %408, %411 : vector<8x16xi1>, vector<8x16xf32>
    %413 = vector.extract_strided_slice %383 {offsets = [0, 0], sizes = [8, 16], strides = [1, 1]} : vector<8x64xf32> to vector<8x16xf32>
    %414 = arith.negf %413 : vector<8x16xf32>
    %415 = math.exp %414 : vector<8x16xf32>
    %cst_102 = arith.constant 1.000000e+00 : f32
    %416 = vector.broadcast %cst_102 : f32 to vector<8x16xf32>
    %417 = arith.addf %416, %415 : vector<8x16xf32>
    %418 = arith.divf %416, %417 : vector<8x16xf32>
    %419 = vector.extract_strided_slice %383 {offsets = [0, 16], sizes = [8, 16], strides = [1, 1]} : vector<8x64xf32> to vector<8x16xf32>
    %420 = arith.negf %419 : vector<8x16xf32>
    %421 = math.exp %420 : vector<8x16xf32>
    %cst_103 = arith.constant 1.000000e+00 : f32
    %422 = vector.broadcast %cst_103 : f32 to vector<8x16xf32>
    %423 = arith.addf %422, %421 : vector<8x16xf32>
    %424 = arith.divf %422, %423 : vector<8x16xf32>
    %425 = vector.extract_strided_slice %383 {offsets = [0, 32], sizes = [8, 16], strides = [1, 1]} : vector<8x64xf32> to vector<8x16xf32>
    %426 = math.tanh %425 : vector<8x16xf32>
    %427 = vector.extract_strided_slice %383 {offsets = [0, 48], sizes = [8, 16], strides = [1, 1]} : vector<8x64xf32> to vector<8x16xf32>
    %428 = arith.negf %427 : vector<8x16xf32>
    %429 = math.exp %428 : vector<8x16xf32>
    %cst_104 = arith.constant 1.000000e+00 : f32
    %430 = vector.broadcast %cst_104 : f32 to vector<8x16xf32>
    %431 = arith.addf %430, %429 : vector<8x16xf32>
    %432 = arith.divf %430, %431 : vector<8x16xf32>
    %433 = arith.mulf %424, %367 : vector<8x16xf32>
    %434 = arith.mulf %418, %426 : vector<8x16xf32>
    %435 = arith.addf %433, %434 : vector<8x16xf32>
    %436 = math.tanh %435 : vector<8x16xf32>
    %437 = arith.mulf %432, %436 : vector<8x16xf32>
    %438 = arith.select %375, %437, %366 : vector<8x16xi1>, vector<8x16xf32>
    %439 = arith.select %375, %435, %367 : vector<8x16xi1>, vector<8x16xf32>
    %cst_105 = arith.constant 0.000000e+00 : f32
    %440 = vector.broadcast %cst_105 : f32 to vector<8x16xf32>
    %441 = arith.select %375, %437, %440 : vector<8x16xi1>, vector<8x16xf32>
    %c40_106 = arith.constant 40 : index
    %c0_107 = arith.constant 0 : index
    %442 = vector.load %arg11[%c40_106, %c0_107] : memref<64x32xf32, #tpu.memory_space<vmem>>, vector<8x16xf32>
    tpu.vector_store %arg11[%c40_106, %c0_107], %412 {strides = array<i32>} : memref<64x32xf32, #tpu.memory_space<vmem>>, vector<8x16xf32>,
    %c16_108 = arith.constant 16 : index
    %c16_109 = arith.constant 16 : index
    %443 = vector.load %arg11[%c16_108, %c16_109] : memref<64x32xf32, #tpu.memory_space<vmem>>, vector<8x16xf32>
    tpu.vector_store %arg11[%c16_108, %c16_109], %441 {strides = array<i32>} : memref<64x32xf32, #tpu.memory_space<vmem>>, vector<8x16xf32>,
    %c6_i32_110 = arith.constant 6 : i32
    %444 = vector.broadcast %c6_i32_110 : i32 to vector<8x16xi32>
    %445 = arith.cmpi sgt, %2, %444 : vector<8x16xi32>
    %c1_i32_111 = arith.constant 1 : i32
    %446 = vector.broadcast %c1_i32_111 : i32 to vector<8x16xi32>
    %447 = arith.cmpi sgt, %2, %446 : vector<8x16xi32>
    %448 = tpu.concatenate %409, %438 in 1 : vector<8x16xf32>, vector<8x16xf32> -> vector<8x32xf32>
    %cst_112 = arith.constant dense<0.000000e+00> : vector<8x128xf32>
    %449 = tpu.matmul %448, %5, %cst_112 {dimension_numbers = #tpu.dot_dimension_numbers<[1], [0], [0], [1], [0, 0, 1, 1], [], []>} : vector<8x32xf32>, vector<32x128xf32>, vector<8x128xf32> -> vector<8x128xf32>
    %c48_113 = arith.constant 48 : index
    %c0_114 = arith.constant 0 : index
    %450 = vector.load %arg12[%c48_113, %c0_114] : memref<64x128xf32, #tpu.memory_space<vmem>>, vector<8x64xf32>
    %451 = vector.extract_strided_slice %449 {offsets = [0, 0], sizes = [8, 64], strides = [1, 1]} : vector<8x128xf32> to vector<8x64xf32>
    %452 = arith.addf %450, %451 : vector<8x64xf32>
    %c8_115 = arith.constant 8 : index
    %c64_116 = arith.constant 64 : index
    %453 = vector.load %arg12[%c8_115, %c64_116] : memref<64x128xf32, #tpu.memory_space<vmem>>, vector<8x64xf32>
    %454 = vector.extract_strided_slice %449 {offsets = [0, 64], sizes = [8, 64], strides = [1, 1]} : vector<8x128xf32> to vector<8x64xf32>
    %455 = arith.addf %453, %454 : vector<8x64xf32>
    %456 = vector.extract_strided_slice %452 {offsets = [0, 0], sizes = [8, 16], strides = [1, 1]} : vector<8x64xf32> to vector<8x16xf32>
    %457 = arith.negf %456 : vector<8x16xf32>
    %458 = math.exp %457 : vector<8x16xf32>
    %cst_117 = arith.constant 1.000000e+00 : f32
    %459 = vector.broadcast %cst_117 : f32 to vector<8x16xf32>
    %460 = arith.addf %459, %458 : vector<8x16xf32>
    %461 = arith.divf %459, %460 : vector<8x16xf32>
    %462 = vector.extract_strided_slice %452 {offsets = [0, 16], sizes = [8, 16], strides = [1, 1]} : vector<8x64xf32> to vector<8x16xf32>
    %463 = arith.negf %462 : vector<8x16xf32>
    %464 = math.exp %463 : vector<8x16xf32>
    %cst_118 = arith.constant 1.000000e+00 : f32
    %465 = vector.broadcast %cst_118 : f32 to vector<8x16xf32>
    %466 = arith.addf %465, %464 : vector<8x16xf32>
    %467 = arith.divf %465, %466 : vector<8x16xf32>
    %468 = vector.extract_strided_slice %452 {offsets = [0, 32], sizes = [8, 16], strides = [1, 1]} : vector<8x64xf32> to vector<8x16xf32>
    %469 = math.tanh %468 : vector<8x16xf32>
    %470 = vector.extract_strided_slice %452 {offsets = [0, 48], sizes = [8, 16], strides = [1, 1]} : vector<8x64xf32> to vector<8x16xf32>
    %471 = arith.negf %470 : vector<8x16xf32>
    %472 = math.exp %471 : vector<8x16xf32>
    %cst_119 = arith.constant 1.000000e+00 : f32
    %473 = vector.broadcast %cst_119 : f32 to vector<8x16xf32>
    %474 = arith.addf %473, %472 : vector<8x16xf32>
    %475 = arith.divf %473, %474 : vector<8x16xf32>
    %476 = arith.mulf %467, %410 : vector<8x16xf32>
    %477 = arith.mulf %461, %469 : vector<8x16xf32>
    %478 = arith.addf %476, %477 : vector<8x16xf32>
    %479 = math.tanh %478 : vector<8x16xf32>
    %480 = arith.mulf %475, %479 : vector<8x16xf32>
    %481 = arith.select %445, %480, %409 : vector<8x16xi1>, vector<8x16xf32>
    %482 = arith.select %445, %478, %410 : vector<8x16xi1>, vector<8x16xf32>
    %cst_120 = arith.constant 0.000000e+00 : f32
    %483 = vector.broadcast %cst_120 : f32 to vector<8x16xf32>
    %484 = arith.select %445, %480, %483 : vector<8x16xi1>, vector<8x16xf32>
    %485 = vector.extract_strided_slice %455 {offsets = [0, 0], sizes = [8, 16], strides = [1, 1]} : vector<8x64xf32> to vector<8x16xf32>
    %486 = arith.negf %485 : vector<8x16xf32>
    %487 = math.exp %486 : vector<8x16xf32>
    %cst_121 = arith.constant 1.000000e+00 : f32
    %488 = vector.broadcast %cst_121 : f32 to vector<8x16xf32>
    %489 = arith.addf %488, %487 : vector<8x16xf32>
    %490 = arith.divf %488, %489 : vector<8x16xf32>
    %491 = vector.extract_strided_slice %455 {offsets = [0, 16], sizes = [8, 16], strides = [1, 1]} : vector<8x64xf32> to vector<8x16xf32>
    %492 = arith.negf %491 : vector<8x16xf32>
    %493 = math.exp %492 : vector<8x16xf32>
    %cst_122 = arith.constant 1.000000e+00 : f32
    %494 = vector.broadcast %cst_122 : f32 to vector<8x16xf32>
    %495 = arith.addf %494, %493 : vector<8x16xf32>
    %496 = arith.divf %494, %495 : vector<8x16xf32>
    %497 = vector.extract_strided_slice %455 {offsets = [0, 32], sizes = [8, 16], strides = [1, 1]} : vector<8x64xf32> to vector<8x16xf32>
    %498 = math.tanh %497 : vector<8x16xf32>
    %499 = vector.extract_strided_slice %455 {offsets = [0, 48], sizes = [8, 16], strides = [1, 1]} : vector<8x64xf32> to vector<8x16xf32>
    %500 = arith.negf %499 : vector<8x16xf32>
    %501 = math.exp %500 : vector<8x16xf32>
    %cst_123 = arith.constant 1.000000e+00 : f32
    %502 = vector.broadcast %cst_123 : f32 to vector<8x16xf32>
    %503 = arith.addf %502, %501 : vector<8x16xf32>
    %504 = arith.divf %502, %503 : vector<8x16xf32>
    %505 = arith.mulf %496, %439 : vector<8x16xf32>
    %506 = arith.mulf %490, %498 : vector<8x16xf32>
    %507 = arith.addf %505, %506 : vector<8x16xf32>
    %508 = math.tanh %507 : vector<8x16xf32>
    %509 = arith.mulf %504, %508 : vector<8x16xf32>
    %510 = arith.select %447, %509, %438 : vector<8x16xi1>, vector<8x16xf32>
    %511 = arith.select %447, %507, %439 : vector<8x16xi1>, vector<8x16xf32>
    %cst_124 = arith.constant 0.000000e+00 : f32
    %512 = vector.broadcast %cst_124 : f32 to vector<8x16xf32>
    %513 = arith.select %447, %509, %512 : vector<8x16xi1>, vector<8x16xf32>
    %c48_125 = arith.constant 48 : index
    %c0_126 = arith.constant 0 : index
    %514 = vector.load %arg11[%c48_125, %c0_126] : memref<64x32xf32, #tpu.memory_space<vmem>>, vector<8x16xf32>
    tpu.vector_store %arg11[%c48_125, %c0_126], %484 {strides = array<i32>} : memref<64x32xf32, #tpu.memory_space<vmem>>, vector<8x16xf32>,
    %c8_127 = arith.constant 8 : index
    %c16_128 = arith.constant 16 : index
    %515 = vector.load %arg11[%c8_127, %c16_128] : memref<64x32xf32, #tpu.memory_space<vmem>>, vector<8x16xf32>
    tpu.vector_store %arg11[%c8_127, %c16_128], %513 {strides = array<i32>} : memref<64x32xf32, #tpu.memory_space<vmem>>, vector<8x16xf32>,
    %c7_i32_129 = arith.constant 7 : i32
    %516 = vector.broadcast %c7_i32_129 : i32 to vector<8x16xi32>
    %517 = arith.cmpi sgt, %2, %516 : vector<8x16xi32>
    %c0_i32_130 = arith.constant 0 : i32
    %518 = vector.broadcast %c0_i32_130 : i32 to vector<8x16xi32>
    %519 = arith.cmpi sgt, %2, %518 : vector<8x16xi32>
    %520 = tpu.concatenate %481, %510 in 1 : vector<8x16xf32>, vector<8x16xf32> -> vector<8x32xf32>
    %cst_131 = arith.constant dense<0.000000e+00> : vector<8x128xf32>
    %521 = tpu.matmul %520, %5, %cst_131 {dimension_numbers = #tpu.dot_dimension_numbers<[1], [0], [0], [1], [0, 0, 1, 1], [], []>} : vector<8x32xf32>, vector<32x128xf32>, vector<8x128xf32> -> vector<8x128xf32>
    %c56_132 = arith.constant 56 : index
    %c0_133 = arith.constant 0 : index
    %522 = vector.load %arg12[%c56_132, %c0_133] : memref<64x128xf32, #tpu.memory_space<vmem>>, vector<8x64xf32>
    %523 = vector.extract_strided_slice %521 {offsets = [0, 0], sizes = [8, 64], strides = [1, 1]} : vector<8x128xf32> to vector<8x64xf32>
    %524 = arith.addf %522, %523 : vector<8x64xf32>
    %c0_134 = arith.constant 0 : index
    %c64_135 = arith.constant 64 : index
    %525 = vector.load %arg12[%c0_134, %c64_135] : memref<64x128xf32, #tpu.memory_space<vmem>>, vector<8x64xf32>
    %526 = vector.extract_strided_slice %521 {offsets = [0, 64], sizes = [8, 64], strides = [1, 1]} : vector<8x128xf32> to vector<8x64xf32>
    %527 = arith.addf %525, %526 : vector<8x64xf32>
    %528 = vector.extract_strided_slice %524 {offsets = [0, 0], sizes = [8, 16], strides = [1, 1]} : vector<8x64xf32> to vector<8x16xf32>
    %529 = arith.negf %528 : vector<8x16xf32>
    %530 = math.exp %529 : vector<8x16xf32>
    %cst_136 = arith.constant 1.000000e+00 : f32
    %531 = vector.broadcast %cst_136 : f32 to vector<8x16xf32>
    %532 = arith.addf %531, %530 : vector<8x16xf32>
    %533 = arith.divf %531, %532 : vector<8x16xf32>
    %534 = vector.extract_strided_slice %524 {offsets = [0, 16], sizes = [8, 16], strides = [1, 1]} : vector<8x64xf32> to vector<8x16xf32>
    %535 = arith.negf %534 : vector<8x16xf32>
    %536 = math.exp %535 : vector<8x16xf32>
    %cst_137 = arith.constant 1.000000e+00 : f32
    %537 = vector.broadcast %cst_137 : f32 to vector<8x16xf32>
    %538 = arith.addf %537, %536 : vector<8x16xf32>
    %539 = arith.divf %537, %538 : vector<8x16xf32>
    %540 = vector.extract_strided_slice %524 {offsets = [0, 32], sizes = [8, 16], strides = [1, 1]} : vector<8x64xf32> to vector<8x16xf32>
    %541 = math.tanh %540 : vector<8x16xf32>
    %542 = vector.extract_strided_slice %524 {offsets = [0, 48], sizes = [8, 16], strides = [1, 1]} : vector<8x64xf32> to vector<8x16xf32>
    %543 = arith.negf %542 : vector<8x16xf32>
    %544 = math.exp %543 : vector<8x16xf32>
    %cst_138 = arith.constant 1.000000e+00 : f32
    %545 = vector.broadcast %cst_138 : f32 to vector<8x16xf32>
    %546 = arith.addf %545, %544 : vector<8x16xf32>
    %547 = arith.divf %545, %546 : vector<8x16xf32>
    %548 = arith.mulf %539, %482 : vector<8x16xf32>
    %549 = arith.mulf %533, %541 : vector<8x16xf32>
    %550 = arith.addf %548, %549 : vector<8x16xf32>
    %551 = math.tanh %550 : vector<8x16xf32>
    %552 = arith.mulf %547, %551 : vector<8x16xf32>
    %cst_139 = arith.constant 0.000000e+00 : f32
    %553 = vector.broadcast %cst_139 : f32 to vector<8x16xf32>
    %554 = arith.select %517, %552, %553 : vector<8x16xi1>, vector<8x16xf32>
    %555 = vector.extract_strided_slice %527 {offsets = [0, 0], sizes = [8, 16], strides = [1, 1]} : vector<8x64xf32> to vector<8x16xf32>
    %556 = arith.negf %555 : vector<8x16xf32>
    %557 = math.exp %556 : vector<8x16xf32>
    %cst_140 = arith.constant 1.000000e+00 : f32
    %558 = vector.broadcast %cst_140 : f32 to vector<8x16xf32>
    %559 = arith.addf %558, %557 : vector<8x16xf32>
    %560 = arith.divf %558, %559 : vector<8x16xf32>
    %561 = vector.extract_strided_slice %527 {offsets = [0, 16], sizes = [8, 16], strides = [1, 1]} : vector<8x64xf32> to vector<8x16xf32>
    %562 = arith.negf %561 : vector<8x16xf32>
    %563 = math.exp %562 : vector<8x16xf32>
    %cst_141 = arith.constant 1.000000e+00 : f32
    %564 = vector.broadcast %cst_141 : f32 to vector<8x16xf32>
    %565 = arith.addf %564, %563 : vector<8x16xf32>
    %566 = arith.divf %564, %565 : vector<8x16xf32>
    %567 = vector.extract_strided_slice %527 {offsets = [0, 32], sizes = [8, 16], strides = [1, 1]} : vector<8x64xf32> to vector<8x16xf32>
    %568 = math.tanh %567 : vector<8x16xf32>
    %569 = vector.extract_strided_slice %527 {offsets = [0, 48], sizes = [8, 16], strides = [1, 1]} : vector<8x64xf32> to vector<8x16xf32>
    %570 = arith.negf %569 : vector<8x16xf32>
    %571 = math.exp %570 : vector<8x16xf32>
    %cst_142 = arith.constant 1.000000e+00 : f32
    %572 = vector.broadcast %cst_142 : f32 to vector<8x16xf32>
    %573 = arith.addf %572, %571 : vector<8x16xf32>
    %574 = arith.divf %572, %573 : vector<8x16xf32>
    %575 = arith.mulf %566, %511 : vector<8x16xf32>
    %576 = arith.mulf %560, %568 : vector<8x16xf32>
    %577 = arith.addf %575, %576 : vector<8x16xf32>
    %578 = math.tanh %577 : vector<8x16xf32>
    %579 = arith.mulf %574, %578 : vector<8x16xf32>
    %cst_143 = arith.constant 0.000000e+00 : f32
    %580 = vector.broadcast %cst_143 : f32 to vector<8x16xf32>
    %581 = arith.select %519, %579, %580 : vector<8x16xi1>, vector<8x16xf32>
    %c56_144 = arith.constant 56 : index
    %c0_145 = arith.constant 0 : index
    %582 = vector.load %arg11[%c56_144, %c0_145] : memref<64x32xf32, #tpu.memory_space<vmem>>, vector<8x16xf32>
    tpu.vector_store %arg11[%c56_144, %c0_145], %554 {strides = array<i32>} : memref<64x32xf32, #tpu.memory_space<vmem>>, vector<8x16xf32>,
    %c0_146 = arith.constant 0 : index
    %c16_147 = arith.constant 16 : index
    %583 = vector.load %arg11[%c0_146, %c16_147] : memref<64x32xf32, #tpu.memory_space<vmem>>, vector<8x16xf32>
    tpu.vector_store %arg11[%c0_146, %c16_147], %581 {strides = array<i32>} : memref<64x32xf32, #tpu.memory_space<vmem>>, vector<8x16xf32>,
    %c0_148 = arith.constant 0 : index
    %c0_149 = arith.constant 0 : index
    %584 = vector.load %arg5[%c0_148, %c0_149] : memref<32x128xf32, #tpu.memory_space<vmem>>, vector<32x128xf32>
    %c0_150 = arith.constant 0 : index
    %c0_151 = arith.constant 0 : index
    %585 = vector.load %arg6[%c0_150, %c0_151] : memref<32x128xf32, #tpu.memory_space<vmem>>, vector<32x128xf32>
    %c0_152 = arith.constant 0 : index
    %c0_153 = arith.constant 0 : index
    %586 = vector.load %arg7[%c0_152, %c0_153] : memref<1x128xf32, #tpu.memory_space<vmem>>, vector<1x128xf32>
    %c0_154 = arith.constant 0 : index
    %c0_155 = arith.constant 0 : index
    %587 = vector.load %arg11[%c0_154, %c0_155] : memref<64x32xf32, #tpu.memory_space<vmem>>, vector<64x32xf32>
    %cst_156 = arith.constant dense<0.000000e+00> : vector<64x128xf32>
    %588 = tpu.matmul %587, %584, %cst_156 {dimension_numbers = #tpu.dot_dimension_numbers<[1], [0], [0], [1], [0, 0, 1, 1], [], []>} : vector<64x32xf32>, vector<32x128xf32>, vector<64x128xf32> -> vector<64x128xf32>
    %589 = vector.broadcast %586 : vector<1x128xf32> to vector<64x128xf32>
    %590 = arith.addf %588, %589 : vector<64x128xf32>
    %c0_157 = arith.constant 0 : index
    %c0_158 = arith.constant 0 : index
    %591 = vector.load %arg12[%c0_157, %c0_158] : memref<64x128xf32, #tpu.memory_space<vmem>>, vector<64x128xf32>
    tpu.vector_store %arg12[%c0_157, %c0_158], %590 {strides = array<i32>} : memref<64x128xf32, #tpu.memory_space<vmem>>, vector<64x128xf32>,
    %c0_i32_159 = arith.constant 0 : i32
    %592 = vector.broadcast %c0_i32_159 : i32 to vector<8x16xi32>
    %593 = arith.cmpi sgt, %2, %592 : vector<8x16xi32>
    %c7_i32_160 = arith.constant 7 : i32
    %594 = vector.broadcast %c7_i32_160 : i32 to vector<8x16xi32>
    %595 = arith.cmpi sgt, %2, %594 : vector<8x16xi32>
    %596 = tpu.concatenate %3, %3 in 1 : vector<8x16xf32>, vector<8x16xf32> -> vector<8x32xf32>
    %cst_161 = arith.constant dense<0.000000e+00> : vector<8x128xf32>
    %597 = tpu.matmul %596, %585, %cst_161 {dimension_numbers = #tpu.dot_dimension_numbers<[1], [0], [0], [1], [0, 0, 1, 1], [], []>} : vector<8x32xf32>, vector<32x128xf32>, vector<8x128xf32> -> vector<8x128xf32>
    %c0_162 = arith.constant 0 : index
    %c0_163 = arith.constant 0 : index
    %598 = vector.load %arg12[%c0_162, %c0_163] : memref<64x128xf32, #tpu.memory_space<vmem>>, vector<8x64xf32>
    %599 = vector.extract_strided_slice %597 {offsets = [0, 0], sizes = [8, 64], strides = [1, 1]} : vector<8x128xf32> to vector<8x64xf32>
    %600 = arith.addf %598, %599 : vector<8x64xf32>
    %c56_164 = arith.constant 56 : index
    %c64_165 = arith.constant 64 : index
    %601 = vector.load %arg12[%c56_164, %c64_165] : memref<64x128xf32, #tpu.memory_space<vmem>>, vector<8x64xf32>
    %602 = vector.extract_strided_slice %597 {offsets = [0, 64], sizes = [8, 64], strides = [1, 1]} : vector<8x128xf32> to vector<8x64xf32>
    %603 = arith.addf %601, %602 : vector<8x64xf32>
    %604 = vector.extract_strided_slice %600 {offsets = [0, 0], sizes = [8, 16], strides = [1, 1]} : vector<8x64xf32> to vector<8x16xf32>
    %605 = arith.negf %604 : vector<8x16xf32>
    %606 = math.exp %605 : vector<8x16xf32>
    %cst_166 = arith.constant 1.000000e+00 : f32
    %607 = vector.broadcast %cst_166 : f32 to vector<8x16xf32>
    %608 = arith.addf %607, %606 : vector<8x16xf32>
    %609 = arith.divf %607, %608 : vector<8x16xf32>
    %610 = vector.extract_strided_slice %600 {offsets = [0, 16], sizes = [8, 16], strides = [1, 1]} : vector<8x64xf32> to vector<8x16xf32>
    %611 = arith.negf %610 : vector<8x16xf32>
    %612 = math.exp %611 : vector<8x16xf32>
    %cst_167 = arith.constant 1.000000e+00 : f32
    %613 = vector.broadcast %cst_167 : f32 to vector<8x16xf32>
    %614 = arith.addf %613, %612 : vector<8x16xf32>
    %615 = arith.divf %613, %614 : vector<8x16xf32>
    %616 = vector.extract_strided_slice %600 {offsets = [0, 32], sizes = [8, 16], strides = [1, 1]} : vector<8x64xf32> to vector<8x16xf32>
    %617 = math.tanh %616 : vector<8x16xf32>
    %618 = vector.extract_strided_slice %600 {offsets = [0, 48], sizes = [8, 16], strides = [1, 1]} : vector<8x64xf32> to vector<8x16xf32>
    %619 = arith.negf %618 : vector<8x16xf32>
    %620 = math.exp %619 : vector<8x16xf32>
    %cst_168 = arith.constant 1.000000e+00 : f32
    %621 = vector.broadcast %cst_168 : f32 to vector<8x16xf32>
    %622 = arith.addf %621, %620 : vector<8x16xf32>
    %623 = arith.divf %621, %622 : vector<8x16xf32>
    %624 = arith.mulf %615, %3 : vector<8x16xf32>
    %625 = arith.mulf %609, %617 : vector<8x16xf32>
    %626 = arith.addf %624, %625 : vector<8x16xf32>
    %627 = math.tanh %626 : vector<8x16xf32>
    %628 = arith.mulf %623, %627 : vector<8x16xf32>
    %629 = arith.select %593, %628, %3 : vector<8x16xi1>, vector<8x16xf32>
    %630 = arith.select %593, %626, %3 : vector<8x16xi1>, vector<8x16xf32>
    %cst_169 = arith.constant 0.000000e+00 : f32
    %631 = vector.broadcast %cst_169 : f32 to vector<8x16xf32>
    %632 = arith.select %593, %628, %631 : vector<8x16xi1>, vector<8x16xf32>
    %633 = vector.extract_strided_slice %603 {offsets = [0, 0], sizes = [8, 16], strides = [1, 1]} : vector<8x64xf32> to vector<8x16xf32>
    %634 = arith.negf %633 : vector<8x16xf32>
    %635 = math.exp %634 : vector<8x16xf32>
    %cst_170 = arith.constant 1.000000e+00 : f32
    %636 = vector.broadcast %cst_170 : f32 to vector<8x16xf32>
    %637 = arith.addf %636, %635 : vector<8x16xf32>
    %638 = arith.divf %636, %637 : vector<8x16xf32>
    %639 = vector.extract_strided_slice %603 {offsets = [0, 16], sizes = [8, 16], strides = [1, 1]} : vector<8x64xf32> to vector<8x16xf32>
    %640 = arith.negf %639 : vector<8x16xf32>
    %641 = math.exp %640 : vector<8x16xf32>
    %cst_171 = arith.constant 1.000000e+00 : f32
    %642 = vector.broadcast %cst_171 : f32 to vector<8x16xf32>
    %643 = arith.addf %642, %641 : vector<8x16xf32>
    %644 = arith.divf %642, %643 : vector<8x16xf32>
    %645 = vector.extract_strided_slice %603 {offsets = [0, 32], sizes = [8, 16], strides = [1, 1]} : vector<8x64xf32> to vector<8x16xf32>
    %646 = math.tanh %645 : vector<8x16xf32>
    %647 = vector.extract_strided_slice %603 {offsets = [0, 48], sizes = [8, 16], strides = [1, 1]} : vector<8x64xf32> to vector<8x16xf32>
    %648 = arith.negf %647 : vector<8x16xf32>
    %649 = math.exp %648 : vector<8x16xf32>
    %cst_172 = arith.constant 1.000000e+00 : f32
    %650 = vector.broadcast %cst_172 : f32 to vector<8x16xf32>
    %651 = arith.addf %650, %649 : vector<8x16xf32>
    %652 = arith.divf %650, %651 : vector<8x16xf32>
    %653 = arith.mulf %644, %3 : vector<8x16xf32>
    %654 = arith.mulf %638, %646 : vector<8x16xf32>
    %655 = arith.addf %653, %654 : vector<8x16xf32>
    %656 = math.tanh %655 : vector<8x16xf32>
    %657 = arith.mulf %652, %656 : vector<8x16xf32>
    %658 = arith.select %595, %657, %3 : vector<8x16xi1>, vector<8x16xf32>
    %659 = arith.select %595, %655, %3 : vector<8x16xi1>, vector<8x16xf32>
    %cst_173 = arith.constant 0.000000e+00 : f32
    %660 = vector.broadcast %cst_173 : f32 to vector<8x16xf32>
    %661 = arith.select %595, %657, %660 : vector<8x16xi1>, vector<8x16xf32>
    %c0_174 = arith.constant 0 : index
    %c0_175 = arith.constant 0 : index
    %662 = vector.load %arg11[%c0_174, %c0_175] : memref<64x32xf32, #tpu.memory_space<vmem>>, vector<8x16xf32>
    tpu.vector_store %arg11[%c0_174, %c0_175], %632 {strides = array<i32>} : memref<64x32xf32, #tpu.memory_space<vmem>>, vector<8x16xf32>,
    %c56_176 = arith.constant 56 : index
    %c16_177 = arith.constant 16 : index
    %663 = vector.load %arg11[%c56_176, %c16_177] : memref<64x32xf32, #tpu.memory_space<vmem>>, vector<8x16xf32>
    tpu.vector_store %arg11[%c56_176, %c16_177], %661 {strides = array<i32>} : memref<64x32xf32, #tpu.memory_space<vmem>>, vector<8x16xf32>,
    %c1_i32_178 = arith.constant 1 : i32
    %664 = vector.broadcast %c1_i32_178 : i32 to vector<8x16xi32>
    %665 = arith.cmpi sgt, %2, %664 : vector<8x16xi32>
    %c6_i32_179 = arith.constant 6 : i32
    %666 = vector.broadcast %c6_i32_179 : i32 to vector<8x16xi32>
    %667 = arith.cmpi sgt, %2, %666 : vector<8x16xi32>
    %668 = tpu.concatenate %629, %658 in 1 : vector<8x16xf32>, vector<8x16xf32> -> vector<8x32xf32>
    %cst_180 = arith.constant dense<0.000000e+00> : vector<8x128xf32>
    %669 = tpu.matmul %668, %585, %cst_180 {dimension_numbers = #tpu.dot_dimension_numbers<[1], [0], [0], [1], [0, 0, 1, 1], [], []>} : vector<8x32xf32>, vector<32x128xf32>, vector<8x128xf32> -> vector<8x128xf32>
    %c8_181 = arith.constant 8 : index
    %c0_182 = arith.constant 0 : index
    %670 = vector.load %arg12[%c8_181, %c0_182] : memref<64x128xf32, #tpu.memory_space<vmem>>, vector<8x64xf32>
    %671 = vector.extract_strided_slice %669 {offsets = [0, 0], sizes = [8, 64], strides = [1, 1]} : vector<8x128xf32> to vector<8x64xf32>
    %672 = arith.addf %670, %671 : vector<8x64xf32>
    %c48_183 = arith.constant 48 : index
    %c64_184 = arith.constant 64 : index
    %673 = vector.load %arg12[%c48_183, %c64_184] : memref<64x128xf32, #tpu.memory_space<vmem>>, vector<8x64xf32>
    %674 = vector.extract_strided_slice %669 {offsets = [0, 64], sizes = [8, 64], strides = [1, 1]} : vector<8x128xf32> to vector<8x64xf32>
    %675 = arith.addf %673, %674 : vector<8x64xf32>
    %676 = vector.extract_strided_slice %672 {offsets = [0, 0], sizes = [8, 16], strides = [1, 1]} : vector<8x64xf32> to vector<8x16xf32>
    %677 = arith.negf %676 : vector<8x16xf32>
    %678 = math.exp %677 : vector<8x16xf32>
    %cst_185 = arith.constant 1.000000e+00 : f32
    %679 = vector.broadcast %cst_185 : f32 to vector<8x16xf32>
    %680 = arith.addf %679, %678 : vector<8x16xf32>
    %681 = arith.divf %679, %680 : vector<8x16xf32>
    %682 = vector.extract_strided_slice %672 {offsets = [0, 16], sizes = [8, 16], strides = [1, 1]} : vector<8x64xf32> to vector<8x16xf32>
    %683 = arith.negf %682 : vector<8x16xf32>
    %684 = math.exp %683 : vector<8x16xf32>
    %cst_186 = arith.constant 1.000000e+00 : f32
    %685 = vector.broadcast %cst_186 : f32 to vector<8x16xf32>
    %686 = arith.addf %685, %684 : vector<8x16xf32>
    %687 = arith.divf %685, %686 : vector<8x16xf32>
    %688 = vector.extract_strided_slice %672 {offsets = [0, 32], sizes = [8, 16], strides = [1, 1]} : vector<8x64xf32> to vector<8x16xf32>
    %689 = math.tanh %688 : vector<8x16xf32>
    %690 = vector.extract_strided_slice %672 {offsets = [0, 48], sizes = [8, 16], strides = [1, 1]} : vector<8x64xf32> to vector<8x16xf32>
    %691 = arith.negf %690 : vector<8x16xf32>
    %692 = math.exp %691 : vector<8x16xf32>
    %cst_187 = arith.constant 1.000000e+00 : f32
    %693 = vector.broadcast %cst_187 : f32 to vector<8x16xf32>
    %694 = arith.addf %693, %692 : vector<8x16xf32>
    %695 = arith.divf %693, %694 : vector<8x16xf32>
    %696 = arith.mulf %687, %630 : vector<8x16xf32>
    %697 = arith.mulf %681, %689 : vector<8x16xf32>
    %698 = arith.addf %696, %697 : vector<8x16xf32>
    %699 = math.tanh %698 : vector<8x16xf32>
    %700 = arith.mulf %695, %699 : vector<8x16xf32>
    %701 = arith.select %665, %700, %629 : vector<8x16xi1>, vector<8x16xf32>
    %702 = arith.select %665, %698, %630 : vector<8x16xi1>, vector<8x16xf32>
    %cst_188 = arith.constant 0.000000e+00 : f32
    %703 = vector.broadcast %cst_188 : f32 to vector<8x16xf32>
    %704 = arith.select %665, %700, %703 : vector<8x16xi1>, vector<8x16xf32>
    %705 = vector.extract_strided_slice %675 {offsets = [0, 0], sizes = [8, 16], strides = [1, 1]} : vector<8x64xf32> to vector<8x16xf32>
    %706 = arith.negf %705 : vector<8x16xf32>
    %707 = math.exp %706 : vector<8x16xf32>
    %cst_189 = arith.constant 1.000000e+00 : f32
    %708 = vector.broadcast %cst_189 : f32 to vector<8x16xf32>
    %709 = arith.addf %708, %707 : vector<8x16xf32>
    %710 = arith.divf %708, %709 : vector<8x16xf32>
    %711 = vector.extract_strided_slice %675 {offsets = [0, 16], sizes = [8, 16], strides = [1, 1]} : vector<8x64xf32> to vector<8x16xf32>
    %712 = arith.negf %711 : vector<8x16xf32>
    %713 = math.exp %712 : vector<8x16xf32>
    %cst_190 = arith.constant 1.000000e+00 : f32
    %714 = vector.broadcast %cst_190 : f32 to vector<8x16xf32>
    %715 = arith.addf %714, %713 : vector<8x16xf32>
    %716 = arith.divf %714, %715 : vector<8x16xf32>
    %717 = vector.extract_strided_slice %675 {offsets = [0, 32], sizes = [8, 16], strides = [1, 1]} : vector<8x64xf32> to vector<8x16xf32>
    %718 = math.tanh %717 : vector<8x16xf32>
    %719 = vector.extract_strided_slice %675 {offsets = [0, 48], sizes = [8, 16], strides = [1, 1]} : vector<8x64xf32> to vector<8x16xf32>
    %720 = arith.negf %719 : vector<8x16xf32>
    %721 = math.exp %720 : vector<8x16xf32>
    %cst_191 = arith.constant 1.000000e+00 : f32
    %722 = vector.broadcast %cst_191 : f32 to vector<8x16xf32>
    %723 = arith.addf %722, %721 : vector<8x16xf32>
    %724 = arith.divf %722, %723 : vector<8x16xf32>
    %725 = arith.mulf %716, %659 : vector<8x16xf32>
    %726 = arith.mulf %710, %718 : vector<8x16xf32>
    %727 = arith.addf %725, %726 : vector<8x16xf32>
    %728 = math.tanh %727 : vector<8x16xf32>
    %729 = arith.mulf %724, %728 : vector<8x16xf32>
    %730 = arith.select %667, %729, %658 : vector<8x16xi1>, vector<8x16xf32>
    %731 = arith.select %667, %727, %659 : vector<8x16xi1>, vector<8x16xf32>
    %cst_192 = arith.constant 0.000000e+00 : f32
    %732 = vector.broadcast %cst_192 : f32 to vector<8x16xf32>
    %733 = arith.select %667, %729, %732 : vector<8x16xi1>, vector<8x16xf32>
    %c8_193 = arith.constant 8 : index
    %c0_194 = arith.constant 0 : index
    %734 = vector.load %arg11[%c8_193, %c0_194] : memref<64x32xf32, #tpu.memory_space<vmem>>, vector<8x16xf32>
    tpu.vector_store %arg11[%c8_193, %c0_194], %704 {strides = array<i32>} : memref<64x32xf32, #tpu.memory_space<vmem>>, vector<8x16xf32>,
    %c48_195 = arith.constant 48 : index
    %c16_196 = arith.constant 16 : index
    %735 = vector.load %arg11[%c48_195, %c16_196] : memref<64x32xf32, #tpu.memory_space<vmem>>, vector<8x16xf32>
    tpu.vector_store %arg11[%c48_195, %c16_196], %733 {strides = array<i32>} : memref<64x32xf32, #tpu.memory_space<vmem>>, vector<8x16xf32>,
    %c2_i32_197 = arith.constant 2 : i32
    %736 = vector.broadcast %c2_i32_197 : i32 to vector<8x16xi32>
    %737 = arith.cmpi sgt, %2, %736 : vector<8x16xi32>
    %c5_i32_198 = arith.constant 5 : i32
    %738 = vector.broadcast %c5_i32_198 : i32 to vector<8x16xi32>
    %739 = arith.cmpi sgt, %2, %738 : vector<8x16xi32>
    %740 = tpu.concatenate %701, %730 in 1 : vector<8x16xf32>, vector<8x16xf32> -> vector<8x32xf32>
    %cst_199 = arith.constant dense<0.000000e+00> : vector<8x128xf32>
    %741 = tpu.matmul %740, %585, %cst_199 {dimension_numbers = #tpu.dot_dimension_numbers<[1], [0], [0], [1], [0, 0, 1, 1], [], []>} : vector<8x32xf32>, vector<32x128xf32>, vector<8x128xf32> -> vector<8x128xf32>
    %c16_200 = arith.constant 16 : index
    %c0_201 = arith.constant 0 : index
    %742 = vector.load %arg12[%c16_200, %c0_201] : memref<64x128xf32, #tpu.memory_space<vmem>>, vector<8x64xf32>
    %743 = vector.extract_strided_slice %741 {offsets = [0, 0], sizes = [8, 64], strides = [1, 1]} : vector<8x128xf32> to vector<8x64xf32>
    %744 = arith.addf %742, %743 : vector<8x64xf32>
    %c40_202 = arith.constant 40 : index
    %c64_203 = arith.constant 64 : index
    %745 = vector.load %arg12[%c40_202, %c64_203] : memref<64x128xf32, #tpu.memory_space<vmem>>, vector<8x64xf32>
    %746 = vector.extract_strided_slice %741 {offsets = [0, 64], sizes = [8, 64], strides = [1, 1]} : vector<8x128xf32> to vector<8x64xf32>
    %747 = arith.addf %745, %746 : vector<8x64xf32>
    %748 = vector.extract_strided_slice %744 {offsets = [0, 0], sizes = [8, 16], strides = [1, 1]} : vector<8x64xf32> to vector<8x16xf32>
    %749 = arith.negf %748 : vector<8x16xf32>
    %750 = math.exp %749 : vector<8x16xf32>
    %cst_204 = arith.constant 1.000000e+00 : f32
    %751 = vector.broadcast %cst_204 : f32 to vector<8x16xf32>
    %752 = arith.addf %751, %750 : vector<8x16xf32>
    %753 = arith.divf %751, %752 : vector<8x16xf32>
    %754 = vector.extract_strided_slice %744 {offsets = [0, 16], sizes = [8, 16], strides = [1, 1]} : vector<8x64xf32> to vector<8x16xf32>
    %755 = arith.negf %754 : vector<8x16xf32>
    %756 = math.exp %755 : vector<8x16xf32>
    %cst_205 = arith.constant 1.000000e+00 : f32
    %757 = vector.broadcast %cst_205 : f32 to vector<8x16xf32>
    %758 = arith.addf %757, %756 : vector<8x16xf32>
    %759 = arith.divf %757, %758 : vector<8x16xf32>
    %760 = vector.extract_strided_slice %744 {offsets = [0, 32], sizes = [8, 16], strides = [1, 1]} : vector<8x64xf32> to vector<8x16xf32>
    %761 = math.tanh %760 : vector<8x16xf32>
    %762 = vector.extract_strided_slice %744 {offsets = [0, 48], sizes = [8, 16], strides = [1, 1]} : vector<8x64xf32> to vector<8x16xf32>
    %763 = arith.negf %762 : vector<8x16xf32>
    %764 = math.exp %763 : vector<8x16xf32>
    %cst_206 = arith.constant 1.000000e+00 : f32
    %765 = vector.broadcast %cst_206 : f32 to vector<8x16xf32>
    %766 = arith.addf %765, %764 : vector<8x16xf32>
    %767 = arith.divf %765, %766 : vector<8x16xf32>
    %768 = arith.mulf %759, %702 : vector<8x16xf32>
    %769 = arith.mulf %753, %761 : vector<8x16xf32>
    %770 = arith.addf %768, %769 : vector<8x16xf32>
    %771 = math.tanh %770 : vector<8x16xf32>
    %772 = arith.mulf %767, %771 : vector<8x16xf32>
    %773 = arith.select %737, %772, %701 : vector<8x16xi1>, vector<8x16xf32>
    %774 = arith.select %737, %770, %702 : vector<8x16xi1>, vector<8x16xf32>
    %cst_207 = arith.constant 0.000000e+00 : f32
    %775 = vector.broadcast %cst_207 : f32 to vector<8x16xf32>
    %776 = arith.select %737, %772, %775 : vector<8x16xi1>, vector<8x16xf32>
    %777 = vector.extract_strided_slice %747 {offsets = [0, 0], sizes = [8, 16], strides = [1, 1]} : vector<8x64xf32> to vector<8x16xf32>
    %778 = arith.negf %777 : vector<8x16xf32>
    %779 = math.exp %778 : vector<8x16xf32>
    %cst_208 = arith.constant 1.000000e+00 : f32
    %780 = vector.broadcast %cst_208 : f32 to vector<8x16xf32>
    %781 = arith.addf %780, %779 : vector<8x16xf32>
    %782 = arith.divf %780, %781 : vector<8x16xf32>
    %783 = vector.extract_strided_slice %747 {offsets = [0, 16], sizes = [8, 16], strides = [1, 1]} : vector<8x64xf32> to vector<8x16xf32>
    %784 = arith.negf %783 : vector<8x16xf32>
    %785 = math.exp %784 : vector<8x16xf32>
    %cst_209 = arith.constant 1.000000e+00 : f32
    %786 = vector.broadcast %cst_209 : f32 to vector<8x16xf32>
    %787 = arith.addf %786, %785 : vector<8x16xf32>
    %788 = arith.divf %786, %787 : vector<8x16xf32>
    %789 = vector.extract_strided_slice %747 {offsets = [0, 32], sizes = [8, 16], strides = [1, 1]} : vector<8x64xf32> to vector<8x16xf32>
    %790 = math.tanh %789 : vector<8x16xf32>
    %791 = vector.extract_strided_slice %747 {offsets = [0, 48], sizes = [8, 16], strides = [1, 1]} : vector<8x64xf32> to vector<8x16xf32>
    %792 = arith.negf %791 : vector<8x16xf32>
    %793 = math.exp %792 : vector<8x16xf32>
    %cst_210 = arith.constant 1.000000e+00 : f32
    %794 = vector.broadcast %cst_210 : f32 to vector<8x16xf32>
    %795 = arith.addf %794, %793 : vector<8x16xf32>
    %796 = arith.divf %794, %795 : vector<8x16xf32>
    %797 = arith.mulf %788, %731 : vector<8x16xf32>
    %798 = arith.mulf %782, %790 : vector<8x16xf32>
    %799 = arith.addf %797, %798 : vector<8x16xf32>
    %800 = math.tanh %799 : vector<8x16xf32>
    %801 = arith.mulf %796, %800 : vector<8x16xf32>
    %802 = arith.select %739, %801, %730 : vector<8x16xi1>, vector<8x16xf32>
    %803 = arith.select %739, %799, %731 : vector<8x16xi1>, vector<8x16xf32>
    %cst_211 = arith.constant 0.000000e+00 : f32
    %804 = vector.broadcast %cst_211 : f32 to vector<8x16xf32>
    %805 = arith.select %739, %801, %804 : vector<8x16xi1>, vector<8x16xf32>
    %c16_212 = arith.constant 16 : index
    %c0_213 = arith.constant 0 : index
    %806 = vector.load %arg11[%c16_212, %c0_213] : memref<64x32xf32, #tpu.memory_space<vmem>>, vector<8x16xf32>
    tpu.vector_store %arg11[%c16_212, %c0_213], %776 {strides = array<i32>} : memref<64x32xf32, #tpu.memory_space<vmem>>, vector<8x16xf32>,
    %c40_214 = arith.constant 40 : index
    %c16_215 = arith.constant 16 : index
    %807 = vector.load %arg11[%c40_214, %c16_215] : memref<64x32xf32, #tpu.memory_space<vmem>>, vector<8x16xf32>
    tpu.vector_store %arg11[%c40_214, %c16_215], %805 {strides = array<i32>} : memref<64x32xf32, #tpu.memory_space<vmem>>, vector<8x16xf32>,
    %c3_i32_216 = arith.constant 3 : i32
    %808 = vector.broadcast %c3_i32_216 : i32 to vector<8x16xi32>
    %809 = arith.cmpi sgt, %2, %808 : vector<8x16xi32>
    %c4_i32_217 = arith.constant 4 : i32
    %810 = vector.broadcast %c4_i32_217 : i32 to vector<8x16xi32>
    %811 = arith.cmpi sgt, %2, %810 : vector<8x16xi32>
    %812 = tpu.concatenate %773, %802 in 1 : vector<8x16xf32>, vector<8x16xf32> -> vector<8x32xf32>
    %cst_218 = arith.constant dense<0.000000e+00> : vector<8x128xf32>
    %813 = tpu.matmul %812, %585, %cst_218 {dimension_numbers = #tpu.dot_dimension_numbers<[1], [0], [0], [1], [0, 0, 1, 1], [], []>} : vector<8x32xf32>, vector<32x128xf32>, vector<8x128xf32> -> vector<8x128xf32>
    %c24_219 = arith.constant 24 : index
    %c0_220 = arith.constant 0 : index
    %814 = vector.load %arg12[%c24_219, %c0_220] : memref<64x128xf32, #tpu.memory_space<vmem>>, vector<8x64xf32>
    %815 = vector.extract_strided_slice %813 {offsets = [0, 0], sizes = [8, 64], strides = [1, 1]} : vector<8x128xf32> to vector<8x64xf32>
    %816 = arith.addf %814, %815 : vector<8x64xf32>
    %c32_221 = arith.constant 32 : index
    %c64_222 = arith.constant 64 : index
    %817 = vector.load %arg12[%c32_221, %c64_222] : memref<64x128xf32, #tpu.memory_space<vmem>>, vector<8x64xf32>
    %818 = vector.extract_strided_slice %813 {offsets = [0, 64], sizes = [8, 64], strides = [1, 1]} : vector<8x128xf32> to vector<8x64xf32>
    %819 = arith.addf %817, %818 : vector<8x64xf32>
    %820 = vector.extract_strided_slice %816 {offsets = [0, 0], sizes = [8, 16], strides = [1, 1]} : vector<8x64xf32> to vector<8x16xf32>
    %821 = arith.negf %820 : vector<8x16xf32>
    %822 = math.exp %821 : vector<8x16xf32>
    %cst_223 = arith.constant 1.000000e+00 : f32
    %823 = vector.broadcast %cst_223 : f32 to vector<8x16xf32>
    %824 = arith.addf %823, %822 : vector<8x16xf32>
    %825 = arith.divf %823, %824 : vector<8x16xf32>
    %826 = vector.extract_strided_slice %816 {offsets = [0, 16], sizes = [8, 16], strides = [1, 1]} : vector<8x64xf32> to vector<8x16xf32>
    %827 = arith.negf %826 : vector<8x16xf32>
    %828 = math.exp %827 : vector<8x16xf32>
    %cst_224 = arith.constant 1.000000e+00 : f32
    %829 = vector.broadcast %cst_224 : f32 to vector<8x16xf32>
    %830 = arith.addf %829, %828 : vector<8x16xf32>
    %831 = arith.divf %829, %830 : vector<8x16xf32>
    %832 = vector.extract_strided_slice %816 {offsets = [0, 32], sizes = [8, 16], strides = [1, 1]} : vector<8x64xf32> to vector<8x16xf32>
    %833 = math.tanh %832 : vector<8x16xf32>
    %834 = vector.extract_strided_slice %816 {offsets = [0, 48], sizes = [8, 16], strides = [1, 1]} : vector<8x64xf32> to vector<8x16xf32>
    %835 = arith.negf %834 : vector<8x16xf32>
    %836 = math.exp %835 : vector<8x16xf32>
    %cst_225 = arith.constant 1.000000e+00 : f32
    %837 = vector.broadcast %cst_225 : f32 to vector<8x16xf32>
    %838 = arith.addf %837, %836 : vector<8x16xf32>
    %839 = arith.divf %837, %838 : vector<8x16xf32>
    %840 = arith.mulf %831, %774 : vector<8x16xf32>
    %841 = arith.mulf %825, %833 : vector<8x16xf32>
    %842 = arith.addf %840, %841 : vector<8x16xf32>
    %843 = math.tanh %842 : vector<8x16xf32>
    %844 = arith.mulf %839, %843 : vector<8x16xf32>
    %845 = arith.select %809, %844, %773 : vector<8x16xi1>, vector<8x16xf32>
    %846 = arith.select %809, %842, %774 : vector<8x16xi1>, vector<8x16xf32>
    %cst_226 = arith.constant 0.000000e+00 : f32
    %847 = vector.broadcast %cst_226 : f32 to vector<8x16xf32>
    %848 = arith.select %809, %844, %847 : vector<8x16xi1>, vector<8x16xf32>
    %849 = vector.extract_strided_slice %819 {offsets = [0, 0], sizes = [8, 16], strides = [1, 1]} : vector<8x64xf32> to vector<8x16xf32>
    %850 = arith.negf %849 : vector<8x16xf32>
    %851 = math.exp %850 : vector<8x16xf32>
    %cst_227 = arith.constant 1.000000e+00 : f32
    %852 = vector.broadcast %cst_227 : f32 to vector<8x16xf32>
    %853 = arith.addf %852, %851 : vector<8x16xf32>
    %854 = arith.divf %852, %853 : vector<8x16xf32>
    %855 = vector.extract_strided_slice %819 {offsets = [0, 16], sizes = [8, 16], strides = [1, 1]} : vector<8x64xf32> to vector<8x16xf32>
    %856 = arith.negf %855 : vector<8x16xf32>
    %857 = math.exp %856 : vector<8x16xf32>
    %cst_228 = arith.constant 1.000000e+00 : f32
    %858 = vector.broadcast %cst_228 : f32 to vector<8x16xf32>
    %859 = arith.addf %858, %857 : vector<8x16xf32>
    %860 = arith.divf %858, %859 : vector<8x16xf32>
    %861 = vector.extract_strided_slice %819 {offsets = [0, 32], sizes = [8, 16], strides = [1, 1]} : vector<8x64xf32> to vector<8x16xf32>
    %862 = math.tanh %861 : vector<8x16xf32>
    %863 = vector.extract_strided_slice %819 {offsets = [0, 48], sizes = [8, 16], strides = [1, 1]} : vector<8x64xf32> to vector<8x16xf32>
    %864 = arith.negf %863 : vector<8x16xf32>
    %865 = math.exp %864 : vector<8x16xf32>
    %cst_229 = arith.constant 1.000000e+00 : f32
    %866 = vector.broadcast %cst_229 : f32 to vector<8x16xf32>
    %867 = arith.addf %866, %865 : vector<8x16xf32>
    %868 = arith.divf %866, %867 : vector<8x16xf32>
    %869 = arith.mulf %860, %803 : vector<8x16xf32>
    %870 = arith.mulf %854, %862 : vector<8x16xf32>
    %871 = arith.addf %869, %870 : vector<8x16xf32>
    %872 = math.tanh %871 : vector<8x16xf32>
    %873 = arith.mulf %868, %872 : vector<8x16xf32>
    %874 = arith.select %811, %873, %802 : vector<8x16xi1>, vector<8x16xf32>
    %875 = arith.select %811, %871, %803 : vector<8x16xi1>, vector<8x16xf32>
    %cst_230 = arith.constant 0.000000e+00 : f32
    %876 = vector.broadcast %cst_230 : f32 to vector<8x16xf32>
    %877 = arith.select %811, %873, %876 : vector<8x16xi1>, vector<8x16xf32>
    %c24_231 = arith.constant 24 : index
    %c0_232 = arith.constant 0 : index
    %878 = vector.load %arg11[%c24_231, %c0_232] : memref<64x32xf32, #tpu.memory_space<vmem>>, vector<8x16xf32>
    tpu.vector_store %arg11[%c24_231, %c0_232], %848 {strides = array<i32>} : memref<64x32xf32, #tpu.memory_space<vmem>>, vector<8x16xf32>,
    %c32_233 = arith.constant 32 : index
    %c16_234 = arith.constant 16 : index
    %879 = vector.load %arg11[%c32_233, %c16_234] : memref<64x32xf32, #tpu.memory_space<vmem>>, vector<8x16xf32>
    tpu.vector_store %arg11[%c32_233, %c16_234], %877 {strides = array<i32>} : memref<64x32xf32, #tpu.memory_space<vmem>>, vector<8x16xf32>,
    %c4_i32_235 = arith.constant 4 : i32
    %880 = vector.broadcast %c4_i32_235 : i32 to vector<8x16xi32>
    %881 = arith.cmpi sgt, %2, %880 : vector<8x16xi32>
    %c3_i32_236 = arith.constant 3 : i32
    %882 = vector.broadcast %c3_i32_236 : i32 to vector<8x16xi32>
    %883 = arith.cmpi sgt, %2, %882 : vector<8x16xi32>
    %884 = tpu.concatenate %845, %874 in 1 : vector<8x16xf32>, vector<8x16xf32> -> vector<8x32xf32>
    %cst_237 = arith.constant dense<0.000000e+00> : vector<8x128xf32>
    %885 = tpu.matmul %884, %585, %cst_237 {dimension_numbers = #tpu.dot_dimension_numbers<[1], [0], [0], [1], [0, 0, 1, 1], [], []>} : vector<8x32xf32>, vector<32x128xf32>, vector<8x128xf32> -> vector<8x128xf32>
    %c32_238 = arith.constant 32 : index
    %c0_239 = arith.constant 0 : index
    %886 = vector.load %arg12[%c32_238, %c0_239] : memref<64x128xf32, #tpu.memory_space<vmem>>, vector<8x64xf32>
    %887 = vector.extract_strided_slice %885 {offsets = [0, 0], sizes = [8, 64], strides = [1, 1]} : vector<8x128xf32> to vector<8x64xf32>
    %888 = arith.addf %886, %887 : vector<8x64xf32>
    %c24_240 = arith.constant 24 : index
    %c64_241 = arith.constant 64 : index
    %889 = vector.load %arg12[%c24_240, %c64_241] : memref<64x128xf32, #tpu.memory_space<vmem>>, vector<8x64xf32>
    %890 = vector.extract_strided_slice %885 {offsets = [0, 64], sizes = [8, 64], strides = [1, 1]} : vector<8x128xf32> to vector<8x64xf32>
    %891 = arith.addf %889, %890 : vector<8x64xf32>
    %892 = vector.extract_strided_slice %888 {offsets = [0, 0], sizes = [8, 16], strides = [1, 1]} : vector<8x64xf32> to vector<8x16xf32>
    %893 = arith.negf %892 : vector<8x16xf32>
    %894 = math.exp %893 : vector<8x16xf32>
    %cst_242 = arith.constant 1.000000e+00 : f32
    %895 = vector.broadcast %cst_242 : f32 to vector<8x16xf32>
    %896 = arith.addf %895, %894 : vector<8x16xf32>
    %897 = arith.divf %895, %896 : vector<8x16xf32>
    %898 = vector.extract_strided_slice %888 {offsets = [0, 16], sizes = [8, 16], strides = [1, 1]} : vector<8x64xf32> to vector<8x16xf32>
    %899 = arith.negf %898 : vector<8x16xf32>
    %900 = math.exp %899 : vector<8x16xf32>
    %cst_243 = arith.constant 1.000000e+00 : f32
    %901 = vector.broadcast %cst_243 : f32 to vector<8x16xf32>
    %902 = arith.addf %901, %900 : vector<8x16xf32>
    %903 = arith.divf %901, %902 : vector<8x16xf32>
    %904 = vector.extract_strided_slice %888 {offsets = [0, 32], sizes = [8, 16], strides = [1, 1]} : vector<8x64xf32> to vector<8x16xf32>
    %905 = math.tanh %904 : vector<8x16xf32>
    %906 = vector.extract_strided_slice %888 {offsets = [0, 48], sizes = [8, 16], strides = [1, 1]} : vector<8x64xf32> to vector<8x16xf32>
    %907 = arith.negf %906 : vector<8x16xf32>
    %908 = math.exp %907 : vector<8x16xf32>
    %cst_244 = arith.constant 1.000000e+00 : f32
    %909 = vector.broadcast %cst_244 : f32 to vector<8x16xf32>
    %910 = arith.addf %909, %908 : vector<8x16xf32>
    %911 = arith.divf %909, %910 : vector<8x16xf32>
    %912 = arith.mulf %903, %846 : vector<8x16xf32>
    %913 = arith.mulf %897, %905 : vector<8x16xf32>
    %914 = arith.addf %912, %913 : vector<8x16xf32>
    %915 = math.tanh %914 : vector<8x16xf32>
    %916 = arith.mulf %911, %915 : vector<8x16xf32>
    %917 = arith.select %881, %916, %845 : vector<8x16xi1>, vector<8x16xf32>
    %918 = arith.select %881, %914, %846 : vector<8x16xi1>, vector<8x16xf32>
    %cst_245 = arith.constant 0.000000e+00 : f32
    %919 = vector.broadcast %cst_245 : f32 to vector<8x16xf32>
    %920 = arith.select %881, %916, %919 : vector<8x16xi1>, vector<8x16xf32>
    %921 = vector.extract_strided_slice %891 {offsets = [0, 0], sizes = [8, 16], strides = [1, 1]} : vector<8x64xf32> to vector<8x16xf32>
    %922 = arith.negf %921 : vector<8x16xf32>
    %923 = math.exp %922 : vector<8x16xf32>
    %cst_246 = arith.constant 1.000000e+00 : f32
    %924 = vector.broadcast %cst_246 : f32 to vector<8x16xf32>
    %925 = arith.addf %924, %923 : vector<8x16xf32>
    %926 = arith.divf %924, %925 : vector<8x16xf32>
    %927 = vector.extract_strided_slice %891 {offsets = [0, 16], sizes = [8, 16], strides = [1, 1]} : vector<8x64xf32> to vector<8x16xf32>
    %928 = arith.negf %927 : vector<8x16xf32>
    %929 = math.exp %928 : vector<8x16xf32>
    %cst_247 = arith.constant 1.000000e+00 : f32
    %930 = vector.broadcast %cst_247 : f32 to vector<8x16xf32>
    %931 = arith.addf %930, %929 : vector<8x16xf32>
    %932 = arith.divf %930, %931 : vector<8x16xf32>
    %933 = vector.extract_strided_slice %891 {offsets = [0, 32], sizes = [8, 16], strides = [1, 1]} : vector<8x64xf32> to vector<8x16xf32>
    %934 = math.tanh %933 : vector<8x16xf32>
    %935 = vector.extract_strided_slice %891 {offsets = [0, 48], sizes = [8, 16], strides = [1, 1]} : vector<8x64xf32> to vector<8x16xf32>
    %936 = arith.negf %935 : vector<8x16xf32>
    %937 = math.exp %936 : vector<8x16xf32>
    %cst_248 = arith.constant 1.000000e+00 : f32
    %938 = vector.broadcast %cst_248 : f32 to vector<8x16xf32>
    %939 = arith.addf %938, %937 : vector<8x16xf32>
    %940 = arith.divf %938, %939 : vector<8x16xf32>
    %941 = arith.mulf %932, %875 : vector<8x16xf32>
    %942 = arith.mulf %926, %934 : vector<8x16xf32>
    %943 = arith.addf %941, %942 : vector<8x16xf32>
    %944 = math.tanh %943 : vector<8x16xf32>
    %945 = arith.mulf %940, %944 : vector<8x16xf32>
    %946 = arith.select %883, %945, %874 : vector<8x16xi1>, vector<8x16xf32>
    %947 = arith.select %883, %943, %875 : vector<8x16xi1>, vector<8x16xf32>
    %cst_249 = arith.constant 0.000000e+00 : f32
    %948 = vector.broadcast %cst_249 : f32 to vector<8x16xf32>
    %949 = arith.select %883, %945, %948 : vector<8x16xi1>, vector<8x16xf32>
    %c32_250 = arith.constant 32 : index
    %c0_251 = arith.constant 0 : index
    %950 = vector.load %arg11[%c32_250, %c0_251] : memref<64x32xf32, #tpu.memory_space<vmem>>, vector<8x16xf32>
    tpu.vector_store %arg11[%c32_250, %c0_251], %920 {strides = array<i32>} : memref<64x32xf32, #tpu.memory_space<vmem>>, vector<8x16xf32>,
    %c24_252 = arith.constant 24 : index
    %c16_253 = arith.constant 16 : index
    %951 = vector.load %arg11[%c24_252, %c16_253] : memref<64x32xf32, #tpu.memory_space<vmem>>, vector<8x16xf32>
    tpu.vector_store %arg11[%c24_252, %c16_253], %949 {strides = array<i32>} : memref<64x32xf32, #tpu.memory_space<vmem>>, vector<8x16xf32>,
    %c5_i32_254 = arith.constant 5 : i32
    %952 = vector.broadcast %c5_i32_254 : i32 to vector<8x16xi32>
    %953 = arith.cmpi sgt, %2, %952 : vector<8x16xi32>
    %c2_i32_255 = arith.constant 2 : i32
    %954 = vector.broadcast %c2_i32_255 : i32 to vector<8x16xi32>
    %955 = arith.cmpi sgt, %2, %954 : vector<8x16xi32>
    %956 = tpu.concatenate %917, %946 in 1 : vector<8x16xf32>, vector<8x16xf32> -> vector<8x32xf32>
    %cst_256 = arith.constant dense<0.000000e+00> : vector<8x128xf32>
    %957 = tpu.matmul %956, %585, %cst_256 {dimension_numbers = #tpu.dot_dimension_numbers<[1], [0], [0], [1], [0, 0, 1, 1], [], []>} : vector<8x32xf32>, vector<32x128xf32>, vector<8x128xf32> -> vector<8x128xf32>
    %c40_257 = arith.constant 40 : index
    %c0_258 = arith.constant 0 : index
    %958 = vector.load %arg12[%c40_257, %c0_258] : memref<64x128xf32, #tpu.memory_space<vmem>>, vector<8x64xf32>
    %959 = vector.extract_strided_slice %957 {offsets = [0, 0], sizes = [8, 64], strides = [1, 1]} : vector<8x128xf32> to vector<8x64xf32>
    %960 = arith.addf %958, %959 : vector<8x64xf32>
    %c16_259 = arith.constant 16 : index
    %c64_260 = arith.constant 64 : index
    %961 = vector.load %arg12[%c16_259, %c64_260] : memref<64x128xf32, #tpu.memory_space<vmem>>, vector<8x64xf32>
    %962 = vector.extract_strided_slice %957 {offsets = [0, 64], sizes = [8, 64], strides = [1, 1]} : vector<8x128xf32> to vector<8x64xf32>
    %963 = arith.addf %961, %962 : vector<8x64xf32>
    %964 = vector.extract_strided_slice %960 {offsets = [0, 0], sizes = [8, 16], strides = [1, 1]} : vector<8x64xf32> to vector<8x16xf32>
    %965 = arith.negf %964 : vector<8x16xf32>
    %966 = math.exp %965 : vector<8x16xf32>
    %cst_261 = arith.constant 1.000000e+00 : f32
    %967 = vector.broadcast %cst_261 : f32 to vector<8x16xf32>
    %968 = arith.addf %967, %966 : vector<8x16xf32>
    %969 = arith.divf %967, %968 : vector<8x16xf32>
    %970 = vector.extract_strided_slice %960 {offsets = [0, 16], sizes = [8, 16], strides = [1, 1]} : vector<8x64xf32> to vector<8x16xf32>
    %971 = arith.negf %970 : vector<8x16xf32>
    %972 = math.exp %971 : vector<8x16xf32>
    %cst_262 = arith.constant 1.000000e+00 : f32
    %973 = vector.broadcast %cst_262 : f32 to vector<8x16xf32>
    %974 = arith.addf %973, %972 : vector<8x16xf32>
    %975 = arith.divf %973, %974 : vector<8x16xf32>
    %976 = vector.extract_strided_slice %960 {offsets = [0, 32], sizes = [8, 16], strides = [1, 1]} : vector<8x64xf32> to vector<8x16xf32>
    %977 = math.tanh %976 : vector<8x16xf32>
    %978 = vector.extract_strided_slice %960 {offsets = [0, 48], sizes = [8, 16], strides = [1, 1]} : vector<8x64xf32> to vector<8x16xf32>
    %979 = arith.negf %978 : vector<8x16xf32>
    %980 = math.exp %979 : vector<8x16xf32>
    %cst_263 = arith.constant 1.000000e+00 : f32
    %981 = vector.broadcast %cst_263 : f32 to vector<8x16xf32>
    %982 = arith.addf %981, %980 : vector<8x16xf32>
    %983 = arith.divf %981, %982 : vector<8x16xf32>
    %984 = arith.mulf %975, %918 : vector<8x16xf32>
    %985 = arith.mulf %969, %977 : vector<8x16xf32>
    %986 = arith.addf %984, %985 : vector<8x16xf32>
    %987 = math.tanh %986 : vector<8x16xf32>
    %988 = arith.mulf %983, %987 : vector<8x16xf32>
    %989 = arith.select %953, %988, %917 : vector<8x16xi1>, vector<8x16xf32>
    %990 = arith.select %953, %986, %918 : vector<8x16xi1>, vector<8x16xf32>
    %cst_264 = arith.constant 0.000000e+00 : f32
    %991 = vector.broadcast %cst_264 : f32 to vector<8x16xf32>
    %992 = arith.select %953, %988, %991 : vector<8x16xi1>, vector<8x16xf32>
    %993 = vector.extract_strided_slice %963 {offsets = [0, 0], sizes = [8, 16], strides = [1, 1]} : vector<8x64xf32> to vector<8x16xf32>
    %994 = arith.negf %993 : vector<8x16xf32>
    %995 = math.exp %994 : vector<8x16xf32>
    %cst_265 = arith.constant 1.000000e+00 : f32
    %996 = vector.broadcast %cst_265 : f32 to vector<8x16xf32>
    %997 = arith.addf %996, %995 : vector<8x16xf32>
    %998 = arith.divf %996, %997 : vector<8x16xf32>
    %999 = vector.extract_strided_slice %963 {offsets = [0, 16], sizes = [8, 16], strides = [1, 1]} : vector<8x64xf32> to vector<8x16xf32>
    %1000 = arith.negf %999 : vector<8x16xf32>
    %1001 = math.exp %1000 : vector<8x16xf32>
    %cst_266 = arith.constant 1.000000e+00 : f32
    %1002 = vector.broadcast %cst_266 : f32 to vector<8x16xf32>
    %1003 = arith.addf %1002, %1001 : vector<8x16xf32>
    %1004 = arith.divf %1002, %1003 : vector<8x16xf32>
    %1005 = vector.extract_strided_slice %963 {offsets = [0, 32], sizes = [8, 16], strides = [1, 1]} : vector<8x64xf32> to vector<8x16xf32>
    %1006 = math.tanh %1005 : vector<8x16xf32>
    %1007 = vector.extract_strided_slice %963 {offsets = [0, 48], sizes = [8, 16], strides = [1, 1]} : vector<8x64xf32> to vector<8x16xf32>
    %1008 = arith.negf %1007 : vector<8x16xf32>
    %1009 = math.exp %1008 : vector<8x16xf32>
    %cst_267 = arith.constant 1.000000e+00 : f32
    %1010 = vector.broadcast %cst_267 : f32 to vector<8x16xf32>
    %1011 = arith.addf %1010, %1009 : vector<8x16xf32>
    %1012 = arith.divf %1010, %1011 : vector<8x16xf32>
    %1013 = arith.mulf %1004, %947 : vector<8x16xf32>
    %1014 = arith.mulf %998, %1006 : vector<8x16xf32>
    %1015 = arith.addf %1013, %1014 : vector<8x16xf32>
    %1016 = math.tanh %1015 : vector<8x16xf32>
    %1017 = arith.mulf %1012, %1016 : vector<8x16xf32>
    %1018 = arith.select %955, %1017, %946 : vector<8x16xi1>, vector<8x16xf32>
    %1019 = arith.select %955, %1015, %947 : vector<8x16xi1>, vector<8x16xf32>
    %cst_268 = arith.constant 0.000000e+00 : f32
    %1020 = vector.broadcast %cst_268 : f32 to vector<8x16xf32>
    %1021 = arith.select %955, %1017, %1020 : vector<8x16xi1>, vector<8x16xf32>
    %c40_269 = arith.constant 40 : index
    %c0_270 = arith.constant 0 : index
    %1022 = vector.load %arg11[%c40_269, %c0_270] : memref<64x32xf32, #tpu.memory_space<vmem>>, vector<8x16xf32>
    tpu.vector_store %arg11[%c40_269, %c0_270], %992 {strides = array<i32>} : memref<64x32xf32, #tpu.memory_space<vmem>>, vector<8x16xf32>,
    %c16_271 = arith.constant 16 : index
    %c16_272 = arith.constant 16 : index
    %1023 = vector.load %arg11[%c16_271, %c16_272] : memref<64x32xf32, #tpu.memory_space<vmem>>, vector<8x16xf32>
    tpu.vector_store %arg11[%c16_271, %c16_272], %1021 {strides = array<i32>} : memref<64x32xf32, #tpu.memory_space<vmem>>, vector<8x16xf32>,
    %c6_i32_273 = arith.constant 6 : i32
    %1024 = vector.broadcast %c6_i32_273 : i32 to vector<8x16xi32>
    %1025 = arith.cmpi sgt, %2, %1024 : vector<8x16xi32>
    %c1_i32_274 = arith.constant 1 : i32
    %1026 = vector.broadcast %c1_i32_274 : i32 to vector<8x16xi32>
    %1027 = arith.cmpi sgt, %2, %1026 : vector<8x16xi32>
    %1028 = tpu.concatenate %989, %1018 in 1 : vector<8x16xf32>, vector<8x16xf32> -> vector<8x32xf32>
    %cst_275 = arith.constant dense<0.000000e+00> : vector<8x128xf32>
    %1029 = tpu.matmul %1028, %585, %cst_275 {dimension_numbers = #tpu.dot_dimension_numbers<[1], [0], [0], [1], [0, 0, 1, 1], [], []>} : vector<8x32xf32>, vector<32x128xf32>, vector<8x128xf32> -> vector<8x128xf32>
    %c48_276 = arith.constant 48 : index
    %c0_277 = arith.constant 0 : index
    %1030 = vector.load %arg12[%c48_276, %c0_277] : memref<64x128xf32, #tpu.memory_space<vmem>>, vector<8x64xf32>
    %1031 = vector.extract_strided_slice %1029 {offsets = [0, 0], sizes = [8, 64], strides = [1, 1]} : vector<8x128xf32> to vector<8x64xf32>
    %1032 = arith.addf %1030, %1031 : vector<8x64xf32>
    %c8_278 = arith.constant 8 : index
    %c64_279 = arith.constant 64 : index
    %1033 = vector.load %arg12[%c8_278, %c64_279] : memref<64x128xf32, #tpu.memory_space<vmem>>, vector<8x64xf32>
    %1034 = vector.extract_strided_slice %1029 {offsets = [0, 64], sizes = [8, 64], strides = [1, 1]} : vector<8x128xf32> to vector<8x64xf32>
    %1035 = arith.addf %1033, %1034 : vector<8x64xf32>
    %1036 = vector.extract_strided_slice %1032 {offsets = [0, 0], sizes = [8, 16], strides = [1, 1]} : vector<8x64xf32> to vector<8x16xf32>
    %1037 = arith.negf %1036 : vector<8x16xf32>
    %1038 = math.exp %1037 : vector<8x16xf32>
    %cst_280 = arith.constant 1.000000e+00 : f32
    %1039 = vector.broadcast %cst_280 : f32 to vector<8x16xf32>
    %1040 = arith.addf %1039, %1038 : vector<8x16xf32>
    %1041 = arith.divf %1039, %1040 : vector<8x16xf32>
    %1042 = vector.extract_strided_slice %1032 {offsets = [0, 16], sizes = [8, 16], strides = [1, 1]} : vector<8x64xf32> to vector<8x16xf32>
    %1043 = arith.negf %1042 : vector<8x16xf32>
    %1044 = math.exp %1043 : vector<8x16xf32>
    %cst_281 = arith.constant 1.000000e+00 : f32
    %1045 = vector.broadcast %cst_281 : f32 to vector<8x16xf32>
    %1046 = arith.addf %1045, %1044 : vector<8x16xf32>
    %1047 = arith.divf %1045, %1046 : vector<8x16xf32>
    %1048 = vector.extract_strided_slice %1032 {offsets = [0, 32], sizes = [8, 16], strides = [1, 1]} : vector<8x64xf32> to vector<8x16xf32>
    %1049 = math.tanh %1048 : vector<8x16xf32>
    %1050 = vector.extract_strided_slice %1032 {offsets = [0, 48], sizes = [8, 16], strides = [1, 1]} : vector<8x64xf32> to vector<8x16xf32>
    %1051 = arith.negf %1050 : vector<8x16xf32>
    %1052 = math.exp %1051 : vector<8x16xf32>
    %cst_282 = arith.constant 1.000000e+00 : f32
    %1053 = vector.broadcast %cst_282 : f32 to vector<8x16xf32>
    %1054 = arith.addf %1053, %1052 : vector<8x16xf32>
    %1055 = arith.divf %1053, %1054 : vector<8x16xf32>
    %1056 = arith.mulf %1047, %990 : vector<8x16xf32>
    %1057 = arith.mulf %1041, %1049 : vector<8x16xf32>
    %1058 = arith.addf %1056, %1057 : vector<8x16xf32>
    %1059 = math.tanh %1058 : vector<8x16xf32>
    %1060 = arith.mulf %1055, %1059 : vector<8x16xf32>
    %1061 = arith.select %1025, %1060, %989 : vector<8x16xi1>, vector<8x16xf32>
    %1062 = arith.select %1025, %1058, %990 : vector<8x16xi1>, vector<8x16xf32>
    %cst_283 = arith.constant 0.000000e+00 : f32
    %1063 = vector.broadcast %cst_283 : f32 to vector<8x16xf32>
    %1064 = arith.select %1025, %1060, %1063 : vector<8x16xi1>, vector<8x16xf32>
    %1065 = vector.extract_strided_slice %1035 {offsets = [0, 0], sizes = [8, 16], strides = [1, 1]} : vector<8x64xf32> to vector<8x16xf32>
    %1066 = arith.negf %1065 : vector<8x16xf32>
    %1067 = math.exp %1066 : vector<8x16xf32>
    %cst_284 = arith.constant 1.000000e+00 : f32
    %1068 = vector.broadcast %cst_284 : f32 to vector<8x16xf32>
    %1069 = arith.addf %1068, %1067 : vector<8x16xf32>
    %1070 = arith.divf %1068, %1069 : vector<8x16xf32>
    %1071 = vector.extract_strided_slice %1035 {offsets = [0, 16], sizes = [8, 16], strides = [1, 1]} : vector<8x64xf32> to vector<8x16xf32>
    %1072 = arith.negf %1071 : vector<8x16xf32>
    %1073 = math.exp %1072 : vector<8x16xf32>
    %cst_285 = arith.constant 1.000000e+00 : f32
    %1074 = vector.broadcast %cst_285 : f32 to vector<8x16xf32>
    %1075 = arith.addf %1074, %1073 : vector<8x16xf32>
    %1076 = arith.divf %1074, %1075 : vector<8x16xf32>
    %1077 = vector.extract_strided_slice %1035 {offsets = [0, 32], sizes = [8, 16], strides = [1, 1]} : vector<8x64xf32> to vector<8x16xf32>
    %1078 = math.tanh %1077 : vector<8x16xf32>
    %1079 = vector.extract_strided_slice %1035 {offsets = [0, 48], sizes = [8, 16], strides = [1, 1]} : vector<8x64xf32> to vector<8x16xf32>
    %1080 = arith.negf %1079 : vector<8x16xf32>
    %1081 = math.exp %1080 : vector<8x16xf32>
    %cst_286 = arith.constant 1.000000e+00 : f32
    %1082 = vector.broadcast %cst_286 : f32 to vector<8x16xf32>
    %1083 = arith.addf %1082, %1081 : vector<8x16xf32>
    %1084 = arith.divf %1082, %1083 : vector<8x16xf32>
    %1085 = arith.mulf %1076, %1019 : vector<8x16xf32>
    %1086 = arith.mulf %1070, %1078 : vector<8x16xf32>
    %1087 = arith.addf %1085, %1086 : vector<8x16xf32>
    %1088 = math.tanh %1087 : vector<8x16xf32>
    %1089 = arith.mulf %1084, %1088 : vector<8x16xf32>
    %1090 = arith.select %1027, %1089, %1018 : vector<8x16xi1>, vector<8x16xf32>
    %1091 = arith.select %1027, %1087, %1019 : vector<8x16xi1>, vector<8x16xf32>
    %cst_287 = arith.constant 0.000000e+00 : f32
    %1092 = vector.broadcast %cst_287 : f32 to vector<8x16xf32>
    %1093 = arith.select %1027, %1089, %1092 : vector<8x16xi1>, vector<8x16xf32>
    %c48_288 = arith.constant 48 : index
    %c0_289 = arith.constant 0 : index
    %1094 = vector.load %arg11[%c48_288, %c0_289] : memref<64x32xf32, #tpu.memory_space<vmem>>, vector<8x16xf32>
    tpu.vector_store %arg11[%c48_288, %c0_289], %1064 {strides = array<i32>} : memref<64x32xf32, #tpu.memory_space<vmem>>, vector<8x16xf32>,
    %c8_290 = arith.constant 8 : index
    %c16_291 = arith.constant 16 : index
    %1095 = vector.load %arg11[%c8_290, %c16_291] : memref<64x32xf32, #tpu.memory_space<vmem>>, vector<8x16xf32>
    tpu.vector_store %arg11[%c8_290, %c16_291], %1093 {strides = array<i32>} : memref<64x32xf32, #tpu.memory_space<vmem>>, vector<8x16xf32>,
    %c7_i32_292 = arith.constant 7 : i32
    %1096 = vector.broadcast %c7_i32_292 : i32 to vector<8x16xi32>
    %1097 = arith.cmpi sgt, %2, %1096 : vector<8x16xi32>
    %c0_i32_293 = arith.constant 0 : i32
    %1098 = vector.broadcast %c0_i32_293 : i32 to vector<8x16xi32>
    %1099 = arith.cmpi sgt, %2, %1098 : vector<8x16xi32>
    %1100 = tpu.concatenate %1061, %1090 in 1 : vector<8x16xf32>, vector<8x16xf32> -> vector<8x32xf32>
    %cst_294 = arith.constant dense<0.000000e+00> : vector<8x128xf32>
    %1101 = tpu.matmul %1100, %585, %cst_294 {dimension_numbers = #tpu.dot_dimension_numbers<[1], [0], [0], [1], [0, 0, 1, 1], [], []>} : vector<8x32xf32>, vector<32x128xf32>, vector<8x128xf32> -> vector<8x128xf32>
    %c56_295 = arith.constant 56 : index
    %c0_296 = arith.constant 0 : index
    %1102 = vector.load %arg12[%c56_295, %c0_296] : memref<64x128xf32, #tpu.memory_space<vmem>>, vector<8x64xf32>
    %1103 = vector.extract_strided_slice %1101 {offsets = [0, 0], sizes = [8, 64], strides = [1, 1]} : vector<8x128xf32> to vector<8x64xf32>
    %1104 = arith.addf %1102, %1103 : vector<8x64xf32>
    %c0_297 = arith.constant 0 : index
    %c64_298 = arith.constant 64 : index
    %1105 = vector.load %arg12[%c0_297, %c64_298] : memref<64x128xf32, #tpu.memory_space<vmem>>, vector<8x64xf32>
    %1106 = vector.extract_strided_slice %1101 {offsets = [0, 64], sizes = [8, 64], strides = [1, 1]} : vector<8x128xf32> to vector<8x64xf32>
    %1107 = arith.addf %1105, %1106 : vector<8x64xf32>
    %1108 = vector.extract_strided_slice %1104 {offsets = [0, 0], sizes = [8, 16], strides = [1, 1]} : vector<8x64xf32> to vector<8x16xf32>
    %1109 = arith.negf %1108 : vector<8x16xf32>
    %1110 = math.exp %1109 : vector<8x16xf32>
    %cst_299 = arith.constant 1.000000e+00 : f32
    %1111 = vector.broadcast %cst_299 : f32 to vector<8x16xf32>
    %1112 = arith.addf %1111, %1110 : vector<8x16xf32>
    %1113 = arith.divf %1111, %1112 : vector<8x16xf32>
    %1114 = vector.extract_strided_slice %1104 {offsets = [0, 16], sizes = [8, 16], strides = [1, 1]} : vector<8x64xf32> to vector<8x16xf32>
    %1115 = arith.negf %1114 : vector<8x16xf32>
    %1116 = math.exp %1115 : vector<8x16xf32>
    %cst_300 = arith.constant 1.000000e+00 : f32
    %1117 = vector.broadcast %cst_300 : f32 to vector<8x16xf32>
    %1118 = arith.addf %1117, %1116 : vector<8x16xf32>
    %1119 = arith.divf %1117, %1118 : vector<8x16xf32>
    %1120 = vector.extract_strided_slice %1104 {offsets = [0, 32], sizes = [8, 16], strides = [1, 1]} : vector<8x64xf32> to vector<8x16xf32>
    %1121 = math.tanh %1120 : vector<8x16xf32>
    %1122 = vector.extract_strided_slice %1104 {offsets = [0, 48], sizes = [8, 16], strides = [1, 1]} : vector<8x64xf32> to vector<8x16xf32>
    %1123 = arith.negf %1122 : vector<8x16xf32>
    %1124 = math.exp %1123 : vector<8x16xf32>
    %cst_301 = arith.constant 1.000000e+00 : f32
    %1125 = vector.broadcast %cst_301 : f32 to vector<8x16xf32>
    %1126 = arith.addf %1125, %1124 : vector<8x16xf32>
    %1127 = arith.divf %1125, %1126 : vector<8x16xf32>
    %1128 = arith.mulf %1119, %1062 : vector<8x16xf32>
    %1129 = arith.mulf %1113, %1121 : vector<8x16xf32>
    %1130 = arith.addf %1128, %1129 : vector<8x16xf32>
    %1131 = math.tanh %1130 : vector<8x16xf32>
    %1132 = arith.mulf %1127, %1131 : vector<8x16xf32>
    %cst_302 = arith.constant 0.000000e+00 : f32
    %1133 = vector.broadcast %cst_302 : f32 to vector<8x16xf32>
    %1134 = arith.select %1097, %1132, %1133 : vector<8x16xi1>, vector<8x16xf32>
    %1135 = vector.extract_strided_slice %1107 {offsets = [0, 0], sizes = [8, 16], strides = [1, 1]} : vector<8x64xf32> to vector<8x16xf32>
    %1136 = arith.negf %1135 : vector<8x16xf32>
    %1137 = math.exp %1136 : vector<8x16xf32>
    %cst_303 = arith.constant 1.000000e+00 : f32
    %1138 = vector.broadcast %cst_303 : f32 to vector<8x16xf32>
    %1139 = arith.addf %1138, %1137 : vector<8x16xf32>
    %1140 = arith.divf %1138, %1139 : vector<8x16xf32>
    %1141 = vector.extract_strided_slice %1107 {offsets = [0, 16], sizes = [8, 16], strides = [1, 1]} : vector<8x64xf32> to vector<8x16xf32>
    %1142 = arith.negf %1141 : vector<8x16xf32>
    %1143 = math.exp %1142 : vector<8x16xf32>
    %cst_304 = arith.constant 1.000000e+00 : f32
    %1144 = vector.broadcast %cst_304 : f32 to vector<8x16xf32>
    %1145 = arith.addf %1144, %1143 : vector<8x16xf32>
    %1146 = arith.divf %1144, %1145 : vector<8x16xf32>
    %1147 = vector.extract_strided_slice %1107 {offsets = [0, 32], sizes = [8, 16], strides = [1, 1]} : vector<8x64xf32> to vector<8x16xf32>
    %1148 = math.tanh %1147 : vector<8x16xf32>
    %1149 = vector.extract_strided_slice %1107 {offsets = [0, 48], sizes = [8, 16], strides = [1, 1]} : vector<8x64xf32> to vector<8x16xf32>
    %1150 = arith.negf %1149 : vector<8x16xf32>
    %1151 = math.exp %1150 : vector<8x16xf32>
    %cst_305 = arith.constant 1.000000e+00 : f32
    %1152 = vector.broadcast %cst_305 : f32 to vector<8x16xf32>
    %1153 = arith.addf %1152, %1151 : vector<8x16xf32>
    %1154 = arith.divf %1152, %1153 : vector<8x16xf32>
    %1155 = arith.mulf %1146, %1091 : vector<8x16xf32>
    %1156 = arith.mulf %1140, %1148 : vector<8x16xf32>
    %1157 = arith.addf %1155, %1156 : vector<8x16xf32>
    %1158 = math.tanh %1157 : vector<8x16xf32>
    %1159 = arith.mulf %1154, %1158 : vector<8x16xf32>
    %cst_306 = arith.constant 0.000000e+00 : f32
    %1160 = vector.broadcast %cst_306 : f32 to vector<8x16xf32>
    %1161 = arith.select %1099, %1159, %1160 : vector<8x16xi1>, vector<8x16xf32>
    %c56_307 = arith.constant 56 : index
    %c0_308 = arith.constant 0 : index
    %1162 = vector.load %arg11[%c56_307, %c0_308] : memref<64x32xf32, #tpu.memory_space<vmem>>, vector<8x16xf32>
    tpu.vector_store %arg11[%c56_307, %c0_308], %1134 {strides = array<i32>} : memref<64x32xf32, #tpu.memory_space<vmem>>, vector<8x16xf32>,
    %c0_309 = arith.constant 0 : index
    %c16_310 = arith.constant 16 : index
    %1163 = vector.load %arg11[%c0_309, %c16_310] : memref<64x32xf32, #tpu.memory_space<vmem>>, vector<8x16xf32>
    tpu.vector_store %arg11[%c0_309, %c16_310], %1161 {strides = array<i32>} : memref<64x32xf32, #tpu.memory_space<vmem>>, vector<8x16xf32>,
    %c0_311 = arith.constant 0 : index
    %c0_312 = arith.constant 0 : index
    %1164 = vector.load %arg11[%c0_311, %c0_312] : memref<64x32xf32, #tpu.memory_space<vmem>>, vector<64x32xf32>
    %c0_313 = arith.constant 0 : index
    %c0_314 = arith.constant 0 : index
    %1165 = vector.load %arg8[%c0_313, %c0_314] : memref<32x128xf32, #tpu.memory_space<vmem>>, vector<32x128xf32>
    %cst_315 = arith.constant dense<0.000000e+00> : vector<64x128xf32>
    %1166 = tpu.matmul %1164, %1165, %cst_315 {dimension_numbers = #tpu.dot_dimension_numbers<[1], [0], [0], [1], [0, 0, 1, 1], [], []>} : vector<64x32xf32>, vector<32x128xf32>, vector<64x128xf32> -> vector<64x128xf32>
    %c0_316 = arith.constant 0 : index
    %c0_317 = arith.constant 0 : index
    %1167 = vector.load %arg9[%c0_316, %c0_317] : memref<1x128xf32, #tpu.memory_space<vmem>>, vector<1x128xf32>
    %1168 = vector.broadcast %1167 : vector<1x128xf32> to vector<64x128xf32>
    %1169 = arith.addf %1166, %1168 : vector<64x128xf32>
    %c0_318 = arith.constant 0 : index
    %c0_319 = arith.constant 0 : index
    %1170 = vector.load %arg10[%c0_318, %c0_319] : memref<64x128xf32, #tpu.memory_space<vmem>>, vector<64x128xf32>
    tpu.vector_store %arg10[%c0_318, %c0_319], %1169 {strides = array<i32>} : memref<64x128xf32, #tpu.memory_space<vmem>>, vector<64x128xf32>,
    return
  }
}

</mosaic_0001>

<bundles_post_ra>
// kernel: tpu_custom_call.1
= control target key start
LH: loop header
LB: loop body
LE: loop exit
PB: predicated region body
PF: predicated region fallthrough
CT: control target
= control target key end

     0   :  { %15 = vsyncpa [#allocation5], 0  ;;  %s4753_s0 = inlined_call_operand.vmem [shape: s32[8,1], index: 0, kind: input, shape index: {}]   ;;  %s4754_s1 = inlined_call_operand.vmem [shape: f32[64,16], index: 1, kind: input, shape index: {}]   ;;  %s4755_s2 = inlined_call_operand.hbm [shape: f32[16,128], index: 2, kind: input, shape index: {}]   ;;  %s4756_s3 = inlined_call_operand.vmem [shape: f32[32,128], index: 3, kind: input, shape index: {}]   ;;  %s4757_s4 = inlined_call_operand.vmem [shape: f32[1,128], index: 4, kind: input, shape index: {}]   ;;  %s4758_s5 = inlined_call_operand.vmem [shape: f32[32,128], index: 5, kind: input, shape index: {}]   ;;  %s4759_s6 = inlined_call_operand.vmem [shape: f32[32,128], index: 6, kind: input, shape index: {}]   ;;  %s4760_s7 = inlined_call_operand.vmem [shape: f32[1,128], index: 7, kind: input, shape index: {}]   ;;  %s4761_s8 = inlined_call_operand.hbm [shape: f32[32,128], index: 8, kind: input, shape index: {}]   ;;  %s4762_s9 = inlined_call_operand.vmem [shape: f32[1,128], index: 9, kind: input, shape index: {}]   ;;  %s4763_s10 = inlined_call_operand.hbm [shape: f32[64,128], index: 10, kind: output, shape index: {}]  }
   0x1   :  { %16 = vsyncpa [#allocation8], 0 }
   0x2   :  { %17 = vsyncpa [#allocation6], 0  ;;  %s3801_s13 = smov [#allocation4]   ;;  %s3729_s17 = scalar_lea.hbm %s4755_s2, 256 }
   0x3   :  { %s27_s14 = sshll.u32 %s3801_s13, 4  ;;  %p3730_p0 = scmp.ne.s32.totalorder %s4755_s2, %s3729_s17  ;;  %s28_s14 = int_to_ptr.vmem [resolvable:$true] %s27_s14 }
   0x4   :  { %p3733_p1 = scmp.lt.u32.totalorder %s3729_s17, %s4755_s2 }
   0x6   :  { %p3735_p2 = pnand %p3733_p1, %p3730_p0 }
   0x8   :  { %3738 = shalt.err (!%p3735_p2)
}
   0x9   :  { %s3739_s22 = scalar_lea.vmem %s28_s14, 256  ;;  %p3744_p4 = scmp.lt.s32.totalorder %s28_s14, %s28_s14 }
   0xa   :  { %p3740_p3 = scmp.ne.s32.totalorder %s28_s14, %s3739_s22  ;;  %p3745_p5 = scmp.lt.s32.totalorder %s3739_s22, %s3739_s22 }
   0xc   :  { %p3746_p6 = por %p3745_p5, %p3744_p4 }
   0xe   :  { %p3747_p7 = pnand %p3746_p6, %p3740_p3 }
  0x10   :  { %3750 = shalt.err (!%p3747_p7)
}
  0x11   :  { %s3802_s23 = smov 128   ;;  %s3803_s24 = smov 8  }
  0x12   :  { %33 = dma.hbm_to_vmem [thread:$0]  %s4755_s2, 256, %s28_s14, [#allocation5], %s3802_s23, %s3802_s23, %s3803_s24  }
  0x13   :  { %s3804_s27 = smov [#allocation7]   ;;  %s3751_s11 = scalar_lea.hbm %s4761_s8, 512 }
  0x14   :  { %s49_s28 = sshll.u32 %s3804_s27, 4  ;;  %p3752_p8 = scmp.ne.s32.totalorder %s4761_s8, %s3751_s11  ;;  %s50_s28 = int_to_ptr.vmem [resolvable:$true] %s49_s28 }
  0x15   :  { %p3755_p9 = scmp.lt.u32.totalorder %s3751_s11, %s4761_s8 }
  0x17   :  { %p3757_p10 = pnand %p3755_p9, %p3752_p8 }
  0x19   :  { %3760 = shalt.err (!%p3757_p10)
}
  0x1a   :  { %s3761_s17 = scalar_lea.vmem %s50_s28, 512  ;;  %p3766_p12 = scmp.lt.s32.totalorder %s50_s28, %s50_s28 }
  0x1b   :  { %p3762_p11 = scmp.ne.s32.totalorder %s50_s28, %s3761_s17  ;;  %p3767_p13 = scmp.lt.s32.totalorder %s3761_s17, %s3761_s17 }
  0x1d   :  { %p3768_p0 = por %p3767_p13, %p3766_p12 }
  0x1f   :  { %p3769_p1 = pnand %p3768_p0, %p3762_p11 }
  0x21   :  { %3772 = shalt.err (!%p3769_p1)
}
  0x22   :  { %55 = dma.hbm_to_vmem [thread:$0]  %s4761_s8, 512, %s50_s28, [#allocation8], %s3802_s23, %s3802_s23, %s3803_s24  }
  0x23   :  { %3795 = dma.done.wait [#allocation5], 256  }
  0x24   :  { %3796 = vsyncadd [#allocation5], 4294967040 }
  0x25   :  { %3797 = dma.done.wait [#allocation8], 512  }
  0x26   :  { %3798 = vsyncadd [#allocation8], 4294966784  ;;  %vm89_vm0 = vcmask 130048   ;;  %v68_v0 = vld [vmem:[#allocation4] sm:$0xff]  ;;  %v69_v1 = vld [vmem:[#allocation4 + $0x8] sm:$0xff]  ;;  %v3805_v10 = vmov 0.0|0.0  }
  0x27   :  { %v79_v2 = vld [vmem:[%s4754_s1 + $0x20] sm:$0xff]  ;;  %v3341_v3 = vpack.c.bf16 %v69_v1, %v68_v0  ;;  %v71_v5 = vld [vmem:[%s4756_s3 + $0x8] sm:$0xff]  ;;  %v81_v11 = vld [vmem:[%s4754_s1 + $0x30] sm:$0xff]  ;;  %vm3806_vm1 = vmmov 0   ;;  %v3807_v16 = vmov 0.0   ;;  %v3808_v17 = vmov 0  }
  0x28   :  { %3119 = vmatprep.mubr.msk.f32.mxu1 %vm89_vm0, %v79_v2  ;;  %v70_v4 = vld [vmem:[%s4756_s3] sm:$0xff]  ;;  %v80_v7 = vld [vmem:[%s4754_s1 + $0x28] sm:$0xff]  ;;  %v72_v12 = vld [vmem:[%s4756_s3 + $0x10] sm:$0xff]  ;;  %3472 = vset.pattern.permute.xlu0 %v3808_v17  ;;  %s3810_s21 = smov 16   ;;  %s3812_s22 = smov 80   ;;  %vm368_vm4 = vcmask 261248  }
  0x29   :  { %v75_v6 = vld [vmem:[%s4754_s1] sm:$0xff]  ;;  %3457 = vmatprep.subr.bf16.mxu1 %v3341_v3  ;;  %3342 = vmatprep.subr.bf16.mxu0 %v3341_v3  ;;  %v3915_v8 = vpack.c.bf16 %v71_v5, %v70_v4  ;;  %v76_v9 = vld [vmem:[%s4754_s1 + $0x8] sm:$0xff]  ;;  %v73_v13 = vld [vmem:[%s4756_s3 + $0x18] sm:$0xff]  ;;  %vm229_vm5 = vcmask 261120  }
  0x2a   :  { %3458 = vmatpush3.bf16.msra.mxu1 %v3341_v3  ;;  %3344 = vmatpush3.bf16.msra.mxu0 %v3341_v3  ;;  %v82_v14 = vld [vmem:[%s4754_s1 + $0x38] sm:$0xff]  ;;  %v3939_v15 = vpack.c.bf16 %v73_v13, %v72_v12  ;;  %v3967_v22 = vld [vmem:[%s4757_s4] ss:$0 sm:$0xff]  ;;  %s3809_s4 = smov 96  }
  0x2b   :  { %3345 = vmatprep.subr.bf16.mxu1 %v3805_v10  ;;  %3113 = vmatprep.mubr.msk.f32.mxu0 %vm89_vm0, %v75_v6  ;;  %v64_v33 = vld [vmem:[%s4753_s0] sm:$0xff]  ;;  %s3811_s0 = smov 32  }
  0x2c   :  { %3357 = vmatprep.subr.bf16.mxu0 %v3805_v10 }
  0x2d   :  { %3120 = vmatmul.mubr.msk.f32.vlgmr.msra.gmra.mrb[0].mxu1 %vm89_vm0, %v80_v7  ;;  %3114 = vmatmul.mubr.msk.f32.vlgmr.msra.gmra.mrb[0].mxu0 %vm89_vm0, %v76_v9 }
  0x2e   :  { %3347 = vmatpush3.bf16.msra.mxu1 %v3915_v8  ;;  %3122 = vmatprep.mubr.msk.f32.mxu1 %vm89_vm0, %v81_v11 }
  0x2f   :  { %3348 = vmatprep.subr.bf16.mxu1 %v3805_v10  ;;  %3359 = vmatpush3.bf16.msra.mxu0 %v3915_v8 }
  0x30   :  { %3360 = vmatprep.subr.bf16.mxu0 %v3805_v10 }
  0x31   :  { %3123 = vmatmul.mubr.msk.f32.gmra.mrb[2].mxu1 %vm89_vm0, %v82_v14 }
  0x32   :  { %3350 = vmatpush3.bf16.msra.mxu1 %v3939_v15  ;;  %3133 = vmatprep.mubr.msk.f32.mxu1 %vm3806_vm1, %v3807_v16 }
  0x33   :  { %3351 = vmatprep.subr.bf16.mxu1 %v3805_v10  ;;  %3362 = vmatpush3.bf16.msra.mxu0 %v3939_v15 }
  0x34   :  { %3369 = vmatprep.subr.bf16.mxu0 %v3805_v10 }
  0x35   :  { %3134 = vmatmul.mubr.f32.vlgmr.msra.gmra.mrb[4].mxu1 %v3807_v16 }
  0x36   :  { %3353 = vmatpush3.bf16.msra.mxu1 %v3915_v8  ;;  %3144 = vmatprep.mubr.msk.f32.mxu1 %vm3806_vm1, %v3807_v16 }
  0x37   :  { %3354 = vmatprep.subr.bf16.mxu1 %v3805_v10 }
  0x3a   :  { %3356 = vmatpush3.bf16.msra.mxu1 %v3939_v15 }
  0x3b   :  { %3363 = vmatprep.subr.bf16.mxu1 %v3805_v10 }
 0x100   :  { %v3958_v18 = vpop.f32.mrb[0].mxu1  ;;  %v3960_v19 = vpop.f32.mrb[0].mxu0 }
 0x101   :  { %v3962_v20 = vpop.f32.mrb[1].mxu1  ;;  %v180_v21 = vpop.f32.mrb[1].mxu0  ;;  %v4022_v0 = vadd.f32 %v3960_v19, %v3967_v22 }
 0x102   :  { %v3972_v25 = vadd.f32 %v3967_v22, %v180_v21 }
 0x104   :  { %v3124_v23 = vpop.f32.mrb[2].mxu1 }
 0x105   :  { %v3969_v24 = vpop.f32.mrb[3].mxu1  ;;  %v3975_v27 = vadd.f32 %v3124_v23, %v3967_v22 }
 0x106   :  { %v4026_v1 = vadd.f32 %v3967_v22, %v3969_v24 }
 0x108   :  { %v299_v26 = vpop.f32.mrb[4].mxu1 }
 0x109   :  { %v304_v28 = vadd.f32 %v299_v26, %v3972_v25  ;;  %v3135_v29 = vpop.f32.mrb[5].mxu1  ;;  %v306_v30 = vadd.f32 %v299_v26, %v3975_v27 }
 0x10b   :  { %3473 = vtanh.f32 %v304_v28  ;;  %v2931_v34 = vmul.f32 -1.442695, %v304_v28  ;;  %v2932_v35 = vmul.f32 -1.442695, %v306_v30 }
 0x10c   :  { %3475 = vtanh.f32 %v306_v30 }
 0x10d   :  { %3477 = vpow2.f32 %v2931_v34 }
 0x10e   :  { %3479 = vpow2.f32 %v2932_v35 }
 0x115   :  { %v3474_v31 = vpop.eup %3473 }
 0x116   :  { %316 = vrot.lane.b32.xlu0 %v3474_v31, %s3809_s4  ;;  %v3476_v32 = vpop.eup %3475 }
 0x117   :  { %v3478_v36 = vpop.eup %3477 }
 0x118   :  { %v310_v37 = vadd.f32 1.0, %v3478_v36  ;;  %v3480_v38 = vpop.eup %3479 }
 0x119   :  { %v336_v39 = vadd.f32 1.0, %v3480_v38  ;;  %v78_v38 = vld [vmem:[%s4754_s1 + $0x18] sm:$0xff] }
 0x11a   :  { %342 = vrot.lane.b32.xlu0 %v3476_v32, %s3809_s4  ;;  %3481 = vrcp.f32 %v310_v37  ;;  %v77_v37 = vld [vmem:[%s4754_s1 + $0x10] sm:$0xff] }
 0x11b   :  { %3483 = vrcp.f32 %v336_v39  ;;  %3116 = vmatprep.mubr.msk.f32.mxu0 %vm89_vm0, %v77_v37 }
 0x11c   :  { %3117 = vmatmul.mubr.msk.f32.gmra.mrb[2].mxu0 %vm89_vm0, %v78_v38  ;;  %v4157_v38 = vadd.f32 %v3967_v22, %v3962_v20 }
 0x11d   :  { %3155 = vmatprep.mubr.msk.f32.mxu0 %vm3806_vm1, %v3807_v16 }
 0x11e   :  { %66 = vperm.xlu0 %3472, %v64_v33  }
 0x124   :  { %v3482_v40 = vpop.eup %3481 }
 0x125   :  { %v3484_v43 = vpop.eup %3483  ;;  %v314_v46 = vmul.f32 0.0, %v3482_v40 }
 0x126   :  { %v340_v49 = vmul.f32 0.0, %v3484_v43 }
 0x188   :  { %v317_v41 = vpop.permute.xlu0 %316 }
 0x189   :  { %v319_v42 = vmul.f32 %v3482_v40, %v317_v41 }
 0x18b   :  { %321 = vrot.lane.b32.xlu1 %v319_v42, %s3810_s21 }
 0x18c   :  { %v343_v44 = vpop.permute.xlu0 %342 }
 0x18d   :  { %v345_v45 = vmul.f32 %v3484_v43, %v343_v44 }
 0x18f   :  { %347 = vrot.lane.b32.xlu1 %v345_v45, %s3810_s21 }
 0x19d   :  { %v3994_v54 = vpop.permute.xlu0 %66 }
 0x19e   :  { %vm227_vm2 = vcmp.gt.s32.totalorder %v3994_v54, 0  ;;  %vm228_vm3 = vcmp.gt.s32.totalorder %v3994_v54, 7  ;;  %vm370_vm6 = vcmp.gt.s32.totalorder %v3994_v54, 1  ;;  %vm371_vm7 = vcmp.gt.s32.totalorder %v3994_v54, 6 }
 0x19f   :  { %vm514_vm8 = vcmp.gt.s32.totalorder %v3994_v54, 2  ;;  %vm515_vm9 = vcmp.gt.s32.totalorder %v3994_v54, 5  ;;  %vm666_vm10 = vcmp.gt.s32.totalorder %v3994_v54, 3  ;;  %vm667_vm11 = vcmp.gt.s32.totalorder %v3994_v54, 4 }
 0x1fd   :  { %v322_v47 = vpop.permute.xlu1 %321 }
 0x1fe   :  { %v3986_v48 = vadd.f32 %v322_v47, %v314_v46  ;;  %v4086_v47 = vpop.f32.mrb[2].mxu0 }
 0x200   :  { %3485 = vtanh.f32 %v3986_v48  ;;  %v4037_v29 = vsel %vm227_vm2, %v3986_v48, 0.0  ;;  %v190_v48 = vpop.f32.mrb[3].mxu0 }
 0x201   :  { %v348_v50 = vpop.permute.xlu1 %347 }
 0x202   :  { %v3989_v51 = vadd.f32 %v348_v50, %v340_v49 }
 0x204   :  { %3487 = vtanh.f32 %v3989_v51  ;;  %v4042_v30 = vsel %vm228_vm3, %v3989_v51, 0.0 }
 0x20a   :  { %v3486_v52 = vpop.eup %3485 }
 0x20b   :  { %327 = vrot.lane.b32.xlu1 %v3486_v52, %s3811_s0  ;;  %v4098_v52 = vadd.f32 %v3958_v18, %v3967_v22 }
 0x20e   :  { %v3488_v53 = vpop.eup %3487 }
 0x20f   :  { %353 = vrot.lane.b32.xlu1 %v3488_v53, %s3811_s0  ;;  %v4101_v53 = vadd.f32 %v3967_v22, %v190_v48 }
 0x27d   :  { %v328_v55 = vpop.permute.xlu1 %327 }
 0x27e   :  { %v330_v56 = vmul.f32 %v3482_v40, %v328_v55 }
 0x280   :  { %v3999_v57 = vsel %vm227_vm2, %v330_v56, 0.0 }
 0x281   :  { %v354_v58 = vpop.permute.xlu1 %353  ;;  %360 = vrot.lane.b32.xlu0 %v3999_v57, %s3812_s22 }
 0x282   :  { %v356_v59 = vmul.f32 %v3484_v43, %v354_v58 }
 0x284   :  { %v4006_v60 = vsel %vm228_vm3, %v356_v59, 0.0 }
 0x285   :  { %365 = vrot.lane.b32.xlu1 %v4006_v60, %s3811_s0 }
 0x2f3   :  { %v361_v61 = vpop.permute.xlu0 %360 }
 0x2f4   :  { %363 = vst.msk [vmem:[#allocation2] sm:$0xff] %vm89_vm0, %v361_v61 }
 0x2f7   :  { %v366_v62 = vpop.permute.xlu1 %365 }
 0x2f8   :  { %369 = vst.msk [vmem:[#allocation2 + $0x38] sm:$0xff] %vm368_vm4, %v366_v62  ;;  %v372_v63 = vsel %vm89_vm0, %v361_v61, %v366_v62 }
 0x2f9   :  { %3145 = vmatmul.mubr.msk.f32.vlgmr.msra.gmra.mrb[6].mxu1 %vm229_vm5, %v372_v63 }
 0x2fa   :  { %3365 = vmatpush3.bf16.msra.mxu1 %v3915_v8  ;;  %3166 = vmatprep.mubr.msk.f32.mxu1 %vm3806_vm1, %v3807_v16 }
 0x2fb   :  { %3366 = vmatprep.subr.bf16.mxu1 %v3805_v10 }
 0x2fe   :  { %3368 = vmatpush3.bf16.msra.mxu1 %v3939_v15 }
 0x2ff   :  { %3375 = vmatprep.subr.bf16.mxu1 %v3805_v10 }
 0x3cc   :  { %v442_v2 = vpop.f32.mrb[6].mxu1 }
 0x3cd   :  { %v447_v3 = vadd.f32 %v442_v2, %v4022_v0  ;;  %v449_v4 = vadd.f32 %v442_v2, %v4026_v1  ;;  %v3146_v5 = vpop.f32.mrb[7].mxu1 }
 0x3cf   :  { %3489 = vtanh.f32 %v447_v3  ;;  %v2934_v9 = vmul.f32 -1.442695, %v447_v3  ;;  %v2935_v11 = vmul.f32 -1.442695, %v449_v4 }
 0x3d0   :  { %3491 = vtanh.f32 %v449_v4 }
 0x3d1   :  { %3493 = vpow2.f32 %v2934_v9 }
 0x3d2   :  { %3495 = vpow2.f32 %v2935_v11 }
 0x3d9   :  { %v3490_v6 = vpop.eup %3489 }
 0x3da   :  { %v3492_v7 = vpop.eup %3491  ;;  %459 = vrot.lane.b32.xlu0 %v3490_v6, %s3809_s4 }
 0x3db   :  { %486 = vrot.lane.b32.xlu1 %v3492_v7, %s3809_s4  ;;  %v3494_v12 = vpop.eup %3493 }
 0x3dc   :  { %v3496_v13 = vpop.eup %3495  ;;  %v453_v14 = vadd.f32 1.0, %v3494_v12 }
 0x3dd   :  { %v480_v17 = vadd.f32 1.0, %v3496_v13 }
 0x3de   :  { %3497 = vrcp.f32 %v453_v14 }
 0x3df   :  { %3499 = vrcp.f32 %v480_v17 }
 0x3e8   :  { %v3498_v19 = vpop.eup %3497 }
 0x3e9   :  { %v3500_v23 = vpop.eup %3499  ;;  %v457_v31 = vmul.f32 %v3498_v19, %v4037_v29 }
 0x3ea   :  { %v484_v32 = vmul.f32 %v3500_v23, %v4042_v30 }
 0x44c   :  { %v460_v21 = vpop.permute.xlu0 %459 }
 0x44d   :  { %v487_v24 = vpop.permute.xlu1 %486  ;;  %v462_v26 = vmul.f32 %v3498_v19, %v460_v21 }
 0x44e   :  { %v489_v28 = vmul.f32 %v3500_v23, %v487_v24 }
 0x44f   :  { %464 = vrot.lane.b32.xlu0 %v462_v26, %s3810_s21 }
 0x450   :  { %491 = vrot.lane.b32.xlu1 %v489_v28, %s3810_s21 }
 0x4c1   :  { %v465_v33 = vpop.permute.xlu0 %464 }
 0x4c2   :  { %v492_v34 = vpop.permute.xlu1 %491  ;;  %v4046_v35 = vadd.f32 %v465_v33, %v457_v31 }
 0x4c3   :  { %v4048_v36 = vadd.f32 %v492_v34, %v484_v32 }
 0x4c4   :  { %3501 = vtanh.f32 %v4046_v35  ;;  %v4113_v12 = vsel %vm370_vm6, %v4046_v35, %v4037_v29 }
 0x4c5   :  { %3503 = vtanh.f32 %v4048_v36  ;;  %v4119_v13 = vsel %vm371_vm7, %v4048_v36, %v4042_v30 }
 0x4ce   :  { %v3502_v39 = vpop.eup %3501 }
 0x4cf   :  { %v3504_v40 = vpop.eup %3503  ;;  %470 = vrot.lane.b32.xlu0 %v3502_v39, %s3811_s0  ;;  %v4161_v39 = vadd.f32 %v4086_v47, %v3967_v22 }
 0x4d0   :  { %497 = vrot.lane.b32.xlu1 %v3504_v40, %s3811_s0 }
 0x541   :  { %v471_v41 = vpop.permute.xlu0 %470 }
 0x542   :  { %v498_v42 = vpop.permute.xlu1 %497  ;;  %v4064_v43 = vmul.f32 %v3498_v19, %v471_v41 }
 0x543   :  { %v4067_v44 = vmul.f32 %v3500_v23, %v498_v42 }
 0x544   :  { %v4074_v45 = vsel %vm370_vm6, %v4064_v43, %v3999_v57 }
 0x545   :  { %v4080_v46 = vsel %vm371_vm7, %v4067_v44, %v4006_v60  ;;  %517 = vrot.lane.b32.xlu0 %v4074_v45, %s3812_s22 }
 0x546   :  { %521 = vrot.lane.b32.xlu1 %v4080_v46, %s3811_s0 }
 0x5b7   :  { %v518_v49 = vpop.permute.xlu0 %517 }
 0x5b8   :  { %v522_v50 = vpop.permute.xlu1 %521 }
 0x5b9   :  { %v524_v51 = vsel %vm89_vm0, %v518_v49, %v522_v50 }
 0x5ba   :  { %3156 = vmatmul.mubr.msk.f32.vlgmr.msra.gmra.mrb[4].mxu0 %vm229_vm5, %v524_v51 }
 0x5bb   :  { %3371 = vmatpush3.bf16.msra.mxu0 %v3915_v8  ;;  %3177 = vmatprep.mubr.msk.f32.mxu0 %vm3806_vm1, %v3807_v16 }
 0x5bc   :  { %3372 = vmatprep.subr.bf16.mxu0 %v3805_v10 }
 0x5bf   :  { %3374 = vmatpush3.bf16.msra.mxu0 %v3939_v15 }
 0x5c0   :  { %3381 = vmatprep.subr.bf16.mxu0 %v3805_v10 }
 0x68d   :  { %v594_v55 = vpop.f32.mrb[4].mxu0 }
 0x68e   :  { %v599_v56 = vadd.f32 %v594_v55, %v4101_v53  ;;  %v601_v57 = vadd.f32 %v594_v55, %v4098_v52  ;;  %v3157_v58 = vpop.f32.mrb[5].mxu0 }
 0x690   :  { %3505 = vtanh.f32 %v599_v56  ;;  %v2937_v61 = vmul.f32 -1.442695, %v599_v56  ;;  %v2938_v18 = vmul.f32 -1.442695, %v601_v57 }
 0x691   :  { %3507 = vtanh.f32 %v601_v57 }
 0x692   :  { %3509 = vpow2.f32 %v2937_v61 }
 0x693   :  { %3511 = vpow2.f32 %v2938_v18 }
 0x69a   :  { %v3506_v59 = vpop.eup %3505 }
 0x69b   :  { %v3508_v60 = vpop.eup %3507  ;;  %611 = vrot.lane.b32.xlu0 %v3506_v59, %s3809_s4 }
 0x69c   :  { %638 = vrot.lane.b32.xlu1 %v3508_v60, %s3809_s4  ;;  %v3510_v62 = vpop.eup %3509 }
 0x69d   :  { %v3512_v63 = vpop.eup %3511  ;;  %v605_v2 = vadd.f32 1.0, %v3510_v62 }
 0x69e   :  { %v632_v3 = vadd.f32 1.0, %v3512_v63 }
 0x69f   :  { %3513 = vrcp.f32 %v605_v2 }
 0x6a0   :  { %3515 = vrcp.f32 %v632_v3 }
 0x6a9   :  { %v3514_v4 = vpop.eup %3513 }
 0x6aa   :  { %v3516_v6 = vpop.eup %3515  ;;  %v609_v14 = vmul.f32 %v3514_v4, %v4113_v12 }
 0x6ab   :  { %v636_v17 = vmul.f32 %v3516_v6, %v4119_v13 }
 0x70d   :  { %v612_v5 = vpop.permute.xlu0 %611 }
 0x70e   :  { %v639_v7 = vpop.permute.xlu1 %638  ;;  %v614_v9 = vmul.f32 %v3514_v4, %v612_v5 }
 0x70f   :  { %v641_v11 = vmul.f32 %v3516_v6, %v639_v7 }
 0x710   :  { %616 = vrot.lane.b32.xlu0 %v614_v9, %s3810_s21 }
 0x711   :  { %643 = vrot.lane.b32.xlu1 %v641_v11, %s3810_s21 }
 0x782   :  { %v617_v19 = vpop.permute.xlu0 %616 }
 0x783   :  { %v644_v21 = vpop.permute.xlu1 %643  ;;  %v619_v23 = vadd.f32 %v617_v19, %v609_v14 }
 0x784   :  { %v646_v24 = vadd.f32 %v644_v21, %v636_v17 }
 0x785   :  { %3517 = vtanh.f32 %v619_v23  ;;  %v627_v61 = vsel %vm514_vm8, %v619_v23, %v4113_v12 }
 0x786   :  { %3519 = vtanh.f32 %v646_v24  ;;  %v654_v18 = vsel %vm515_vm9, %v646_v24, %v4119_v13 }
 0x78f   :  { %v3518_v26 = vpop.eup %3517 }
 0x790   :  { %v3520_v28 = vpop.eup %3519  ;;  %622 = vrot.lane.b32.xlu0 %v3518_v26, %s3811_s0 }
 0x791   :  { %649 = vrot.lane.b32.xlu1 %v3520_v28, %s3811_s0 }
 0x802   :  { %v623_v29 = vpop.permute.xlu0 %622 }
 0x803   :  { %v650_v31 = vpop.permute.xlu1 %649  ;;  %v4125_v30 = vmul.f32 %v3514_v4, %v623_v29 }
 0x804   :  { %v4128_v32 = vmul.f32 %v3516_v6, %v650_v31 }
 0x805   :  { %v4135_v33 = vsel %vm514_vm8, %v4125_v30, %v4074_v45 }
 0x806   :  { %v4141_v34 = vsel %vm515_vm9, %v4128_v32, %v4080_v46  ;;  %669 = vrot.lane.b32.xlu0 %v4135_v33, %s3812_s22 }
 0x807   :  { %673 = vrot.lane.b32.xlu1 %v4141_v34, %s3811_s0 }
 0x878   :  { %v670_v35 = vpop.permute.xlu0 %669 }
 0x879   :  { %v674_v36 = vpop.permute.xlu1 %673 }
 0x87a   :  { %v676_v37 = vsel %vm89_vm0, %v670_v35, %v674_v36 }
 0x87b   :  { %3167 = vmatmul.mubr.msk.f32.vlgmr.msra.gmra.mrb[8].mxu1 %vm229_vm5, %v676_v37 }
 0x87c   :  { %3377 = vmatpush3.bf16.msra.mxu1 %v3915_v8  ;;  %3188 = vmatprep.mubr.msk.f32.mxu1 %vm3806_vm1, %v3807_v16 }
 0x87d   :  { %3378 = vmatprep.subr.bf16.mxu1 %v3805_v10 }
 0x880   :  { %3380 = vmatpush3.bf16.msra.mxu1 %v3939_v15 }
 0x881   :  { %3387 = vmatprep.subr.bf16.mxu1 %v3805_v10 }
 0x94e   :  { %v746_v40 = vpop.f32.mrb[8].mxu1 }
 0x94f   :  { %v751_v41 = vadd.f32 %v746_v40, %v4161_v39  ;;  %v753_v42 = vadd.f32 %v746_v40, %v4157_v38  ;;  %v3168_v45 = vpop.f32.mrb[9].mxu1 }
 0x951   :  { %3521 = vtanh.f32 %v751_v41  ;;  %v2940_v20 = vmul.f32 -1.442695, %v751_v41  ;;  %v2941_v49 = vmul.f32 -1.442695, %v753_v42 }
 0x952   :  { %3523 = vtanh.f32 %v753_v42 }
 0x953   :  { %3525 = vpow2.f32 %v2940_v20 }
 0x954   :  { %3527 = vpow2.f32 %v2941_v49 }
 0x95b   :  { %v3522_v46 = vpop.eup %3521 }
 0x95c   :  { %v3524_v48 = vpop.eup %3523  ;;  %763 = vrot.lane.b32.xlu0 %v3522_v46, %s3809_s4 }
 0x95d   :  { %790 = vrot.lane.b32.xlu1 %v3524_v48, %s3809_s4  ;;  %v3526_v22 = vpop.eup %3525 }
 0x95e   :  { %v3528_v47 = vpop.eup %3527  ;;  %v757_v50 = vadd.f32 1.0, %v3526_v22 }
 0x95f   :  { %v784_v51 = vadd.f32 1.0, %v3528_v47 }
 0x960   :  { %3529 = vrcp.f32 %v757_v50 }
 0x961   :  { %3531 = vrcp.f32 %v784_v51 }
 0x96a   :  { %v3530_v55 = vpop.eup %3529 }
 0x96b   :  { %v3532_v57 = vpop.eup %3531  ;;  %v761_v62 = vmul.f32 %v3530_v55, %v627_v61 }
 0x96c   :  { %v788_v63 = vmul.f32 %v3532_v57, %v654_v18 }
 0x9ce   :  { %v764_v56 = vpop.permute.xlu0 %763 }
 0x9cf   :  { %v791_v58 = vpop.permute.xlu1 %790  ;;  %v766_v59 = vmul.f32 %v3530_v55, %v764_v56 }
 0x9d0   :  { %v793_v60 = vmul.f32 %v3532_v57, %v791_v58 }
 0x9d1   :  { %768 = vrot.lane.b32.xlu0 %v766_v59, %s3810_s21 }
 0x9d2   :  { %795 = vrot.lane.b32.xlu1 %v793_v60, %s3810_s21 }
 0xa43   :  { %v769_v2 = vpop.permute.xlu0 %768 }
 0xa44   :  { %v796_v3 = vpop.permute.xlu1 %795  ;;  %v771_v4 = vadd.f32 %v769_v2, %v761_v62 }
 0xa45   :  { %v798_v5 = vadd.f32 %v796_v3, %v788_v63 }
 0xa46   :  { %3533 = vtanh.f32 %v771_v4  ;;  %v779_v20 = vsel %vm666_vm10, %v771_v4, %v627_v61 }
 0xa47   :  { %3535 = vtanh.f32 %v798_v5  ;;  %v806_v49 = vsel %vm667_vm11, %v798_v5, %v654_v18 }
 0xa50   :  { %v3534_v6 = vpop.eup %3533 }
 0xa51   :  { %v3536_v7 = vpop.eup %3535  ;;  %774 = vrot.lane.b32.xlu0 %v3534_v6, %s3811_s0 }
 0xa52   :  { %801 = vrot.lane.b32.xlu1 %v3536_v7, %s3811_s0 }
 0xac3   :  { %v775_v9 = vpop.permute.xlu0 %774 }
 0xac4   :  { %v802_v11 = vpop.permute.xlu1 %801  ;;  %v4177_v12 = vmul.f32 %v3530_v55, %v775_v9 }
 0xac5   :  { %v4180_v13 = vmul.f32 %v3532_v57, %v802_v11 }
 0xac6   :  { %v778_v14 = vsel %vm666_vm10, %v4177_v12, %v4135_v33 }
 0xac7   :  { %v805_v17 = vsel %vm667_vm11, %v4180_v13, %v4141_v34  ;;  %819 = vrot.lane.b32.xlu0 %v778_v14, %s3812_s22 }
 0xac8   :  { %823 = vrot.lane.b32.xlu1 %v805_v17, %s3811_s0 }
 0xb39   :  { %v820_v19 = vpop.permute.xlu0 %819 }
 0xb3a   :  { %v824_v21 = vpop.permute.xlu1 %823 }
 0xb3b   :  { %v826_v23 = vsel %vm89_vm0, %v820_v19, %v824_v21 }
 0xb3c   :  { %3178 = vmatmul.mubr.msk.f32.vlgmr.msra.gmra.mrb[6].mxu0 %vm229_vm5, %v826_v23 }
 0xb3d   :  { %3383 = vmatpush3.bf16.msra.mxu0 %v3915_v8  ;;  %3199 = vmatprep.mubr.msk.f32.mxu0 %vm3806_vm1, %v3807_v16 }
 0xb3e   :  { %3384 = vmatprep.subr.bf16.mxu0 %v3805_v10 }
 0xb41   :  { %3386 = vmatpush3.bf16.msra.mxu0 %v3939_v15 }
 0xc0f   :  { %v896_v24 = vpop.f32.mrb[6].mxu0 }
 0xc10   :  { %v901_v26 = vadd.f32 %v896_v24, %v4157_v38  ;;  %v903_v28 = vadd.f32 %v896_v24, %v4161_v39  ;;  %v3179_v29 = vpop.f32.mrb[7].mxu0 }
 0xc12   :  { %3537 = vtanh.f32 %v901_v26  ;;  %v2943_v34 = vmul.f32 -1.442695, %v901_v26  ;;  %v2944_v35 = vmul.f32 -1.442695, %v903_v28 }
 0xc13   :  { %3539 = vtanh.f32 %v903_v28 }
 0xc14   :  { %3541 = vpow2.f32 %v2943_v34 }
 0xc15   :  { %3543 = vpow2.f32 %v2944_v35 }
 0xc1c   :  { %v3538_v31 = vpop.eup %3537 }
 0xc1d   :  { %v3540_v33 = vpop.eup %3539  ;;  %913 = vrot.lane.b32.xlu0 %v3538_v31, %s3809_s4 }
 0xc1e   :  { %940 = vrot.lane.b32.xlu1 %v3540_v33, %s3809_s4  ;;  %v3542_v36 = vpop.eup %3541 }
 0xc1f   :  { %v3544_v37 = vpop.eup %3543  ;;  %v907_v40 = vadd.f32 1.0, %v3542_v36 }
 0xc20   :  { %v934_v41 = vadd.f32 1.0, %v3544_v37 }
 0xc21   :  { %3545 = vrcp.f32 %v907_v40 }
 0xc22   :  { %3547 = vrcp.f32 %v934_v41 }
 0xc2b   :  { %v3546_v38 = vpop.eup %3545 }
 0xc2c   :  { %v3548_v42 = vpop.eup %3547  ;;  %v911_v22 = vmul.f32 %v3546_v38, %v779_v20 }
 0xc2d   :  { %v938_v47 = vmul.f32 %v3548_v42, %v806_v49 }
 0xc8f   :  { %v914_v39 = vpop.permute.xlu0 %913 }
 0xc90   :  { %v941_v45 = vpop.permute.xlu1 %940  ;;  %v916_v46 = vmul.f32 %v3546_v38, %v914_v39 }
 0xc91   :  { %v943_v48 = vmul.f32 %v3548_v42, %v941_v45 }
 0xc92   :  { %918 = vrot.lane.b32.xlu0 %v916_v46, %s3810_s21 }
 0xc93   :  { %945 = vrot.lane.b32.xlu1 %v943_v48, %s3810_s21 }
 0xd04   :  { %v919_v50 = vpop.permute.xlu0 %918 }
 0xd05   :  { %v946_v51 = vpop.permute.xlu1 %945  ;;  %v921_v55 = vadd.f32 %v919_v50, %v911_v22 }
 0xd06   :  { %v948_v56 = vadd.f32 %v946_v51, %v938_v47 }
 0xd07   :  { %3549 = vtanh.f32 %v921_v55  ;;  %v929_v31 = vsel %vm667_vm11, %v921_v55, %v779_v20 }
 0xd08   :  { %3551 = vtanh.f32 %v948_v56  ;;  %v956_v33 = vsel %vm666_vm10, %v948_v56, %v806_v49 }
 0xd11   :  { %v3550_v57 = vpop.eup %3549 }
 0xd12   :  { %v3552_v58 = vpop.eup %3551  ;;  %924 = vrot.lane.b32.xlu0 %v3550_v57, %s3811_s0 }
 0xd13   :  { %951 = vrot.lane.b32.xlu1 %v3552_v58, %s3811_s0 }
 0xd84   :  { %v925_v59 = vpop.permute.xlu0 %924 }
 0xd85   :  { %v952_v60 = vpop.permute.xlu1 %951  ;;  %v4212_v61 = vmul.f32 %v3546_v38, %v925_v59 }
 0xd86   :  { %v4214_v62 = vmul.f32 %v3548_v42, %v952_v60 }
 0xd87   :  { %v928_v18 = vsel %vm667_vm11, %v4212_v61, %v778_v14 }
 0xd88   :  { %v955_v63 = vsel %vm666_vm10, %v4214_v62, %v805_v17  ;;  %969 = vrot.lane.b32.xlu0 %v928_v18, %s3812_s22 }
 0xd89   :  { %973 = vrot.lane.b32.xlu1 %v955_v63, %s3811_s0 }
 0xdfa   :  { %v970_v2 = vpop.permute.xlu0 %969 }
 0xdfb   :  { %v974_v3 = vpop.permute.xlu1 %973 }
 0xdfc   :  { %v976_v4 = vsel %vm89_vm0, %v970_v2, %v974_v3 }
 0xdfd   :  { %3189 = vmatmul.mubr.msk.f32.vlgmr.msra.gmra.mrb[10].mxu1 %vm229_vm5, %v976_v4 }
 0xdfe   :  { %3389 = vmatpush3.bf16.msra.mxu1 %v3915_v8  ;;  %3210 = vmatprep.mubr.msk.f32.mxu1 %vm3806_vm1, %v3807_v16 }
 0xdff   :  { %3390 = vmatprep.subr.bf16.mxu1 %v3805_v10 }
 0xe02   :  { %3392 = vmatpush3.bf16.msra.mxu1 %v3939_v15 }
 0xe03   :  { %3401 = vmatprep.subr.bf16.mxu1 %v3805_v10 }
 0xed0   :  { %v1046_v5 = vpop.f32.mrb[10].mxu1 }
 0xed1   :  { %v1051_v6 = vadd.f32 %v1046_v5, %v4098_v52  ;;  %v1053_v7 = vadd.f32 %v1046_v5, %v4101_v53  ;;  %v3190_v9 = vpop.f32.mrb[11].mxu1 }
 0xed3   :  { %3553 = vtanh.f32 %v1051_v6  ;;  %v2946_v8 = vmul.f32 -1.442695, %v1051_v6  ;;  %v2947_v17 = vmul.f32 -1.442695, %v1053_v7 }
 0xed4   :  { %3555 = vtanh.f32 %v1053_v7 }
 0xed5   :  { %3557 = vpow2.f32 %v2946_v8 }
 0xed6   :  { %3559 = vpow2.f32 %v2947_v17 }
 0xedd   :  { %v3554_v11 = vpop.eup %3553 }
 0xede   :  { %v3556_v14 = vpop.eup %3555  ;;  %1063 = vrot.lane.b32.xlu0 %v3554_v11, %s3809_s4 }
 0xedf   :  { %1090 = vrot.lane.b32.xlu1 %v3556_v14, %s3809_s4  ;;  %v3558_v15 = vpop.eup %3557 }
 0xee0   :  { %v3560_v19 = vpop.eup %3559  ;;  %v1057_v21 = vadd.f32 1.0, %v3558_v15 }
 0xee1   :  { %v1084_v23 = vadd.f32 1.0, %v3560_v19 }
 0xee2   :  { %3561 = vrcp.f32 %v1057_v21 }
 0xee3   :  { %3563 = vrcp.f32 %v1084_v23 }
 0xeec   :  { %v3562_v52 = vpop.eup %3561 }
 0xeed   :  { %v3564_v24 = vpop.eup %3563  ;;  %v1061_v34 = vmul.f32 %v3562_v52, %v929_v31 }
 0xeee   :  { %v1088_v35 = vmul.f32 %v3564_v24, %v956_v33 }
 0xf50   :  { %v1064_v53 = vpop.permute.xlu0 %1063 }
 0xf51   :  { %v1091_v26 = vpop.permute.xlu1 %1090  ;;  %v1066_v28 = vmul.f32 %v3562_v52, %v1064_v53 }
 0xf52   :  { %v1093_v29 = vmul.f32 %v3564_v24, %v1091_v26 }
 0xf53   :  { %1068 = vrot.lane.b32.xlu0 %v1066_v28, %s3810_s21 }
 0xf54   :  { %1095 = vrot.lane.b32.xlu1 %v1093_v29, %s3810_s21 }
 0xfc5   :  { %v1069_v36 = vpop.permute.xlu0 %1068 }
 0xfc6   :  { %v1096_v37 = vpop.permute.xlu1 %1095  ;;  %v1071_v40 = vadd.f32 %v1069_v36, %v1061_v34 }
 0xfc7   :  { %v1098_v41 = vadd.f32 %v1096_v37, %v1088_v35 }
 0xfc8   :  { %3565 = vtanh.f32 %v1071_v40  ;;  %v1079_v11 = vsel %vm515_vm9, %v1071_v40, %v929_v31 }
 0xfc9   :  { %3567 = vtanh.f32 %v1098_v41  ;;  %v1106_v14 = vsel %vm514_vm8, %v1098_v41, %v956_v33 }
 0xfd2   :  { %v3566_v38 = vpop.eup %3565 }
 0xfd3   :  { %v3568_v39 = vpop.eup %3567  ;;  %1074 = vrot.lane.b32.xlu0 %v3566_v38, %s3811_s0 }
 0xfd4   :  { %1101 = vrot.lane.b32.xlu1 %v3568_v39, %s3811_s0 }
0x1045   :  { %v1075_v42 = vpop.permute.xlu0 %1074 }
0x1046   :  { %v1102_v45 = vpop.permute.xlu1 %1101  ;;  %v4244_v46 = vmul.f32 %v3562_v52, %v1075_v42 }
0x1047   :  { %v4246_v48 = vmul.f32 %v3564_v24, %v1102_v45 }
0x1048   :  { %v1078_v20 = vsel %vm515_vm9, %v4244_v46, %v928_v18 }
0x1049   :  { %v1105_v49 = vsel %vm514_vm8, %v4246_v48, %v955_v63  ;;  %1119 = vrot.lane.b32.xlu0 %v1078_v20, %s3812_s22 }
0x104a   :  { %1123 = vrot.lane.b32.xlu1 %v1105_v49, %s3811_s0 }
0x10bb   :  { %v1120_v22 = vpop.permute.xlu0 %1119 }
0x10bc   :  { %v1124_v47 = vpop.permute.xlu1 %1123 }
0x10bd   :  { %v1126_v50 = vsel %vm89_vm0, %v1120_v22, %v1124_v47 }
0x10be   :  { %3200 = vmatmul.mubr.msk.f32.vlgmr.msra.gmra.mrb[8].mxu0 %vm229_vm5, %v1126_v50 }
0x1191   :  { %v1196_v51 = vpop.f32.mrb[8].mxu0 }
0x1192   :  { %v1201_v55 = vadd.f32 %v1196_v51, %v4026_v1  ;;  %v1203_v56 = vadd.f32 %v1196_v51, %v4022_v0  ;;  %v3201_v57 = vpop.f32.mrb[9].mxu0 }
0x1194   :  { %3569 = vtanh.f32 %v1201_v55  ;;  %v2949_v60 = vmul.f32 -1.442695, %v1201_v55  ;;  %v2950_v18 = vmul.f32 -1.442695, %v1203_v56 }
0x1195   :  { %3571 = vtanh.f32 %v1203_v56 }
0x1196   :  { %3573 = vpow2.f32 %v2949_v60 }
0x1197   :  { %3575 = vpow2.f32 %v2950_v18 }
0x119e   :  { %v3570_v58 = vpop.eup %3569 }
0x119f   :  { %v3572_v59 = vpop.eup %3571  ;;  %1213 = vrot.lane.b32.xlu0 %v3570_v58, %s3809_s4 }
0x11a0   :  { %1240 = vrot.lane.b32.xlu1 %v3572_v59, %s3809_s4  ;;  %v3574_v63 = vpop.eup %3573 }
0x11a1   :  { %v3576_v2 = vpop.eup %3575  ;;  %v1207_v3 = vadd.f32 1.0, %v3574_v63 }
0x11a2   :  { %v1234_v4 = vadd.f32 1.0, %v3576_v2 }
0x11a3   :  { %3577 = vrcp.f32 %v1207_v3 }
0x11a4   :  { %3579 = vrcp.f32 %v1234_v4 }
0x11ad   :  { %v3578_v0 = vpop.eup %3577 }
0x11ae   :  { %v3580_v5 = vpop.eup %3579  ;;  %v1211_v8 = vmul.f32 %v3578_v0, %v1079_v11 }
0x11af   :  { %v1238_v17 = vmul.f32 %v3580_v5, %v1106_v14 }
0x1211   :  { %v1214_v1 = vpop.permute.xlu0 %1213 }
0x1212   :  { %v1241_v6 = vpop.permute.xlu1 %1240  ;;  %v1216_v7 = vmul.f32 %v3578_v0, %v1214_v1 }
0x1213   :  { %v1243_v9 = vmul.f32 %v3580_v5, %v1241_v6  ;;  %v476_v6 = vsel %vm370_vm6, %v4064_v43, 0.0  ;;  %v957_v43 = vsel %vm666_vm10, %v4214_v62, 0.0  ;;  %v1414_v62 = vld [vmem:[%s4758_s5] sm:$0xff] }
0x1214   :  { %1218 = vrot.lane.b32.xlu0 %v1216_v7, %s3810_s21  ;;  %v1107_v7 = vsel %vm514_vm8, %v4246_v48, 0.0  ;;  %v655_v48 = vsel %vm515_vm9, %v4128_v32, 0.0  ;;  %v1415_v32 = vld [vmem:[%s4758_s5 + $0x8] sm:$0xff] }
0x1215   :  { %1245 = vrot.lane.b32.xlu1 %v1243_v9, %s3810_s21 }
0x1286   :  { %v1219_v15 = vpop.permute.xlu0 %1218 }
0x1287   :  { %v1246_v19 = vpop.permute.xlu1 %1245  ;;  %v1221_v21 = vadd.f32 %v1219_v15, %v1211_v8  ;;  %v1417_v8 = vld [vmem:[%s4758_s5 + $0x18] sm:$0xff] }
0x1288   :  { %v1248_v23 = vadd.f32 %v1246_v19, %v1238_v17  ;;  %v1418_v17 = vld [vmem:[%s4759_s6] sm:$0xff]  ;;  %v1419_v19 = vld [vmem:[%s4759_s6 + $0x8] sm:$0xff] }
0x1289   :  { %3581 = vtanh.f32 %v1221_v21  ;;  %v1229_v58 = vsel %vm371_vm7, %v1221_v21, %v1079_v11  ;;  %v1080_v11 = vsel %vm515_vm9, %v4244_v46, 0.0  ;;  %v1416_v46 = vld [vmem:[%s4758_s5 + $0x10] sm:$0xff]  ;;  %v4352_v21 = vpack.c.bf16 %v1419_v19, %v1418_v17 }
0x128a   :  { %3583 = vtanh.f32 %v1248_v23  ;;  %v1256_v59 = vsel %vm370_vm6, %v1248_v23, %v1106_v14  ;;  %v3393_v14 = vpack.c.bf16 %v1415_v32, %v1414_v62  ;;  %v3397_v15 = vpack.c.bf16 %v1417_v8, %v1416_v46  ;;  %v1420_v23 = vld [vmem:[%s4759_s6 + $0x10] sm:$0xff] }
0x128c   :  { %3394 = vmatprep.subr.bf16.mxu0 %v3393_v14 }
0x128d   :  { %3396 = vmatpush3.bf16.msra.mxu0 %v3393_v14 }
0x128e   :  { %3398 = vmatprep.subr.bf16.mxu0 %v3397_v15 }
0x1291   :  { %3400 = vmatpush3.bf16.msra.mxu0 %v3397_v15 }
0x1292   :  { %3413 = vmatprep.subr.bf16.mxu0 %v3805_v10 }
0x1293   :  { %v3582_v52 = vpop.eup %3581 }
0x1294   :  { %v3584_v53 = vpop.eup %3583  ;;  %1224 = vrot.lane.b32.xlu0 %v3582_v52, %s3811_s0  ;;  %v1421_v52 = vld [vmem:[%s4759_s6 + $0x18] sm:$0xff] }
0x1295   :  { %1251 = vrot.lane.b32.xlu1 %v3584_v53, %s3811_s0  ;;  %v4362_v53 = vpack.c.bf16 %v1421_v52, %v1420_v23 }
0x1306   :  { %v1225_v24 = vpop.permute.xlu0 %1224 }
0x1307   :  { %v1252_v26 = vpop.permute.xlu1 %1251  ;;  %v4270_v28 = vmul.f32 %v3578_v0, %v1225_v24 }
0x1308   :  { %v1254_v29 = vmul.f32 %v3580_v5, %v1252_v26  ;;  %v628_v5 = vsel %vm514_vm8, %v4125_v30, 0.0  ;;  %v780_v30 = vsel %vm666_vm10, %v4177_v12, 0.0 }
0x1309   :  { %v1228_v31 = vsel %vm371_vm7, %v4270_v28, %v1078_v20  ;;  %v1230_v12 = vsel %vm371_vm7, %v4270_v28, 0.0 }
0x130a   :  { %v1255_v33 = vsel %vm370_vm6, %v1254_v29, %v1105_v49  ;;  %1269 = vrot.lane.b32.xlu0 %v1228_v31, %s3812_s22  ;;  %v1257_v9 = vsel %vm370_vm6, %v1254_v29, 0.0 }
0x130b   :  { %1273 = vrot.lane.b32.xlu1 %v1255_v33, %s3811_s0 }
0x137c   :  { %v1270_v34 = vpop.permute.xlu0 %1269 }
0x137d   :  { %v1274_v35 = vpop.permute.xlu1 %1273 }
0x137e   :  { %v1276_v36 = vsel %vm89_vm0, %v1270_v34, %v1274_v35  ;;  %v807_v34 = vsel %vm667_vm11, %v4180_v13, 0.0 }
0x137f   :  { %3211 = vmatmul.mubr.msk.f32.vlgmr.msra.gmra.mrb[12].mxu1 %vm229_vm5, %v1276_v36 }
0x1380   :  { %3241 = vmatprep.mubr.msk.f32.mxu1 %vm3806_vm1, %v3807_v16  ;;  %3403 = vmatpush3.bf16.msra.mxu1 %v4352_v21 }
0x1381   :  { %3404 = vmatprep.subr.bf16.mxu1 %v3805_v10 }
0x1384   :  { %3406 = vmatpush3.bf16.msra.mxu1 %v4362_v53 }
0x1385   :  { %3407 = vmatprep.subr.bf16.mxu1 %v3805_v10 }
0x1387   :  { %3242 = vmatmul.mubr.f32.vlgmr.msra.gmra.mrb[14].mxu1 %v3807_v16 }
0x1388   :  { %3409 = vmatpush3.bf16.msra.mxu1 %v4352_v21  ;;  %3252 = vmatprep.mubr.msk.f32.mxu1 %vm3806_vm1, %v3807_v16 }
0x1389   :  { %3410 = vmatprep.subr.bf16.mxu1 %v3805_v10 }
0x138c   :  { %3412 = vmatpush3.bf16.msra.mxu1 %v4362_v53 }
0x138d   :  { %3419 = vmatprep.subr.bf16.mxu1 %v3805_v10 }
0x1452   :  { %v1346_v37 = vpop.f32.mrb[12].mxu1 }
0x1453   :  { %v1351_v40 = vadd.f32 %v1346_v37, %v3975_v27  ;;  %v1353_v41 = vadd.f32 %v1346_v37, %v3972_v25  ;;  %v3212_v38 = vpop.f32.mrb[13].mxu1  ;;  %v930_v37 = vsel %vm667_vm11, %v4212_v61, 0.0 }
0x1455   :  { %3585 = vtanh.f32 %v1351_v40  ;;  %v2952_v45 = vmul.f32 -1.442695, %v1351_v40  ;;  %v2953_v20 = vmul.f32 -1.442695, %v1353_v41 }
0x1456   :  { %3587 = vtanh.f32 %v1353_v41  ;;  %v503_v41 = vsel %vm371_vm7, %v4067_v44, 0.0 }
0x1457   :  { %3589 = vpow2.f32 %v2952_v45 }
0x1458   :  { %3591 = vpow2.f32 %v2953_v20 }
0x145f   :  { %v3586_v39 = vpop.eup %3585 }
0x1460   :  { %v3588_v42 = vpop.eup %3587  ;;  %1363 = vrot.lane.b32.xlu1 %v3586_v39, %s3809_s4 }
0x1461   :  { %1388 = vrot.lane.b32.xlu0 %v3588_v42, %s3809_s4  ;;  %v3590_v49 = vpop.eup %3589 }
0x1462   :  { %v3592_v22 = vpop.eup %3591  ;;  %v1357_v47 = vadd.f32 1.0, %v3590_v49 }
0x1463   :  { %v1382_v50 = vadd.f32 1.0, %v3592_v22 }
0x1464   :  { %3593 = vrcp.f32 %v1357_v47 }
0x1465   :  { %3595 = vrcp.f32 %v1382_v50 }
0x146e   :  { %v4287_v25 = vpop.eup %3593 }
0x146f   :  { %v3596_v51 = vpop.eup %3595  ;;  %v1361_v60 = vmul.f32 %v4287_v25, %v1229_v58 }
0x1470   :  { %v1386_v18 = vmul.f32 %v3596_v51, %v1256_v59  ;;  %v1640_v59 = vpop.f32.mrb[14].mxu1 }
0x14d2   :  { %v1364_v27 = vpop.permute.xlu1 %1363 }
0x14d3   :  { %v1389_v55 = vpop.permute.xlu0 %1388  ;;  %v1366_v56 = vmul.f32 %v4287_v25, %v1364_v27 }
0x14d4   :  { %v1391_v57 = vmul.f32 %v3596_v51, %v1389_v55 }
0x14d5   :  { %1368 = vrot.lane.b32.xlu1 %v1366_v56, %s3810_s21 }
0x14d6   :  { %1393 = vrot.lane.b32.xlu0 %v1391_v57, %s3810_s21 }
0x1547   :  { %v1369_v63 = vpop.permute.xlu1 %1368 }
0x1548   :  { %v1394_v2 = vpop.permute.xlu0 %1393  ;;  %v1371_v3 = vadd.f32 %v1369_v63, %v1361_v60  ;;  %v3243_v60 = vpop.f32.mrb[15].mxu1 }
0x1549   :  { %v1396_v4 = vadd.f32 %v1394_v2, %v1386_v18  ;;  %v2954_v18 = vld [vmem:[%s4760_s7] ss:$0 sm:$0xff] }
0x154a   :  { %3597 = vtanh.f32 %v1371_v3 }
0x154b   :  { %3599 = vtanh.f32 %v1396_v4 }
0x1554   :  { %v3598_v0 = vpop.eup %3597 }
0x1555   :  { %v3600_v1 = vpop.eup %3599  ;;  %1374 = vrot.lane.b32.xlu1 %v3598_v0, %s3811_s0 }
0x1556   :  { %1399 = vrot.lane.b32.xlu0 %v3600_v1, %s3811_s0 }
0x1559   :  { %657 = vrot.lane.b32.xlu1 %v628_v5, %s3812_s22 }
0x155a   :  { %505 = vrot.lane.b32.xlu0 %v476_v6, %s3812_s22 }
0x155d   :  { %1114 = vrot.lane.b32.xlu1 %v1107_v7, %s3811_s0 }
0x155e   :  { %1264 = vrot.lane.b32.xlu0 %v1257_v9, %s3811_s0 }
0x1562   :  { %809 = vrot.lane.b32.xlu0 %v780_v30, %s3812_s22 }
0x1566   :  { %964 = vrot.lane.b32.xlu0 %v957_v43, %s3811_s0 }
0x156a   :  { %662 = vrot.lane.b32.xlu0 %v655_v48, %s3811_s0 }
0x156e   :  { %1109 = vrot.lane.b32.xlu0 %v1080_v11, %s3812_s22 }
0x1572   :  { %1259 = vrot.lane.b32.xlu0 %v1230_v12, %s3812_s22 }
0x15c7   :  { %v1375_v24 = vpop.permute.xlu1 %1374 }
0x15c8   :  { %v1400_v26 = vpop.permute.xlu0 %1399  ;;  %v1377_v13 = vmul.f32 %v4287_v25, %v1375_v24 }
0x15c9   :  { %v1402_v28 = vmul.f32 %v3596_v51, %v1400_v26 }
0x15ca   :  { %v1378_v39 = vsel %vm228_vm3, %v1377_v13, 0.0 }
0x15cb   :  { %v1403_v29 = vsel %vm227_vm2, %v1402_v28, 0.0  ;;  %v658_v31 = vpop.permute.xlu1 %657 }
0x15cc   :  { %v506_v33 = vpop.permute.xlu0 %505  ;;  %1410 = vrot.lane.b32.xlu1 %v1403_v29, %s3811_s0  ;;  %660 = vst.msk [vmem:[#allocation2 + $0x10] sm:$0xff] %vm89_vm0, %v658_v31 }
0x15cd   :  { %508 = vst.msk [vmem:[#allocation2 + $0x8] sm:$0xff] %vm89_vm0, %v506_v33 }
0x15cf   :  { %v1115_v35 = vpop.permute.xlu1 %1114 }
0x15d0   :  { %v1265_v36 = vpop.permute.xlu0 %1264  ;;  %814 = vrot.lane.b32.xlu1 %v807_v34, %s3811_s0  ;;  %1117 = vst.msk [vmem:[#allocation2 + $0x10] sm:$0xff] %vm368_vm4, %v1115_v35 }
0x15d1   :  { %1267 = vst.msk [vmem:[#allocation2 + $0x8] sm:$0xff] %vm368_vm4, %v1265_v36 }
0x15d4   :  { %v810_v40 = vpop.permute.xlu0 %809  ;;  %959 = vrot.lane.b32.xlu1 %v930_v37, %s3812_s22 }
0x15d5   :  { %812 = vst.msk [vmem:[#allocation2 + $0x18] sm:$0xff] %vm89_vm0, %v810_v40 }
0x15d7   :  { %v1425_v47 = vld [vmem:[#allocation2 + $0x10] sm:$0xff] }
0x15d8   :  { %v965_v38 = vpop.permute.xlu0 %964  ;;  %510 = vrot.lane.b32.xlu1 %v503_v41, %s3811_s0  ;;  %v1424_v22 = vld [vmem:[#allocation2 + $0x8] sm:$0xff] }
0x15d9   :  { %967 = vst.msk [vmem:[#allocation2 + $0x18] sm:$0xff] %vm368_vm4, %v965_v38 }
0x15dc   :  { %v663_v61 = vpop.permute.xlu0 %662  ;;  %1405 = vrot.lane.b32.xlu1 %v1378_v39, %s3812_s22 }
0x15dd   :  { %665 = vst.msk [vmem:[#allocation2 + $0x28] sm:$0xff] %vm368_vm4, %v663_v61 }
0x15e0   :  { %v1110_v42 = vpop.permute.xlu0 %1109  ;;  %v1426_v27 = vld [vmem:[#allocation2 + $0x18] sm:$0xff] }
0x15e1   :  { %1112 = vst.msk [vmem:[#allocation2 + $0x28] sm:$0xff] %vm89_vm0, %v1110_v42 }
0x15e4   :  { %v1260_v25 = vpop.permute.xlu0 %1259 }
0x15e8   :  { %v1428_v56 = vld [vmem:[#allocation2 + $0x28] sm:$0xff] }
0x163e   :  { %v1411_v45 = vpop.permute.xlu1 %1410 }
0x163f   :  { %1413 = vst.msk [vmem:[#allocation2] sm:$0xff] %vm368_vm4, %v1411_v45 }
0x1642   :  { %v815_v44 = vpop.permute.xlu1 %814 }
0x1643   :  { %817 = vst.msk [vmem:[#allocation2 + $0x20] sm:$0xff] %vm368_vm4, %v815_v44 }
0x1646   :  { %v960_v20 = vpop.permute.xlu1 %959  ;;  %v1423_v49 = vld [vmem:[#allocation2] sm:$0xff] }
0x1647   :  { %962 = vst.msk [vmem:[#allocation2 + $0x20] sm:$0xff] %vm89_vm0, %v960_v20  ;;  %3221 = vmatprep.mubr.msk.f32.mxu0 %vm229_vm5, %v1423_v49 }
0x1648   :  { %3222 = vmatmul.mubr.msk.f32.vlgmr.msra.gmra.mrb[10].mxu0 %vm229_vm5, %v1424_v22 }
0x1649   :  { %3224 = vmatprep.mubr.msk.f32.mxu0 %vm229_vm5, %v1425_v47  ;;  %3415 = vmatpush3.bf16.msra.mxu0 %v4352_v21 }
0x164a   :  { %v511_v50 = vpop.permute.xlu1 %510  ;;  %3416 = vmatprep.subr.bf16.mxu0 %v3805_v10 }
0x164b   :  { %513 = vst.msk [vmem:[#allocation2 + $0x30] sm:$0xff] %vm368_vm4, %v511_v50 }
0x164c   :  { %1262 = vst.msk [vmem:[#allocation2 + $0x30] sm:$0xff] %vm89_vm0, %v1260_v25  ;;  %3225 = vmatmul.mubr.msk.f32.gmra.mrb[12].mxu0 %vm229_vm5, %v1426_v27 }
0x164d   :  { %3418 = vmatpush3.bf16.msra.mxu0 %v4362_v53 }
0x164e   :  { %v1406_v51 = vpop.permute.xlu1 %1405  ;;  %v1427_v55 = vld [vmem:[#allocation2 + $0x20] sm:$0xff]  ;;  %3425 = vmatprep.subr.bf16.mxu0 %v3805_v10 }
0x164f   :  { %1408 = vst.msk [vmem:[#allocation2 + $0x38] sm:$0xff] %vm89_vm0, %v1406_v51  ;;  %3227 = vmatprep.mubr.msk.f32.mxu0 %vm229_vm5, %v1427_v55 }
0x1650   :  { %3228 = vmatmul.mubr.msk.f32.gmra.mrb[14].mxu0 %vm229_vm5, %v1428_v56 }
0x1653   :  { %v1429_v57 = vld [vmem:[#allocation2 + $0x30] sm:$0xff] }
0x1654   :  { %3230 = vmatprep.mubr.msk.f32.mxu0 %vm229_vm5, %v1429_v57 }
0x1656   :  { %v1430_v58 = vld [vmem:[#allocation2 + $0x38] sm:$0xff] }
0x1657   :  { %3231 = vmatmul.mubr.msk.f32.gmra.mrb[16].mxu0 %vm229_vm5, %v1430_v58 }
0x1658   :  { %3263 = vmatprep.mubr.msk.f32.mxu0 %vm3806_vm1, %v3807_v16 }
0x171b   :  { %v3223_v63 = vpop.f32.mrb[10].mxu0 }
0x171c   :  { %v4424_v2 = vadd.f32 %v3223_v63, %v2954_v18  ;;  %v1527_v3 = vpop.f32.mrb[11].mxu0 }
0x171d   :  { %v4426_v4 = vadd.f32 %v2954_v18, %v1527_v3 }
0x171f   :  { %v1645_v0 = vadd.f32 %v1640_v59, %v4426_v4  ;;  %v3226_v1 = vpop.f32.mrb[12].mxu0 }
0x1720   :  { %v4429_v5 = vadd.f32 %v3226_v1, %v2954_v18  ;;  %v1537_v6 = vpop.f32.mrb[13].mxu0 }
0x1721   :  { %3601 = vtanh.f32 %v1645_v0  ;;  %v4431_v7 = vadd.f32 %v2954_v18, %v1537_v6  ;;  %v2963_v17 = vmul.f32 -1.442695, %v1645_v0 }
0x1723   :  { %v3229_v9 = vpop.f32.mrb[14].mxu0 }
0x1724   :  { %v4433_v30 = vadd.f32 %v3229_v9, %v2954_v18  ;;  %v1547_v43 = vpop.f32.mrb[15].mxu0 }
0x1725   :  { %v4435_v48 = vadd.f32 %v2954_v18, %v1547_v43 }
0x172a   :  { %v3232_v11 = vpop.f32.mrb[16].mxu0 }
0x172b   :  { %v3602_v12 = vpop.eup %3601  ;;  %v4437_v62 = vadd.f32 %v3232_v11, %v2954_v18  ;;  %v1557_v32 = vpop.f32.mrb[17].mxu0 }
0x172c   :  { %v4439_v14 = vadd.f32 %v2954_v18, %v1557_v32  ;;  %1657 = vrot.lane.b32.xlu0 %v3602_v12, %s3809_s4 }
0x172d   :  { %v1647_v46 = vadd.f32 %v1640_v59, %v4437_v62 }
0x172f   :  { %3603 = vtanh.f32 %v1647_v46  ;;  %v2964_v19 = vmul.f32 -1.442695, %v1647_v46 }
0x1730   :  { %3605 = vpow2.f32 %v2963_v17 }
0x1731   :  { %3607 = vpow2.f32 %v2964_v19 }
0x1739   :  { %v3604_v8 = vpop.eup %3603 }
0x173a   :  { %1683 = vrot.lane.b32.xlu1 %v3604_v8, %s3809_s4  ;;  %v3606_v15 = vpop.eup %3605 }
0x173b   :  { %v1651_v23 = vadd.f32 1.0, %v3606_v15  ;;  %v3608_v52 = vpop.eup %3607 }
0x173c   :  { %v1677_v26 = vadd.f32 1.0, %v3608_v52 }
0x173d   :  { %3609 = vrcp.f32 %v1651_v23 }
0x173e   :  { %3611 = vrcp.f32 %v1677_v26 }
0x1747   :  { %v3610_v24 = vpop.eup %3609 }
0x1748   :  { %v3612_v31 = vpop.eup %3611  ;;  %v1655_v35 = vmul.f32 0.0, %v3610_v24 }
0x1749   :  { %v1681_v13 = vmul.f32 0.0, %v3612_v31 }
0x179e   :  { %v1658_v28 = vpop.permute.xlu0 %1657 }
0x179f   :  { %v1660_v29 = vmul.f32 %v3610_v24, %v1658_v28 }
0x17a1   :  { %1662 = vrot.lane.b32.xlu0 %v1660_v29, %s3810_s21 }
0x17ac   :  { %v1684_v33 = vpop.permute.xlu1 %1683 }
0x17ad   :  { %v1686_v34 = vmul.f32 %v3612_v31, %v1684_v33 }
0x17af   :  { %1688 = vrot.lane.b32.xlu1 %v1686_v34, %s3810_s21 }
0x1813   :  { %v1663_v36 = vpop.permute.xlu0 %1662 }
0x1814   :  { %v1665_v37 = vadd.f32 %v1663_v36, %v1655_v35 }
0x1816   :  { %3613 = vtanh.f32 %v1665_v37  ;;  %v1673_v12 = vsel %vm227_vm2, %v1665_v37, 0.0 }
0x1820   :  { %v3614_v40 = vpop.eup %3613 }
0x1821   :  { %v1689_v41 = vpop.permute.xlu1 %1688  ;;  %1668 = vrot.lane.b32.xlu0 %v3614_v40, %s3811_s0 }
0x1822   :  { %v1691_v38 = vadd.f32 %v1689_v41, %v1681_v13 }
0x1824   :  { %3615 = vtanh.f32 %v1691_v38  ;;  %v1699_v32 = vsel %vm228_vm3, %v1691_v38, 0.0 }
0x182e   :  { %v3616_v39 = vpop.eup %3615 }
0x182f   :  { %1694 = vrot.lane.b32.xlu1 %v3616_v39, %s3811_s0 }
0x1893   :  { %v1669_v61 = vpop.permute.xlu0 %1668 }
0x1894   :  { %v1671_v42 = vmul.f32 %v3610_v24, %v1669_v61 }
0x1896   :  { %v4450_v45 = vsel %vm227_vm2, %v1671_v42, 0.0 }
0x1897   :  { %1701 = vrot.lane.b32.xlu0 %v4450_v45, %s3812_s22 }
0x18a1   :  { %v1695_v44 = vpop.permute.xlu1 %1694 }
0x18a2   :  { %v1697_v20 = vmul.f32 %v3612_v31, %v1695_v44 }
0x18a4   :  { %v1698_v49 = vsel %vm228_vm3, %v1697_v20, 0.0 }
0x18a5   :  { %1706 = vrot.lane.b32.xlu1 %v1698_v49, %s3811_s0 }
0x1909   :  { %v1702_v22 = vpop.permute.xlu0 %1701 }
0x190a   :  { %1704 = vst.msk [vmem:[#allocation2] sm:$0xff] %vm89_vm0, %v1702_v22 }
0x1917   :  { %v1707_v47 = vpop.permute.xlu1 %1706 }
0x1918   :  { %1709 = vst.msk [vmem:[#allocation2 + $0x38] sm:$0xff] %vm368_vm4, %v1707_v47  ;;  %v1710_v50 = vsel %vm89_vm0, %v1702_v22, %v1707_v47 }
0x1919   :  { %3253 = vmatmul.mubr.msk.f32.vlgmr.msra.gmra.mrb[16].mxu1 %vm229_vm5, %v1710_v50 }
0x191a   :  { %3421 = vmatpush3.bf16.msra.mxu1 %v4352_v21  ;;  %3274 = vmatprep.mubr.msk.f32.mxu1 %vm3806_vm1, %v3807_v16 }
0x191b   :  { %3422 = vmatprep.subr.bf16.mxu1 %v3805_v10 }
0x191e   :  { %3424 = vmatpush3.bf16.msra.mxu1 %v4362_v53 }
0x191f   :  { %3431 = vmatprep.subr.bf16.mxu1 %v3805_v10 }
0x19ec   :  { %v1780_v25 = vpop.f32.mrb[16].mxu1 }
0x19ed   :  { %v1785_v27 = vadd.f32 %v1780_v25, %v4424_v2  ;;  %v1787_v51 = vadd.f32 %v1780_v25, %v4439_v14  ;;  %v3254_v55 = vpop.f32.mrb[17].mxu1 }
0x19ef   :  { %3617 = vtanh.f32 %v1785_v27  ;;  %v2966_v58 = vmul.f32 -1.442695, %v1785_v27  ;;  %v2967_v59 = vmul.f32 -1.442695, %v1787_v51 }
0x19f0   :  { %3619 = vtanh.f32 %v1787_v51 }
0x19f1   :  { %3621 = vpow2.f32 %v2966_v58 }
0x19f2   :  { %3623 = vpow2.f32 %v2967_v59 }
0x19f9   :  { %v3618_v56 = vpop.eup %3617 }
0x19fa   :  { %v3620_v57 = vpop.eup %3619  ;;  %1797 = vrot.lane.b32.xlu0 %v3618_v56, %s3809_s4 }
0x19fb   :  { %1824 = vrot.lane.b32.xlu1 %v3620_v57, %s3809_s4  ;;  %v3622_v60 = vpop.eup %3621 }
0x19fc   :  { %v3624_v18 = vpop.eup %3623  ;;  %v1791_v63 = vadd.f32 1.0, %v3622_v60 }
0x19fd   :  { %v1818_v3 = vadd.f32 1.0, %v3624_v18 }
0x19fe   :  { %3625 = vrcp.f32 %v1791_v63 }
0x19ff   :  { %3627 = vrcp.f32 %v1818_v3 }
0x1a08   :  { %v3626_v0 = vpop.eup %3625 }
0x1a09   :  { %v3628_v6 = vpop.eup %3627  ;;  %v1795_v46 = vmul.f32 %v3626_v0, %v1673_v12 }
0x1a0a   :  { %v1822_v8 = vmul.f32 %v3628_v6, %v1699_v32 }
0x1a6c   :  { %v1798_v1 = vpop.permute.xlu0 %1797 }
0x1a6d   :  { %v1825_v9 = vpop.permute.xlu1 %1824  ;;  %v1800_v43 = vmul.f32 %v3626_v0, %v1798_v1 }
0x1a6e   :  { %v1827_v11 = vmul.f32 %v3628_v6, %v1825_v9 }
0x1a6f   :  { %1802 = vrot.lane.b32.xlu0 %v1800_v43, %s3810_s21 }
0x1a70   :  { %1829 = vrot.lane.b32.xlu1 %v1827_v11, %s3810_s21 }
0x1ae1   :  { %v1803_v17 = vpop.permute.xlu0 %1802 }
0x1ae2   :  { %v1830_v15 = vpop.permute.xlu1 %1829  ;;  %v1805_v19 = vadd.f32 %v1803_v17, %v1795_v46 }
0x1ae3   :  { %v1832_v23 = vadd.f32 %v1830_v15, %v1822_v8 }
0x1ae4   :  { %3629 = vtanh.f32 %v1805_v19  ;;  %v1813_v56 = vsel %vm370_vm6, %v1805_v19, %v1673_v12 }
0x1ae5   :  { %3631 = vtanh.f32 %v1832_v23  ;;  %v1840_v57 = vsel %vm371_vm7, %v1832_v23, %v1699_v32 }
0x1aee   :  { %v3630_v52 = vpop.eup %3629 }
0x1aef   :  { %v3632_v24 = vpop.eup %3631  ;;  %1808 = vrot.lane.b32.xlu0 %v3630_v52, %s3811_s0 }
0x1af0   :  { %1835 = vrot.lane.b32.xlu1 %v3632_v24, %s3811_s0 }
0x1b61   :  { %v1809_v26 = vpop.permute.xlu0 %1808 }
0x1b62   :  { %v1836_v28 = vpop.permute.xlu1 %1835  ;;  %v4479_v29 = vmul.f32 %v3626_v0, %v1809_v26 }
0x1b63   :  { %v4481_v31 = vmul.f32 %v3628_v6, %v1836_v28 }
0x1b64   :  { %v1812_v33 = vsel %vm370_vm6, %v4479_v29, %v4450_v45 }
0x1b65   :  { %v1839_v34 = vsel %vm371_vm7, %v4481_v31, %v1698_v49  ;;  %1853 = vrot.lane.b32.xlu0 %v1812_v33, %s3812_s22 }
0x1b66   :  { %1857 = vrot.lane.b32.xlu1 %v1839_v34, %s3811_s0 }
0x1bd7   :  { %v1854_v35 = vpop.permute.xlu0 %1853 }
0x1bd8   :  { %v1858_v36 = vpop.permute.xlu1 %1857 }
0x1bd9   :  { %v1860_v37 = vsel %vm89_vm0, %v1854_v35, %v1858_v36 }
0x1bda   :  { %3264 = vmatmul.mubr.msk.f32.vlgmr.msra.gmra.mrb[18].mxu0 %vm229_vm5, %v1860_v37 }
0x1bdb   :  { %3427 = vmatpush3.bf16.msra.mxu0 %v4352_v21  ;;  %3285 = vmatprep.mubr.msk.f32.mxu0 %vm3806_vm1, %v3807_v16 }
0x1bdc   :  { %3428 = vmatprep.subr.bf16.mxu0 %v3805_v10 }
0x1bdf   :  { %3430 = vmatpush3.bf16.msra.mxu0 %v4362_v53 }
0x1be0   :  { %3437 = vmatprep.subr.bf16.mxu0 %v3805_v10 }
0x1cad   :  { %v1930_v40 = vpop.f32.mrb[18].mxu0 }
0x1cae   :  { %v1935_v13 = vadd.f32 %v1930_v40, %v4431_v7  ;;  %v1937_v41 = vadd.f32 %v1930_v40, %v4433_v30  ;;  %v3265_v38 = vpop.f32.mrb[19].mxu0 }
0x1cb0   :  { %3633 = vtanh.f32 %v1935_v13  ;;  %v2969_v42 = vmul.f32 -1.442695, %v1935_v13  ;;  %v2970_v45 = vmul.f32 -1.442695, %v1937_v41 }
0x1cb1   :  { %3635 = vtanh.f32 %v1937_v41 }
0x1cb2   :  { %3637 = vpow2.f32 %v2969_v42 }
0x1cb3   :  { %3639 = vpow2.f32 %v2970_v45 }
0x1cba   :  { %v3634_v39 = vpop.eup %3633 }
0x1cbb   :  { %v3636_v61 = vpop.eup %3635  ;;  %1947 = vrot.lane.b32.xlu0 %v3634_v39, %s3809_s4 }
0x1cbc   :  { %1974 = vrot.lane.b32.xlu1 %v3636_v61, %s3809_s4  ;;  %v3638_v44 = vpop.eup %3637 }
0x1cbd   :  { %v3640_v20 = vpop.eup %3639  ;;  %v1941_v49 = vadd.f32 1.0, %v3638_v44 }
0x1cbe   :  { %v1968_v22 = vadd.f32 1.0, %v3640_v20 }
0x1cbf   :  { %3641 = vrcp.f32 %v1941_v49 }
0x1cc0   :  { %3643 = vrcp.f32 %v1968_v22 }
0x1cc9   :  { %v3642_v47 = vpop.eup %3641 }
0x1cca   :  { %v3644_v25 = vpop.eup %3643  ;;  %v1945_v58 = vmul.f32 %v3642_v47, %v1813_v56 }
0x1ccb   :  { %v1972_v59 = vmul.f32 %v3644_v25, %v1840_v57 }
0x1d2d   :  { %v1948_v50 = vpop.permute.xlu0 %1947 }
0x1d2e   :  { %v1975_v27 = vpop.permute.xlu1 %1974  ;;  %v1950_v51 = vmul.f32 %v3642_v47, %v1948_v50 }
0x1d2f   :  { %v1977_v55 = vmul.f32 %v3644_v25, %v1975_v27 }
0x1d30   :  { %1952 = vrot.lane.b32.xlu0 %v1950_v51, %s3810_s21 }
0x1d31   :  { %1979 = vrot.lane.b32.xlu1 %v1977_v55, %s3810_s21 }
0x1da2   :  { %v1953_v60 = vpop.permute.xlu0 %1952 }
0x1da3   :  { %v1980_v18 = vpop.permute.xlu1 %1979  ;;  %v1955_v63 = vadd.f32 %v1953_v60, %v1945_v58 }
0x1da4   :  { %v1982_v3 = vadd.f32 %v1980_v18, %v1972_v59 }
0x1da5   :  { %3645 = vtanh.f32 %v1955_v63  ;;  %v1963_v42 = vsel %vm514_vm8, %v1955_v63, %v1813_v56 }
0x1da6   :  { %3647 = vtanh.f32 %v1982_v3  ;;  %v1990_v45 = vsel %vm515_vm9, %v1982_v3, %v1840_v57 }
0x1daf   :  { %v3646_v0 = vpop.eup %3645 }
0x1db0   :  { %v3648_v1 = vpop.eup %3647  ;;  %1958 = vrot.lane.b32.xlu0 %v3646_v0, %s3811_s0 }
0x1db1   :  { %1985 = vrot.lane.b32.xlu1 %v3648_v1, %s3811_s0 }
0x1e22   :  { %v1959_v6 = vpop.permute.xlu0 %1958 }
0x1e23   :  { %v1986_v9 = vpop.permute.xlu1 %1985  ;;  %v4512_v43 = vmul.f32 %v3642_v47, %v1959_v6 }
0x1e24   :  { %v4514_v11 = vmul.f32 %v3644_v25, %v1986_v9 }
0x1e25   :  { %v1962_v12 = vsel %vm514_vm8, %v4512_v43, %v1812_v33 }
0x1e26   :  { %v1989_v32 = vsel %vm515_vm9, %v4514_v11, %v1839_v34  ;;  %2003 = vrot.lane.b32.xlu0 %v1962_v12, %s3812_s22 }
0x1e27   :  { %2007 = vrot.lane.b32.xlu1 %v1989_v32, %s3811_s0 }
0x1e98   :  { %v2004_v46 = vpop.permute.xlu0 %2003 }
0x1e99   :  { %v2008_v8 = vpop.permute.xlu1 %2007 }
0x1e9a   :  { %v2010_v17 = vsel %vm89_vm0, %v2004_v46, %v2008_v8 }
0x1e9b   :  { %3275 = vmatmul.mubr.msk.f32.vlgmr.msra.gmra.mrb[18].mxu1 %vm229_vm5, %v2010_v17 }
0x1e9c   :  { %3433 = vmatpush3.bf16.msra.mxu1 %v4352_v21  ;;  %3296 = vmatprep.mubr.msk.f32.mxu1 %vm3806_vm1, %v3807_v16 }
0x1e9d   :  { %3434 = vmatprep.subr.bf16.mxu1 %v3805_v10 }
0x1ea0   :  { %3436 = vmatpush3.bf16.msra.mxu1 %v4362_v53 }
0x1ea1   :  { %3443 = vmatprep.subr.bf16.mxu1 %v3805_v10 }
0x1f6e   :  { %v2080_v15 = vpop.f32.mrb[18].mxu1 }
0x1f6f   :  { %v2085_v19 = vadd.f32 %v2080_v15, %v4429_v5  ;;  %v2087_v23 = vadd.f32 %v2080_v15, %v4435_v48  ;;  %v3276_v52 = vpop.f32.mrb[19].mxu1 }
0x1f71   :  { %3649 = vtanh.f32 %v2085_v19  ;;  %v2972_v28 = vmul.f32 -1.442695, %v2085_v19  ;;  %v2973_v33 = vmul.f32 -1.442695, %v2087_v23 }
0x1f72   :  { %3651 = vtanh.f32 %v2087_v23 }
0x1f73   :  { %3653 = vpow2.f32 %v2972_v28 }
0x1f74   :  { %3655 = vpow2.f32 %v2973_v33 }
0x1f7b   :  { %v3650_v24 = vpop.eup %3649 }
0x1f7c   :  { %v3652_v26 = vpop.eup %3651  ;;  %2097 = vrot.lane.b32.xlu0 %v3650_v24, %s3809_s4 }
0x1f7d   :  { %2124 = vrot.lane.b32.xlu1 %v3652_v26, %s3809_s4  ;;  %v3654_v34 = vpop.eup %3653 }
0x1f7e   :  { %v3656_v35 = vpop.eup %3655  ;;  %v2091_v36 = vadd.f32 1.0, %v3654_v34 }
0x1f7f   :  { %v2118_v37 = vadd.f32 1.0, %v3656_v35 }
0x1f80   :  { %3657 = vrcp.f32 %v2091_v36 }
0x1f81   :  { %3659 = vrcp.f32 %v2118_v37 }
0x1f8a   :  { %v3658_v40 = vpop.eup %3657 }
0x1f8b   :  { %v3660_v41 = vpop.eup %3659  ;;  %v2095_v44 = vmul.f32 %v3658_v40, %v1963_v42 }
0x1f8c   :  { %v2122_v20 = vmul.f32 %v3660_v41, %v1990_v45 }
0x1fee   :  { %v2098_v13 = vpop.permute.xlu0 %2097 }
0x1fef   :  { %v2125_v38 = vpop.permute.xlu1 %2124  ;;  %v2100_v39 = vmul.f32 %v3658_v40, %v2098_v13 }
0x1ff0   :  { %v2127_v61 = vmul.f32 %v3660_v41, %v2125_v38 }
0x1ff1   :  { %2102 = vrot.lane.b32.xlu0 %v2100_v39, %s3810_s21 }
0x1ff2   :  { %2129 = vrot.lane.b32.xlu1 %v2127_v61, %s3810_s21 }
0x2063   :  { %v2103_v49 = vpop.permute.xlu0 %2102 }
0x2064   :  { %v2130_v22 = vpop.permute.xlu1 %2129  ;;  %v2105_v47 = vadd.f32 %v2103_v49, %v2095_v44 }
0x2065   :  { %v2132_v50 = vadd.f32 %v2130_v22, %v2122_v20 }
0x2066   :  { %3661 = vtanh.f32 %v2105_v47  ;;  %v2113_v28 = vsel %vm666_vm10, %v2105_v47, %v1963_v42 }
0x2067   :  { %3663 = vtanh.f32 %v2132_v50  ;;  %v2140_v33 = vsel %vm667_vm11, %v2132_v50, %v1990_v45 }
0x2070   :  { %v3662_v25 = vpop.eup %3661 }
0x2071   :  { %v3664_v27 = vpop.eup %3663  ;;  %2108 = vrot.lane.b32.xlu0 %v3662_v25, %s3811_s0 }
0x2072   :  { %2135 = vrot.lane.b32.xlu1 %v3664_v27, %s3811_s0 }
0x20e3   :  { %v2109_v51 = vpop.permute.xlu0 %2108 }
0x20e4   :  { %v2136_v55 = vpop.permute.xlu1 %2135  ;;  %v4544_v56 = vmul.f32 %v3658_v40, %v2109_v51 }
0x20e5   :  { %v4546_v58 = vmul.f32 %v3660_v41, %v2136_v55 }
0x20e6   :  { %v2112_v57 = vsel %vm666_vm10, %v4544_v56, %v1962_v12 }
0x20e7   :  { %v2139_v59 = vsel %vm667_vm11, %v4546_v58, %v1989_v32  ;;  %2153 = vrot.lane.b32.xlu0 %v2112_v57, %s3812_s22 }
0x20e8   :  { %2157 = vrot.lane.b32.xlu1 %v2139_v59, %s3811_s0 }
0x2159   :  { %v2154_v60 = vpop.permute.xlu0 %2153 }
0x215a   :  { %v2158_v18 = vpop.permute.xlu1 %2157 }
0x215b   :  { %v2160_v63 = vsel %vm89_vm0, %v2154_v60, %v2158_v18 }
0x215c   :  { %3286 = vmatmul.mubr.msk.f32.vlgmr.msra.gmra.mrb[20].mxu0 %vm229_vm5, %v2160_v63 }
0x215d   :  { %3439 = vmatpush3.bf16.msra.mxu0 %v4352_v21  ;;  %3307 = vmatprep.mubr.msk.f32.mxu0 %vm3806_vm1, %v3807_v16 }
0x215e   :  { %3440 = vmatprep.subr.bf16.mxu0 %v3805_v10 }
0x2161   :  { %3442 = vmatpush3.bf16.msra.mxu0 %v4362_v53 }
0x222f   :  { %v2230_v3 = vpop.f32.mrb[20].mxu0 }
0x2230   :  { %v2235_v0 = vadd.f32 %v2230_v3, %v4435_v48  ;;  %v2237_v1 = vadd.f32 %v2230_v3, %v4429_v5  ;;  %v3287_v6 = vpop.f32.mrb[21].mxu0 }
0x2232   :  { %3665 = vtanh.f32 %v2235_v0  ;;  %v2975_v32 = vmul.f32 -1.442695, %v2235_v0  ;;  %v2976_v46 = vmul.f32 -1.442695, %v2237_v1 }
0x2233   :  { %3667 = vtanh.f32 %v2237_v1 }
0x2234   :  { %3669 = vpow2.f32 %v2975_v32 }
0x2235   :  { %3671 = vpow2.f32 %v2976_v46 }
0x223c   :  { %v3666_v9 = vpop.eup %3665 }
0x223d   :  { %v3668_v12 = vpop.eup %3667  ;;  %2247 = vrot.lane.b32.xlu0 %v3666_v9, %s3809_s4 }
0x223e   :  { %2274 = vrot.lane.b32.xlu1 %v3668_v12, %s3809_s4  ;;  %v3670_v8 = vpop.eup %3669 }
0x223f   :  { %v3672_v17 = vpop.eup %3671  ;;  %v2241_v15 = vadd.f32 1.0, %v3670_v8 }
0x2240   :  { %v2268_v19 = vadd.f32 1.0, %v3672_v17 }
0x2241   :  { %3673 = vrcp.f32 %v2241_v15 }
0x2242   :  { %3675 = vrcp.f32 %v2268_v19 }
0x224b   :  { %v3674_v5 = vpop.eup %3673 }
0x224c   :  { %v3676_v23 = vpop.eup %3675  ;;  %v2245_v34 = vmul.f32 %v3674_v5, %v2113_v28 }
0x224d   :  { %v2272_v35 = vmul.f32 %v3676_v23, %v2140_v33 }
0x22af   :  { %v2248_v48 = vpop.permute.xlu0 %2247 }
0x22b0   :  { %v2275_v52 = vpop.permute.xlu1 %2274  ;;  %v2250_v24 = vmul.f32 %v3674_v5, %v2248_v48 }
0x22b1   :  { %v2277_v26 = vmul.f32 %v3676_v23, %v2275_v52 }
0x22b2   :  { %2252 = vrot.lane.b32.xlu0 %v2250_v24, %s3810_s21 }
0x22b3   :  { %2279 = vrot.lane.b32.xlu1 %v2277_v26, %s3810_s21 }
0x2324   :  { %v2253_v36 = vpop.permute.xlu0 %2252 }
0x2325   :  { %v2280_v37 = vpop.permute.xlu1 %2279  ;;  %v2255_v40 = vadd.f32 %v2253_v36, %v2245_v34 }
0x2326   :  { %v2282_v13 = vadd.f32 %v2280_v37, %v2272_v35 }
0x2327   :  { %3677 = vtanh.f32 %v2255_v40  ;;  %v2263_v1 = vsel %vm667_vm11, %v2255_v40, %v2113_v28 }
0x2328   :  { %3679 = vtanh.f32 %v2282_v13  ;;  %v2290_v6 = vsel %vm666_vm10, %v2282_v13, %v2140_v33 }
0x2331   :  { %v3678_v41 = vpop.eup %3677 }
0x2332   :  { %v3680_v38 = vpop.eup %3679  ;;  %2258 = vrot.lane.b32.xlu0 %v3678_v41, %s3811_s0 }
0x2333   :  { %2285 = vrot.lane.b32.xlu1 %v3680_v38, %s3811_s0 }
0x23a4   :  { %v2259_v39 = vpop.permute.xlu0 %2258 }
0x23a5   :  { %v2286_v61 = vpop.permute.xlu1 %2285  ;;  %v4575_v42 = vmul.f32 %v3674_v5, %v2259_v39 }
0x23a6   :  { %v4577_v44 = vmul.f32 %v3676_v23, %v2286_v61 }
0x23a7   :  { %v2262_v45 = vsel %vm667_vm11, %v4575_v42, %v2112_v57 }
0x23a8   :  { %v2289_v20 = vsel %vm666_vm10, %v4577_v44, %v2139_v59  ;;  %2303 = vrot.lane.b32.xlu0 %v2262_v45, %s3812_s22 }
0x23a9   :  { %2307 = vrot.lane.b32.xlu1 %v2289_v20, %s3811_s0 }
0x241a   :  { %v2304_v49 = vpop.permute.xlu0 %2303 }
0x241b   :  { %v2308_v22 = vpop.permute.xlu1 %2307 }
0x241c   :  { %v2310_v47 = vsel %vm89_vm0, %v2304_v49, %v2308_v22 }
0x241d   :  { %3297 = vmatmul.mubr.msk.f32.vlgmr.msra.gmra.mrb[20].mxu1 %vm229_vm5, %v2310_v47 }
0x241e   :  { %3445 = vmatpush3.bf16.msra.mxu1 %v4352_v21  ;;  %3318 = vmatprep.mubr.msk.f32.mxu1 %vm3806_vm1, %v3807_v16 }
0x241f   :  { %3446 = vmatprep.subr.bf16.mxu1 %v3805_v10 }
0x2422   :  { %3448 = vmatpush3.bf16.msra.mxu1 %v4362_v53 }
0x24f0   :  { %v2380_v50 = vpop.f32.mrb[20].mxu1 }
0x24f1   :  { %v2385_v25 = vadd.f32 %v2380_v50, %v4433_v30  ;;  %v2387_v27 = vadd.f32 %v2380_v50, %v4431_v7  ;;  %v3298_v51 = vpop.f32.mrb[21].mxu1 }
0x24f3   :  { %3681 = vtanh.f32 %v2385_v25  ;;  %v2978_v21 = vmul.f32 -1.442695, %v2385_v25  ;;  %v2979_v16 = vmul.f32 -1.442695, %v2387_v27 }
0x24f4   :  { %3683 = vtanh.f32 %v2387_v27 }
0x24f5   :  { %3685 = vpow2.f32 %v2978_v21 }
0x24f6   :  { %3687 = vpow2.f32 %v2979_v16 }
0x24fd   :  { %v3682_v55 = vpop.eup %3681 }
0x24fe   :  { %v3684_v57 = vpop.eup %3683  ;;  %2397 = vrot.lane.b32.xlu0 %v3682_v55, %s3809_s4 }
0x24ff   :  { %2424 = vrot.lane.b32.xlu1 %v3684_v57, %s3809_s4  ;;  %v3686_v10 = vpop.eup %3685 }
0x2500   :  { %v3688_v53 = vpop.eup %3687  ;;  %v2391_v59 = vadd.f32 1.0, %v3686_v10 }
0x2501   :  { %v2418_v60 = vadd.f32 1.0, %v3688_v53 }
0x2502   :  { %3689 = vrcp.f32 %v2391_v59 }
0x2503   :  { %3691 = vrcp.f32 %v2418_v60 }
0x250c   :  { %v3690_v7 = vpop.eup %3689 }
0x250d   :  { %v3692_v18 = vpop.eup %3691  ;;  %v2395_v9 = vmul.f32 %v3690_v7, %v2263_v1 }
0x250e   :  { %v2422_v12 = vmul.f32 %v3692_v18, %v2290_v6 }
0x2570   :  { %v2398_v30 = vpop.permute.xlu0 %2397 }
0x2571   :  { %v2425_v63 = vpop.permute.xlu1 %2424  ;;  %v2400_v3 = vmul.f32 %v3690_v7, %v2398_v30 }
0x2572   :  { %v2427_v0 = vmul.f32 %v3692_v18, %v2425_v63 }
0x2573   :  { %2402 = vrot.lane.b32.xlu0 %v2400_v3, %s3810_s21 }
0x2574   :  { %2429 = vrot.lane.b32.xlu1 %v2427_v0, %s3810_s21 }
0x25e5   :  { %v2403_v32 = vpop.permute.xlu0 %2402 }
0x25e6   :  { %v2430_v46 = vpop.permute.xlu1 %2429  ;;  %v2405_v8 = vadd.f32 %v2403_v32, %v2395_v9 }
0x25e7   :  { %v2432_v17 = vadd.f32 %v2430_v46, %v2422_v12 }
0x25e8   :  { %3693 = vtanh.f32 %v2405_v8  ;;  %v2413_v27 = vsel %vm515_vm9, %v2405_v8, %v2263_v1 }
0x25e9   :  { %3695 = vtanh.f32 %v2432_v17  ;;  %v2440_v51 = vsel %vm514_vm8, %v2432_v17, %v2290_v6 }
0x25f2   :  { %v3694_v15 = vpop.eup %3693 }
0x25f3   :  { %v3696_v19 = vpop.eup %3695  ;;  %2408 = vrot.lane.b32.xlu0 %v3694_v15, %s3811_s0 }
0x25f4   :  { %2435 = vrot.lane.b32.xlu1 %v3696_v19, %s3811_s0 }
0x2665   :  { %v2409_v5 = vpop.permute.xlu0 %2408 }
0x2666   :  { %v2436_v48 = vpop.permute.xlu1 %2435  ;;  %v4606_v23 = vmul.f32 %v3690_v7, %v2409_v5 }
0x2667   :  { %v4608_v52 = vmul.f32 %v3692_v18, %v2436_v48 }
0x2668   :  { %v2412_v24 = vsel %vm515_vm9, %v4606_v23, %v2262_v45 }
0x2669   :  { %v2439_v26 = vsel %vm514_vm8, %v4608_v52, %v2289_v20  ;;  %2453 = vrot.lane.b32.xlu0 %v2412_v24, %s3812_s22 }
0x266a   :  { %2457 = vrot.lane.b32.xlu1 %v2439_v26, %s3811_s0 }
0x26db   :  { %v2454_v28 = vpop.permute.xlu0 %2453 }
0x26dc   :  { %v2458_v33 = vpop.permute.xlu1 %2457 }
0x26dd   :  { %v2460_v34 = vsel %vm89_vm0, %v2454_v28, %v2458_v33 }
0x26de   :  { %3308 = vmatmul.mubr.msk.f32.vlgmr.msra.gmra.mrb[22].mxu0 %vm229_vm5, %v2460_v34 }
0x27b1   :  { %v2530_v35 = vpop.f32.mrb[22].mxu0 }
0x27b2   :  { %v2535_v36 = vadd.f32 %v2530_v35, %v4439_v14  ;;  %v2537_v37 = vadd.f32 %v2530_v35, %v4424_v2  ;;  %v3309_v40 = vpop.f32.mrb[23].mxu0 }
0x27b4   :  { %3697 = vtanh.f32 %v2535_v36  ;;  %v2981_v38 = vmul.f32 -1.442695, %v2535_v36  ;;  %v2982_v39 = vmul.f32 -1.442695, %v2537_v37 }
0x27b5   :  { %3699 = vtanh.f32 %v2537_v37 }
0x27b6   :  { %3701 = vpow2.f32 %v2981_v38 }
0x27b7   :  { %3703 = vpow2.f32 %v2982_v39 }
0x27be   :  { %v3698_v13 = vpop.eup %3697 }
0x27bf   :  { %v3700_v41 = vpop.eup %3699  ;;  %2547 = vrot.lane.b32.xlu0 %v3698_v13, %s3809_s4 }
0x27c0   :  { %2574 = vrot.lane.b32.xlu1 %v3700_v41, %s3809_s4  ;;  %v3702_v61 = vpop.eup %3701 }
0x27c1   :  { %v3704_v45 = vpop.eup %3703  ;;  %v2541_v20 = vadd.f32 1.0, %v3702_v61 }
0x27c2   :  { %v2568_v49 = vadd.f32 1.0, %v3704_v45 }
0x27c3   :  { %3705 = vrcp.f32 %v2541_v20 }
0x27c4   :  { %3707 = vrcp.f32 %v2568_v49 }
0x27cd   :  { %v3706_v2 = vpop.eup %3705 }
0x27ce   :  { %v3708_v22 = vpop.eup %3707  ;;  %v2545_v55 = vmul.f32 %v3706_v2, %v2413_v27 }
0x27cf   :  { %v2572_v57 = vmul.f32 %v3708_v22, %v2440_v51 }
0x2831   :  { %v2548_v14 = vpop.permute.xlu0 %2547 }
0x2832   :  { %v2575_v47 = vpop.permute.xlu1 %2574  ;;  %v2550_v50 = vmul.f32 %v3706_v2, %v2548_v14  ;;  %v1814_v14 = vsel %vm370_vm6, %v4479_v29, 0.0  ;;  %v2291_v29 = vsel %vm666_vm10, %v4577_v44, 0.0  ;;  %v2756_v44 = vld [vmem:[#allocation7] sm:$0xff] }
0x2833   :  { %v2577_v25 = vmul.f32 %v3708_v22, %v2575_v47 }
0x2834   :  { %2552 = vrot.lane.b32.xlu0 %v2550_v50, %s3810_s21  ;;  %v2414_v50 = vsel %vm515_vm9, %v4606_v23, 0.0 }
0x2835   :  { %2579 = vrot.lane.b32.xlu1 %v2577_v25, %s3810_s21  ;;  %v2757_v25 = vld [vmem:[#allocation7 + $0x8] sm:$0xff] }
0x28a6   :  { %v2553_v21 = vpop.permute.xlu0 %2552 }
0x28a7   :  { %v2580_v16 = vpop.permute.xlu1 %2579  ;;  %v2555_v10 = vadd.f32 %v2553_v21, %v2545_v55 }
0x28a8   :  { %v2582_v53 = vadd.f32 %v2580_v16, %v2572_v57 }
0x28a9   :  { %3709 = vtanh.f32 %v2555_v10  ;;  %v2563_v37 = vsel %vm371_vm7, %v2555_v10, %v2413_v27  ;;  %v3449_v27 = vpack.c.bf16 %v2757_v25, %v2756_v44 }
0x28aa   :  { %3711 = vtanh.f32 %v2582_v53  ;;  %v2590_v40 = vsel %vm370_vm6, %v2582_v53, %v2440_v51  ;;  %v2759_v51 = vld [vmem:[#allocation7 + $0x18] sm:$0xff] }
0x28ab   :  { %3450 = vmatprep.subr.bf16.mxu0 %v3449_v27 }
0x28ac   :  { %3452 = vmatpush3.bf16.msra.mxu0 %v3449_v27 }
0x28b3   :  { %v3710_v59 = vpop.eup %3709 }
0x28b4   :  { %v3712_v60 = vpop.eup %3711  ;;  %2558 = vrot.lane.b32.xlu0 %v3710_v59, %s3811_s0  ;;  %v2141_v59 = vsel %vm667_vm11, %v4546_v58, 0.0  ;;  %v1841_v58 = vsel %vm371_vm7, %v4481_v31, 0.0 }
0x28b5   :  { %2585 = vrot.lane.b32.xlu1 %v3712_v60, %s3811_s0 }
0x2926   :  { %v2559_v7 = vpop.permute.xlu0 %2558 }
0x2927   :  { %v2586_v30 = vpop.permute.xlu1 %2585  ;;  %v4632_v18 = vmul.f32 %v3706_v2, %v2559_v7  ;;  %v1964_v2 = vsel %vm514_vm8, %v4512_v43, 0.0  ;;  %v2114_v43 = vsel %vm666_vm10, %v4544_v56, 0.0 }
0x2928   :  { %v2588_v63 = vmul.f32 %v3708_v22, %v2586_v30  ;;  %v2441_v22 = vsel %vm514_vm8, %v4608_v52, 0.0  ;;  %v1991_v52 = vsel %vm515_vm9, %v4514_v11, 0.0  ;;  %v2758_v11 = vld [vmem:[#allocation7 + $0x10] sm:$0xff]  ;;  %v2264_v30 = vsel %vm667_vm11, %v4575_v42, 0.0 }
0x2929   :  { %v2562_v3 = vsel %vm371_vm7, %v4632_v18, %v2412_v24  ;;  %v2564_v56 = vsel %vm371_vm7, %v4632_v18, 0.0  ;;  %v3453_v55 = vpack.c.bf16 %v2759_v51, %v2758_v11 }
0x292a   :  { %v2589_v0 = vsel %vm370_vm6, %v2588_v63, %v2439_v26  ;;  %2603 = vrot.lane.b32.xlu0 %v2562_v3, %s3812_s22  ;;  %v2591_v47 = vsel %vm370_vm6, %v2588_v63, 0.0 }
0x292b   :  { %2607 = vrot.lane.b32.xlu1 %v2589_v0, %s3811_s0  ;;  %3454 = vmatprep.subr.bf16.mxu0 %v3453_v55 }
0x292c   :  { %3456 = vmatpush3.bf16.msra.mxu0 %v3453_v55 }
0x299c   :  { %v2604_v1 = vpop.permute.xlu0 %2603 }
0x299d   :  { %v2608_v6 = vpop.permute.xlu1 %2607 }
0x299e   :  { %v2610_v9 = vsel %vm89_vm0, %v2604_v1, %v2608_v6 }
0x299f   :  { %3319 = vmatmul.mubr.msk.f32.vlgmr.msra.gmra.mrb[22].mxu1 %vm229_vm5, %v2610_v9 }
0x2a72   :  { %v2680_v12 = vpop.f32.mrb[22].mxu1 }
0x2a73   :  { %v2685_v32 = vadd.f32 %v2680_v12, %v4437_v62  ;;  %v2687_v46 = vadd.f32 %v2680_v12, %v4426_v4  ;;  %v3320_v8 = vpop.f32.mrb[23].mxu1 }
0x2a75   :  { %3713 = vtanh.f32 %v2685_v32  ;;  %v2984_v19 = vmul.f32 -1.442695, %v2685_v32  ;;  %v2985_v5 = vmul.f32 -1.442695, %v2687_v46 }
0x2a76   :  { %3715 = vtanh.f32 %v2687_v46 }
0x2a77   :  { %3717 = vpow2.f32 %v2984_v19 }
0x2a78   :  { %3719 = vpow2.f32 %v2985_v5 }
0x2a7f   :  { %v3714_v17 = vpop.eup %3713 }
0x2a80   :  { %v3716_v15 = vpop.eup %3715  ;;  %2697 = vrot.lane.b32.xlu1 %v3714_v17, %s3809_s4 }
0x2a81   :  { %2722 = vrot.lane.b32.xlu0 %v3716_v15, %s3809_s4  ;;  %v3718_v48 = vpop.eup %3717 }
0x2a82   :  { %v3720_v24 = vpop.eup %3719  ;;  %v2691_v26 = vadd.f32 1.0, %v3718_v48 }
0x2a83   :  { %v2716_v28 = vadd.f32 1.0, %v3720_v24 }
0x2a84   :  { %3721 = vrcp.f32 %v2691_v26  ;;  %v2986_v26 = vld [vmem:[%s4762_s9] ss:$0 sm:$0xff] }
0x2a85   :  { %3723 = vrcp.f32 %v2716_v28 }
0x2a8e   :  { %v4647_v4 = vpop.eup %3721 }
0x2a8f   :  { %v3724_v33 = vpop.eup %3723  ;;  %v2695_v13 = vmul.f32 %v4647_v4, %v2563_v37 }
0x2a90   :  { %v2720_v41 = vmul.f32 %v3724_v33, %v2590_v40 }
0x2af2   :  { %v2698_v62 = vpop.permute.xlu1 %2697 }
0x2af3   :  { %v2723_v34 = vpop.permute.xlu0 %2722  ;;  %v2700_v35 = vmul.f32 %v4647_v4, %v2698_v62 }
0x2af4   :  { %v2725_v36 = vmul.f32 %v3724_v33, %v2723_v34 }
0x2af5   :  { %2702 = vrot.lane.b32.xlu1 %v2700_v35, %s3810_s21 }
0x2af6   :  { %2727 = vrot.lane.b32.xlu0 %v2725_v36, %s3810_s21  ;;  %s3813_s21 = smov [#allocation9]  }
0x2af7   :  { %s2909_s9 = sshll.u32 %s3813_s21, 4  ;;  %s2910_s9 = int_to_ptr.vmem [resolvable:$true] %s2909_s9 }
0x2af8   :  { %p3778_p3 = scmp.lt.s32.totalorder %s2910_s9, %s2910_s9 }
0x2b67   :  { %v2703_v38 = vpop.permute.xlu1 %2702 }
0x2b68   :  { %v2728_v39 = vpop.permute.xlu0 %2727  ;;  %v2705_v61 = vadd.f32 %v2703_v38, %v2695_v13 }
0x2b69   :  { %v2730_v45 = vadd.f32 %v2728_v39, %v2720_v41 }
0x2b6a   :  { %3725 = vtanh.f32 %v2705_v61 }
0x2b6b   :  { %3727 = vtanh.f32 %v2730_v45 }
0x2b74   :  { %v3726_v20 = vpop.eup %3725 }
0x2b75   :  { %v3728_v49 = vpop.eup %3727  ;;  %2708 = vrot.lane.b32.xlu1 %v3726_v20, %s3811_s0 }
0x2b76   :  { %2733 = vrot.lane.b32.xlu0 %v3728_v49, %s3811_s0 }
0x2b79   :  { %1993 = vrot.lane.b32.xlu1 %v1964_v2, %s3812_s22 }
0x2b7a   :  { %1843 = vrot.lane.b32.xlu0 %v1814_v14, %s3812_s22 }
0x2b7d   :  { %2448 = vrot.lane.b32.xlu1 %v2441_v22, %s3811_s0 }
0x2b7e   :  { %2598 = vrot.lane.b32.xlu0 %v2591_v47, %s3811_s0 }
0x2b82   :  { %2143 = vrot.lane.b32.xlu0 %v2114_v43, %s3812_s22 }
0x2b86   :  { %2298 = vrot.lane.b32.xlu0 %v2291_v29, %s3811_s0 }
0x2b8a   :  { %1998 = vrot.lane.b32.xlu0 %v1991_v52, %s3811_s0 }
0x2b8e   :  { %2443 = vrot.lane.b32.xlu0 %v2414_v50, %s3812_s22 }
0x2b92   :  { %2593 = vrot.lane.b32.xlu0 %v2564_v56, %s3812_s22 }
0x2be7   :  { %v2709_v57 = vpop.permute.xlu1 %2708 }
0x2be8   :  { %v2734_v23 = vpop.permute.xlu0 %2733  ;;  %v2711_v63 = vmul.f32 %v4647_v4, %v2709_v57 }
0x2be9   :  { %v2736_v21 = vmul.f32 %v3724_v33, %v2734_v23 }
0x2bea   :  { %v2712_v0 = vsel %vm228_vm3, %v2711_v63, 0.0 }
0x2beb   :  { %v2737_v16 = vsel %vm227_vm2, %v2736_v21, 0.0  ;;  %v1994_v10 = vpop.permute.xlu1 %1993 }
0x2bec   :  { %v1844_v53 = vpop.permute.xlu0 %1843  ;;  %2744 = vrot.lane.b32.xlu1 %v2737_v16, %s3811_s0  ;;  %1996 = vst.msk [vmem:[#allocation2 + $0x10] sm:$0xff] %vm89_vm0, %v1994_v10 }
0x2bed   :  { %1846 = vst.msk [vmem:[#allocation2 + $0x8] sm:$0xff] %vm89_vm0, %v1844_v53 }
0x2bef   :  { %v2449_v60 = vpop.permute.xlu1 %2448 }
0x2bf0   :  { %v2599_v7 = vpop.permute.xlu0 %2598  ;;  %2148 = vrot.lane.b32.xlu1 %v2141_v59, %s3811_s0  ;;  %2451 = vst.msk [vmem:[#allocation2 + $0x10] sm:$0xff] %vm368_vm4, %v2449_v60 }
0x2bf1   :  { %2601 = vst.msk [vmem:[#allocation2 + $0x8] sm:$0xff] %vm368_vm4, %v2599_v7 }
0x2bf4   :  { %v2144_v18 = vpop.permute.xlu0 %2143  ;;  %2293 = vrot.lane.b32.xlu1 %v2264_v30, %s3812_s22 }
0x2bf5   :  { %2146 = vst.msk [vmem:[#allocation2 + $0x18] sm:$0xff] %vm89_vm0, %v2144_v18 }
0x2bf7   :  { %v2750_v32 = vld [vmem:[#allocation2 + $0x10] sm:$0xff] }
0x2bf8   :  { %v2299_v3 = vpop.permute.xlu0 %2298  ;;  %1848 = vrot.lane.b32.xlu1 %v1841_v58, %s3811_s0  ;;  %v2749_v54 = vld [vmem:[#allocation2 + $0x8] sm:$0xff]  ;;  %s3773_s0 = scalar_lea.vmem %s2910_s9, 1024 }
0x2bf9   :  { %2301 = vst.msk [vmem:[#allocation2 + $0x18] sm:$0xff] %vm368_vm4, %v2299_v3  ;;  %p3774_p2 = scmp.ne.s32.totalorder %s2910_s9, %s3773_s0  ;;  %p3779_p4 = scmp.lt.s32.totalorder %s3773_s0, %s3773_s0 }
0x2bfb   :  { %p3780_p5 = por %p3779_p4, %p3778_p3 }
0x2bfc   :  { %v1999_v42 = vpop.permute.xlu0 %1998  ;;  %2739 = vrot.lane.b32.xlu1 %v2712_v0, %s3812_s22 }
0x2bfd   :  { %2001 = vst.msk [vmem:[#allocation2 + $0x28] sm:$0xff] %vm368_vm4, %v1999_v42  ;;  %p3781_p6 = pnand %p3780_p5, %p3774_p2 }
0x2c00   :  { %v2444_v1 = vpop.permute.xlu0 %2443  ;;  %v2751_v17 = vld [vmem:[#allocation2 + $0x18] sm:$0xff] }
0x2c01   :  { %2446 = vst.msk [vmem:[#allocation2 + $0x28] sm:$0xff] %vm89_vm0, %v2444_v1 }
0x2c04   :  { %v2594_v8 = vpop.permute.xlu0 %2593 }
0x2c08   :  { %v2753_v5 = vld [vmem:[#allocation2 + $0x28] sm:$0xff] }
0x2c5e   :  { %v2745_v6 = vpop.permute.xlu1 %2744 }
0x2c5f   :  { %2747 = vst.msk [vmem:[#allocation2] sm:$0xff] %vm368_vm4, %v2745_v6 }
0x2c62   :  { %v2149_v31 = vpop.permute.xlu1 %2148 }
0x2c63   :  { %2151 = vst.msk [vmem:[#allocation2 + $0x20] sm:$0xff] %vm368_vm4, %v2149_v31 }
0x2c66   :  { %v2294_v9 = vpop.permute.xlu1 %2293  ;;  %v2748_v12 = vld [vmem:[#allocation2] sm:$0xff] }
0x2c67   :  { %2296 = vst.msk [vmem:[#allocation2 + $0x20] sm:$0xff] %vm89_vm0, %v2294_v9  ;;  %3329 = vmatprep.mubr.msk.f32.mxu0 %vm229_vm5, %v2748_v12 }
0x2c68   :  { %3330 = vmatmul.mubr.msk.f32.vlgmr.msra.gmra.mrb[24].mxu0 %vm229_vm5, %v2749_v54 }
0x2c69   :  { %3332 = vmatprep.mubr.msk.f32.mxu0 %vm229_vm5, %v2750_v32 }
0x2c6a   :  { %v1849_v46 = vpop.permute.xlu1 %1848 }
0x2c6b   :  { %1851 = vst.msk [vmem:[#allocation2 + $0x30] sm:$0xff] %vm368_vm4, %v1849_v46 }
0x2c6c   :  { %2596 = vst.msk [vmem:[#allocation2 + $0x30] sm:$0xff] %vm89_vm0, %v2594_v8  ;;  %3333 = vmatmul.mubr.msk.f32.gmra.mrb[26].mxu0 %vm229_vm5, %v2751_v17 }
0x2c6e   :  { %v2740_v15 = vpop.permute.xlu1 %2739  ;;  %v2752_v19 = vld [vmem:[#allocation2 + $0x20] sm:$0xff] }
0x2c6f   :  { %2742 = vst.msk [vmem:[#allocation2 + $0x38] sm:$0xff] %vm89_vm0, %v2740_v15  ;;  %3335 = vmatprep.mubr.msk.f32.mxu0 %vm229_vm5, %v2752_v19 }
0x2c70   :  { %3336 = vmatmul.mubr.msk.f32.gmra.mrb[28].mxu0 %vm229_vm5, %v2753_v5 }
0x2c73   :  { %v2754_v48 = vld [vmem:[#allocation2 + $0x30] sm:$0xff] }
0x2c74   :  { %3338 = vmatprep.mubr.msk.f32.mxu0 %vm229_vm5, %v2754_v48 }
0x2c76   :  { %v2755_v24 = vld [vmem:[#allocation2 + $0x38] sm:$0xff] }
0x2c77   :  { %3339 = vmatmul.mubr.msk.f32.gmra.mrb[30].mxu0 %vm229_vm5, %v2755_v24 }
0x2d3b   :  { %v3331_v28 = vpop.f32.mrb[24].mxu0 }
0x2d3c   :  { %v2863_v4 = vadd.f32 %v3331_v28, %v2986_v26  ;;  %v2857_v62 = vpop.f32.mrb[25].mxu0 }
0x2d3d   :  { %v2858_v33 = vadd.f32 %v2986_v26, %v2857_v62 }
0x2d3e   :  { %2897 = vst [vmem:[#allocation9 + $0x8] sm:$0xff] %v2863_v4 }
0x2d3f   :  { %2896 = vst [vmem:[#allocation9] sm:$0xff] %v2858_v33  ;;  %v3334_v34 = vpop.f32.mrb[26].mxu0 }
0x2d40   :  { %v2873_v35 = vadd.f32 %v3334_v34, %v2986_v26  ;;  %v2867_v36 = vpop.f32.mrb[27].mxu0 }
0x2d41   :  { %v2868_v37 = vadd.f32 %v2986_v26, %v2867_v36 }
0x2d42   :  { %2899 = vst [vmem:[#allocation9 + $0x18] sm:$0xff] %v2873_v35 }
0x2d43   :  { %2898 = vst [vmem:[#allocation9 + $0x10] sm:$0xff] %v2868_v37  ;;  %v3337_v40 = vpop.f32.mrb[28].mxu0 }
0x2d44   :  { %v2883_v13 = vadd.f32 %v3337_v40, %v2986_v26  ;;  %v2877_v41 = vpop.f32.mrb[29].mxu0 }
0x2d45   :  { %v2878_v38 = vadd.f32 %v2986_v26, %v2877_v41 }
0x2d46   :  { %2901 = vst [vmem:[#allocation9 + $0x28] sm:$0xff] %v2883_v13 }
0x2d47   :  { %2900 = vst [vmem:[#allocation9 + $0x20] sm:$0xff] %v2878_v38 }
0x2d4a   :  { %v3340_v39 = vpop.f32.mrb[30].mxu0 }
0x2d4b   :  { %v2893_v61 = vadd.f32 %v3340_v39, %v2986_v26  ;;  %v2887_v45 = vpop.f32.mrb[31].mxu0 }
0x2d4c   :  { %v2888_v20 = vadd.f32 %v2986_v26, %v2887_v45 }
0x2d4d   :  { %2903 = vst [vmem:[#allocation9 + $0x38] sm:$0xff] %v2893_v61 }
0x2d4e   :  { %2902 = vst [vmem:[#allocation9 + $0x30] sm:$0xff] %v2888_v20 }
0x2d4f   :  { %3784 = shalt.err (!%p3781_p6)
}
0x2d50   :  { %s3785_s25 = scalar_lea.hbm %s4763_s10, 1024 }
0x2d51   :  { %p3786_p7 = scmp.ne.s32.totalorder %s4763_s10, %s3785_s25  ;;  %p3789_p8 = scmp.lt.u32.totalorder %s3785_s25, %s4763_s10 }
0x2d53   :  { %p3791_p9 = pnand %p3789_p8, %p3786_p7 }
0x2d55   :  { %3794 = shalt.err (!%p3791_p9)
}
0x2d56   :  { %2915 = dma.vmem_to_hbm [thread:$0]  %s2910_s9, 1024, %s4763_s10, [#allocation6], %s3802_s23, %s3802_s23, %s3803_s24  }
0x2d57   :  { %3799 = dma.done.wait [#allocation6], 1024  }
0x2d58   :  { %3800 = vsyncadd [#allocation6], 4294966272 }
0x2d59   :  { %2919 = vsyncpa [#allocation5], 1 }
0x2d5a   :  { %2920 = vsyncpa [#allocation8], 1 }
0x2d5b   :  { %2921 = vsyncpa [#allocation6], 1 }

</bundles_post_ra>
